<compile_context>
chip_gen: v7x
topology: tpu7x:2x2x1
jax: 0.10.0
libtpu: 0.0.40
codegen_flags: <defaults>
</compile_context>

<pallas_src>
import functools
import math

import numpy as np
import jax
import jax.numpy as jnp
from jax import lax
from jax.experimental import pallas as pl
from jax.experimental.pallas import tpu as pltpu


# ---------------------------------------------------------------------------
# Pallas kernels
# ---------------------------------------------------------------------------

def _conv3x3_kernel(x_ref, w_ref, b_ref, o_ref, *, th, relu):
    """Direct 3x3 stride-1 pad-1 conv on a tile of `th` output rows.

    x_ref: (1, H+2, W+2, C) padded NHWC image (resident across the row-tile axis)
    w_ref: (9, C, OC) bf16 taps ordered (kh, kw); b_ref: (1, OC) f32
    o_ref: (1, th, W, OC) bf16
    The 9 taps are formed with in-VMEM slices (in-kernel im2col); each output row
    is a (W, C) x (C, OC) MXU matmul accumulated in f32.
    """
    r0 = pl.program_id(1) * th
    ow = o_ref.shape[2]
    oc = o_ref.shape[3]
    bias = b_ref[...]
    for r in range(th):
        acc = jnp.zeros((ow, oc), jnp.float32)
        for kh in range(3):
            for kw in range(3):
                a = x_ref[0, r0 + r + kh, pl.ds(kw, ow), :]
                acc += jnp.dot(a, w_ref[kh * 3 + kw, :, :],
                               preferred_element_type=jnp.float32)
        acc += bias
        if relu:
            acc = jnp.maximum(acc, 0.0)
        o_ref[0, r, :, :] = acc.astype(o_ref.dtype)


def _conv3x3_res_kernel(x_ref, w_ref, b_ref, res_ref, o_ref, *, th):
    """conv2 of a BasicBlock: direct 3x3 conv with the residual merge fused into the
    epilogue: relu(conv(x) + bias + identity)."""
    r0 = pl.program_id(1) * th
    ow = o_ref.shape[2]
    oc = o_ref.shape[3]
    bias = b_ref[...]
    for r in range(th):
        acc = jnp.zeros((ow, oc), jnp.float32)
        for kh in range(3):
            for kw in range(3):
                a = x_ref[0, r0 + r + kh, pl.ds(kw, ow), :]
                acc += jnp.dot(a, w_ref[kh * 3 + kw, :, :],
                               preferred_element_type=jnp.float32)
        acc += bias + res_ref[0, r, :, :].astype(jnp.float32)
        o_ref[0, r, :, :] = jnp.maximum(acc, 0.0).astype(o_ref.dtype)


def _mm_kernel(a_ref, b_ref, bias_ref, o_ref, *, relu):
    """One M-tile of (A @ B) + bias (wrapper-side im2col / 1x1 convs).
    bf16 MXU operands, f32 accumulation + epilogue, optional fused ReLU."""
    acc = jnp.dot(a_ref[...], b_ref[...], preferred_element_type=jnp.float32)
    acc = acc + bias_ref[...]
    if relu:
        acc = jnp.maximum(acc, 0.0)
    o_ref[...] = acc.astype(o_ref.dtype)


def _maxpool_kernel(x0_ref, x1_ref, x2_ref, o_ref, *, th):
    """MaxPool2d(3, stride 2, pad 1) on a tile of `th` output rows.
    x{kw}_ref: (1, H+2, OW, C) column-subsampled (cols kw::2) -inf-padded input."""
    r0 = pl.program_id(1) * th
    for r in range(th):
        ih = 2 * (r0 + r)
        m = x0_ref[0, ih, :, :]
        for kh in range(3):
            m = jnp.maximum(m, x0_ref[0, ih + kh, :, :])
            m = jnp.maximum(m, x1_ref[0, ih + kh, :, :])
            m = jnp.maximum(m, x2_ref[0, ih + kh, :, :])
        o_ref[0, r, :, :] = m


def _head_kernel(a_ref, w_ref, b_ref, off_ref, o_ref):
    """Final 1x1 conv fused with the LineFinder postprocess: sigmoid on the confidence
    channel (3) and precomputed patch-center offsets streamed in as data (tile-safe)."""
    acc = jnp.dot(a_ref[...], w_ref[...], preferred_element_type=jnp.float32)
    acc = acc + b_ref[...]
    col = lax.broadcasted_iota(jnp.int32, acc.shape, 1)
    acc = jnp.where(col == 3, jax.nn.sigmoid(acc), acc)
    o_ref[...] = acc + off_ref[...]


# ---------------------------------------------------------------------------
# Tiling helpers
# ---------------------------------------------------------------------------

def _pick_row_tile(oh, max_th=8):
    """Largest row tile dividing `oh` that still leaves >= 2 grid steps."""
    for th in range(min(max_th, oh), 0, -1):
        if oh % th == 0 and oh // th >= 2:
            return th
    return oh


def _pick_tile_m(m):
    """<=128-row M tiles (safe for v5e's 4x128 MXU) with >= 2 grid steps when possible."""
    for t in (128, 64, 32, 16, 8):
        if m % t == 0 and m // t >= 2:
            return t
    return m


# ---------------------------------------------------------------------------
# Pallas wrappers
# ---------------------------------------------------------------------------

def conv3x3_s1(x, packed, *, relu, residual=None):
    """Stride-1 pad-1 3x3 conv, NHWC, folded-BN bias, in-kernel im2col.
    Grid = (batch, output-row tiles); the padded image is one resident VMEM block
    per batch element (index_map constant along the row-tile axis)."""
    w, b = packed                              # (9, C, OC) bf16, (1, OC) f32
    n, h, wdt, c = x.shape
    oc = w.shape[2]
    xp = jnp.pad(x, ((0, 0), (1, 1), (1, 1), (0, 0)))
    th = _pick_row_tile(h)
    in_specs = [
        pl.BlockSpec((1, h + 2, wdt + 2, c), lambda i, t: (i, 0, 0, 0)),
        pl.BlockSpec((9, c, oc), lambda i, t: (0, 0, 0)),
        pl.BlockSpec((1, oc), lambda i, t: (0, 0)),
    ]
    args = [xp, w, b]
    if residual is None:
        kernel = functools.partial(_conv3x3_kernel, th=th, relu=relu)
    else:
        kernel = functools.partial(_conv3x3_res_kernel, th=th)
        in_specs.append(pl.BlockSpec((1, th, wdt, oc), lambda i, t: (i, t, 0, 0)))
        args.append(residual)
    return pl.pallas_call(
        kernel,
        out_shape=jax.ShapeDtypeStruct((n, h, wdt, oc), jnp.bfloat16),
        grid=(n, h // th),
        in_specs=in_specs,
        out_specs=pl.BlockSpec((1, th, wdt, oc), lambda i, t: (i, t, 0, 0)),
        compiler_params=pltpu.CompilerParams(
            dimension_semantics=("parallel", "parallel")),
    )(*args)


def _mm(a, wp, bias, *, relu):
    """a:[M,K] bf16 @ wp:[K,OC] bf16 + bias[1,OC] f32, tiled over M only (full-K,
    full-OC blocks; K may be any size since the block equals the full dim)."""
    m, k = a.shape
    oc = wp.shape[1]
    tm = _pick_tile_m(m)
    return pl.pallas_call(
        functools.partial(_mm_kernel, relu=relu),
        out_shape=jax.ShapeDtypeStruct((m, oc), jnp.bfloat16),
        grid=(m // tm,),
        in_specs=[pl.BlockSpec((tm, k), lambda i: (i, 0)),
                  pl.BlockSpec((k, oc), lambda i: (0, 0)),
                  pl.BlockSpec((1, oc), lambda i: (0, 0))],
        out_specs=pl.BlockSpec((tm, oc), lambda i: (i, 0)),
        compiler_params=pltpu.CompilerParams(dimension_semantics=("parallel",)),
    )(a, wp, bias)


def conv_im2col(x, packed, *, ksize, stride, padding, relu):
    """7x7 stem and the two stride-2 3x3 convs: wrapper-side im2col (tiny inputs),
    Pallas matmul on the MXU. No K padding of the patch matrix."""
    wp, bias = packed                          # (K, OC) bf16, rows in patch-feature order
    n = x.shape[0]
    oc = wp.shape[1]
    patches = lax.conv_general_dilated_patches(
        x, (ksize, ksize), (stride, stride),
        [(padding, padding), (padding, padding)],
        dimension_numbers=("NHWC", "HWIO", "NHWC"))
    _, oh, ow, k = patches.shape
    a = patches.reshape(n * oh * ow, k)
    out = _mm(a, wp, bias, relu=relu)
    return out.reshape(n, oh, ow, oc)


def conv1x1(x, packed, *, stride, relu):
    wp, bias = packed                          # (C, OC) bf16, (1, OC) f32
    xs = x[:, ::stride, ::stride, :] if stride > 1 else x
    n, oh, ow, c = xs.shape
    out = _mm(xs.reshape(n * oh * ow, c), wp, bias, relu=relu)
    return out.reshape(n, oh, ow, wp.shape[1])


def maxpool3x3_s2p1(x):
    """MaxPool2d(3, stride 2, pad 1) on NHWC as one gridded 9-tap Pallas kernel."""
    n, h, w, c = x.shape
    oh = (h + 2 - 3) // 2 + 1
    ow = (w + 2 - 3) // 2 + 1
    xp = jnp.pad(x, ((0, 0), (1, 1), (1, 1), (0, 0)), constant_values=-jnp.inf)
    cols = [xp[:, :, kw:kw + 2 * ow:2, :] for kw in range(3)]   # (n, h+2, ow, c) each
    th = _pick_row_tile(oh)
    spec = pl.BlockSpec((1, h + 2, ow, c), lambda i, t: (i, 0, 0, 0))
    return pl.pallas_call(
        functools.partial(_maxpool_kernel, th=th),
        out_shape=jax.ShapeDtypeStruct((n, oh, ow, c), x.dtype),
        grid=(n, oh // th),
        in_specs=[spec, spec, spec],
        out_specs=pl.BlockSpec((1, th, ow, c), lambda i, t: (i, t, 0, 0)),
        compiler_params=pltpu.CompilerParams(
            dimension_semantics=("parallel", "parallel")),
    )(*cols)


def head(x, packed, *, patch=16.0):
    """Conv2d(256, 4, 1) + sigmoid(conf) + offsets + flatten(2,3).permute(0,2,1),
    fused into one gridded Pallas matmul + epilogue (lane-dense 128-wide output)."""
    wp, bias = packed                          # (256, 128) bf16, (1, 128) f32
    n, h, w, c = x.shape
    ocp = wp.shape[1]
    m = n * h * w
    a = x.reshape(m, c)
    # Static offset table: channel 0 <- row offset, channel 1 <- column offset
    # (matches the reference loop); streamed per M-tile so gridding stays correct.
    p = jnp.arange(h * w, dtype=jnp.int32)
    row_off = patch / 2.0 + (p // w).astype(jnp.float32) * patch
    col_off = patch / 2.0 + (p % w).astype(jnp.float32) * patch
    off = jnp.concatenate(
        [row_off[:, None], col_off[:, None],
         jnp.zeros((h * w, ocp - 2), jnp.float32)], axis=1)
    off = jnp.tile(off, (n, 1))
    tm = _pick_tile_m(m)
    out = pl.pallas_call(
        _head_kernel,
        out_shape=jax.ShapeDtypeStruct((m, ocp), jnp.float32),
        grid=(m // tm,),
        in_specs=[pl.BlockSpec((tm, c), lambda i: (i, 0)),
                  pl.BlockSpec((c, ocp), lambda i: (0, 0)),
                  pl.BlockSpec((1, ocp), lambda i: (0, 0)),
                  pl.BlockSpec((tm, ocp), lambda i: (i, 0))],
        out_specs=pl.BlockSpec((tm, ocp), lambda i: (i, 0)),
        compiler_params=pltpu.CompilerParams(dimension_semantics=("parallel",)),
    )(a, wp, bias, off)
    return out[:, :4].reshape(n, h * w, 4)


# ---------------------------------------------------------------------------
# Parameter init: deterministic random resnet34 conv1/layer1-3 shapes, BN folded,
# weights pre-packed in bf16 at init time (outside jit).
# ---------------------------------------------------------------------------

_PERM_CACHE = {}


def _patch_feature_perm(cin, k):
    """Discover conv_general_dilated_patches' output-feature ordering once, eagerly:
    perm[j] = flattened (kh, kw, c) index of output feature j."""
    key = (cin, k)
    if key not in _PERM_CACHE:
        probe = jnp.arange(k * k * cin, dtype=jnp.float32).reshape(1, k, k, cin)
        pat = lax.conv_general_dilated_patches(
            probe, (k, k), (1, 1), [(0, 0), (0, 0)],
            dimension_numbers=("NHWC", "HWIO", "NHWC"))
        _PERM_CACHE[key] = np.asarray(pat[0, 0, 0]).round().astype(np.int64)
    return _PERM_CACHE[key]


def _fold_bn(key, cin, cout, k):
    ks = jax.random.split(key, 5)
    fan_in = cin * k * k
    w = jax.random.normal(ks[0], (cout, cin, k, k), jnp.float32) / math.sqrt(fan_in)
    gamma = 1.0 + 0.1 * jax.random.normal(ks[1], (cout,), jnp.float32)
    beta = 0.1 * jax.random.normal(ks[2], (cout,), jnp.float32)
    mean = 0.1 * jax.random.normal(ks[3], (cout,), jnp.float32)
    var = 1.0 + 0.1 * jnp.abs(jax.random.normal(ks[4], (cout,), jnp.float32))
    scale = gamma / jnp.sqrt(var + 1e-5)
    return w * scale[:, None, None, None], beta - mean * scale


def _pack_direct3(w, b):
    """(OC, C, 3, 3) -> (9, C, OC) bf16 taps ordered (kh, kw), f32 (1, OC) bias."""
    oc, c = w.shape[0], w.shape[1]
    wt = jnp.transpose(w, (2, 3, 1, 0)).reshape(9, c, oc).astype(jnp.bfloat16)
    return wt, b.reshape(1, oc).astype(jnp.float32)


def _pack_im2col(w, b, k):
    """(OC, C, k, k) -> bf16 [K, OC] matmul operand whose rows match the patch
    feature order. No K padding (full-K blocks are legal)."""
    oc, c = w.shape[0], w.shape[1]
    w_khwc = jnp.transpose(w, (2, 3, 1, 0)).reshape(k * k * c, oc)
    w_khwc = w_khwc[_patch_feature_perm(c, k)]
    return w_khwc.astype(jnp.bfloat16), b.reshape(1, oc).astype(jnp.float32)


def _pack_1x1(w, b):
    oc, c = w.shape[0], w.shape[1]
    return (w.reshape(oc, c).T.astype(jnp.bfloat16),
            b.reshape(1, oc).astype(jnp.float32))


def _conv_bn(key, cin, cout, k, *, packing):
    w, b = _fold_bn(key, cin, cout, k)
    if packing == "direct3":
        return _pack_direct3(w, b)
    if packing == "im2col":
        return _pack_im2col(w, b, k)
    return _pack_1x1(w, b)


def init_params(key):
    keys = iter(jax.random.split(key, 64))
    params = {"conv1": _conv_bn(next(keys), 3, 64, 7, packing="im2col")}

    def make_layer(cin, cout, nblocks, stride):
        blocks = []
        for i in range(nblocks):
            s = stride if i == 0 else 1
            blk = {
                "conv1": _conv_bn(next(keys), cin if i == 0 else cout, cout, 3,
                                  packing="im2col" if s == 2 else "direct3"),
                "conv2": _conv_bn(next(keys), cout, cout, 3, packing="direct3"),
            }
            if i == 0 and (stride != 1 or cin != cout):
                blk["down"] = _conv_bn(next(keys), cin, cout, 1, packing="1x1")
            blocks.append(blk)
        return blocks

    params["layer1"] = make_layer(64, 64, 3, 1)
    params["layer2"] = make_layer(64, 128, 4, 2)
    params["layer3"] = make_layer(128, 256, 6, 2)

    k1, k2 = jax.random.split(next(keys))
    hw = 0.05 * jax.random.normal(k1, (4, 256), jnp.float32)
    hb = 0.05 * jax.random.normal(k2, (4,), jnp.float32)
    ocp = 128   # lane-dense head output; wrapper slices back to 4 channels
    head_w = jnp.pad(hw.T, ((0, 0), (0, ocp - 4))).astype(jnp.bfloat16)
    head_b = jnp.pad(hb, (0, ocp - 4)).reshape(1, ocp).astype(jnp.float32)
    params["head"] = (head_w, head_b)
    return params


# ---------------------------------------------------------------------------
# Forward pass (mirrors LineFinder.forward)
# ---------------------------------------------------------------------------

def _basic_block(h, blk, stride):
    if stride == 1:
        out = conv3x3_s1(h, blk["conv1"], relu=True)
    else:
        out = conv_im2col(h, blk["conv1"], ksize=3, stride=stride, padding=1,
                          relu=True)
    identity = h
    if "down" in blk:
        identity = conv1x1(h, blk["down"], stride=stride, relu=False)
    # conv2 + residual add + relu fused into the direct-conv epilogue
    return conv3x3_s1(out, blk["conv2"], relu=False, residual=identity)


def line_finder_forward(params, x_nchw):
    # Single layout change: NCHW (PyTorch) -> NHWC, bf16 activations end-to-end.
    x = jnp.transpose(x_nchw, (0, 2, 3, 1)).astype(jnp.bfloat16)
    h = conv_im2col(x, params["conv1"], ksize=7, stride=2, padding=3, relu=True)
    h = maxpool3x3_s2p1(h)
    for blk in params["layer1"]:
        h = _basic_block(h, blk, 1)
    for i, blk in enumerate(params["layer2"]):
        h = _basic_block(h, blk, 2 if i == 0 else 1)
    for i, blk in enumerate(params["layer3"]):
        h = _basic_block(h, blk, 2 if i == 0 else 1)
    # 1x1 conv to 4 channels + sigmoid(conf) + offsets + flatten + permute
    return head(h, params["head"], patch=16.0)


if __name__ == "__main__":
    key = jax.random.PRNGKey(0)
    kp, kx, kc = jax.random.split(key, 3)
    params = init_params(kp)

    # Numeric self-check of the direct (in-kernel im2col) conv against XLA's conv.
    blk = params["layer1"][0]["conv1"]          # (9, 64, 64) bf16, (1, 64) f32
    xt = jax.random.normal(kc, (2, 16, 16, 64), jnp.float32).astype(jnp.bfloat16)
    got = conv3x3_s1(xt, blk, relu=True).astype(jnp.float32)
    w_hwio = blk[0].astype(jnp.float32).reshape(3, 3, 64, 64)
    ref = lax.conv_general_dilated(
        xt.astype(jnp.float32), w_hwio, (1, 1), [(1, 1), (1, 1)],
        dimension_numbers=("NHWC", "HWIO", "NHWC")) + blk[1]
    ref = jnp.maximum(ref, 0.0)
    assert float(jnp.max(jnp.abs(got - ref))) < 0.1, "direct conv mismatch"

    # Small input: batch=2, RGB, 64x64 -> backbone downsamples x16 -> 4x4 grid.
    x = jax.random.normal(kx, (2, 3, 64, 64), jnp.float32)
    fwd = jax.jit(line_finder_forward)
    out = fwd(params, x)
    jax.block_until_ready(out)

    assert out.shape == (2, 16, 4), out.shape
    assert out.dtype == jnp.float32
    assert bool(jnp.all(jnp.isfinite(out)))
    conf = out[..., 3]  # sigmoid output (offset is 0 for channel 3)
    assert bool(jnp.all((conf >= 0.0) & (conf <= 1.0)))
    print("KERNEL_OK")
</pallas_src>

<mosaic_0001>
module attributes {stable_mosaic.version = 11 : i64} {
  func.func @_conv3x3_kernel(%arg0: i32, %arg1: i32, %arg2: memref<1x18x18x64xbf16, #tpu.memory_space<vmem>>, %arg3: memref<9x64x64xbf16, #tpu.memory_space<vmem>>, %arg4: memref<1x64xf32, #tpu.memory_space<vmem>>, %arg5: memref<1x8x16x64xbf16, #tpu.memory_space<vmem>>) attributes {dimension_semantics = [#tpu.dimension_semantics<parallel>, #tpu.dimension_semantics<parallel>], iteration_bounds = array<i64: 2, 2>, scalar_prefetch = 0 : i64, scratch_operands = 0 : i64, tpu.core_type = #tpu.core_type<tc>, window_params = [{transform_indices = @transform_0, window_bounds = array<i64: 1, 18, 18, 64>}, {pipeline_mode = #tpu.pipeline_mode<synchronous>, transform_indices = @transform_1, window_bounds = array<i64: 9, 64, 64>}, {pipeline_mode = #tpu.pipeline_mode<synchronous>, transform_indices = @transform_2, window_bounds = array<i64: 1, 64>}, {transform_indices = @transform_3, window_bounds = array<i64: 1, 8, 16, 64>}]} {
    %c8_i32 = arith.constant 8 : i32
    %0 = arith.muli %arg1, %c8_i32 : i32
    %c0 = arith.constant 0 : index
    %c0_0 = arith.constant 0 : index
    %1 = vector.load %arg4[%c0, %c0_0] : memref<1x64xf32, #tpu.memory_space<vmem>>, vector<1x64xf32>
    %cst = arith.constant 0.000000e+00 : f32
    %2 = vector.broadcast %cst : f32 to vector<16x64xf32>
    %c0_i32 = arith.constant 0 : i32
    %3 = arith.addi %0, %c0_i32 : i32
    %c0_i32_1 = arith.constant 0 : i32
    %4 = arith.addi %3, %c0_i32_1 : i32
    %c0_2 = arith.constant 0 : index
    %5 = arith.index_cast %4 : i32 to index
    %c0_3 = arith.constant 0 : index
    %c0_4 = arith.constant 0 : index
    %6 = vector.load %arg2[%c0_2, %5, %c0_3, %c0_4] : memref<1x18x18x64xbf16, #tpu.memory_space<vmem>>, vector<1x1x16x64xbf16>
    %7 = vector.shape_cast %6 : vector<1x1x16x64xbf16> to vector<16x64xbf16>
    %c0_5 = arith.constant 0 : index
    %c0_6 = arith.constant 0 : index
    %c0_7 = arith.constant 0 : index
    %8 = vector.load %arg3[%c0_5, %c0_6, %c0_7] : memref<9x64x64xbf16, #tpu.memory_space<vmem>>, vector<1x64x64xbf16>
    %9 = vector.shape_cast %8 : vector<1x64x64xbf16> to vector<64x64xbf16>
    %cst_8 = arith.constant dense<0.000000e+00> : vector<16x64xf32>
    %10 = tpu.matmul %7, %9, %cst_8 {dimension_numbers = #tpu.dot_dimension_numbers<[1], [0], [0], [1], [0, 0, 1, 1], [], []>} : vector<16x64xbf16>, vector<64x64xbf16>, vector<16x64xf32> -> vector<16x64xf32>
    %11 = arith.addf %2, %10 : vector<16x64xf32>
    %c0_i32_9 = arith.constant 0 : i32
    %12 = arith.addi %0, %c0_i32_9 : i32
    %c0_i32_10 = arith.constant 0 : i32
    %13 = arith.addi %12, %c0_i32_10 : i32
    %c0_11 = arith.constant 0 : index
    %14 = arith.index_cast %13 : i32 to index
    %c1 = arith.constant 1 : index
    %c0_12 = arith.constant 0 : index
    %15 = vector.load %arg2[%c0_11, %14, %c1, %c0_12] : memref<1x18x18x64xbf16, #tpu.memory_space<vmem>>, vector<1x1x16x64xbf16>
    %16 = vector.shape_cast %15 : vector<1x1x16x64xbf16> to vector<16x64xbf16>
    %c1_13 = arith.constant 1 : index
    %c0_14 = arith.constant 0 : index
    %c0_15 = arith.constant 0 : index
    %17 = vector.load %arg3[%c1_13, %c0_14, %c0_15] : memref<9x64x64xbf16, #tpu.memory_space<vmem>>, vector<1x64x64xbf16>
    %18 = vector.shape_cast %17 : vector<1x64x64xbf16> to vector<64x64xbf16>
    %cst_16 = arith.constant dense<0.000000e+00> : vector<16x64xf32>
    %19 = tpu.matmul %16, %18, %cst_16 {dimension_numbers = #tpu.dot_dimension_numbers<[1], [0], [0], [1], [0, 0, 1, 1], [], []>} : vector<16x64xbf16>, vector<64x64xbf16>, vector<16x64xf32> -> vector<16x64xf32>
    %20 = arith.addf %11, %19 : vector<16x64xf32>
    %c0_i32_17 = arith.constant 0 : i32
    %21 = arith.addi %0, %c0_i32_17 : i32
    %c0_i32_18 = arith.constant 0 : i32
    %22 = arith.addi %21, %c0_i32_18 : i32
    %c0_19 = arith.constant 0 : index
    %23 = arith.index_cast %22 : i32 to index
    %c2 = arith.constant 2 : index
    %c0_20 = arith.constant 0 : index
    %24 = vector.load %arg2[%c0_19, %23, %c2, %c0_20] : memref<1x18x18x64xbf16, #tpu.memory_space<vmem>>, vector<1x1x16x64xbf16>
    %25 = vector.shape_cast %24 : vector<1x1x16x64xbf16> to vector<16x64xbf16>
    %c2_21 = arith.constant 2 : index
    %c0_22 = arith.constant 0 : index
    %c0_23 = arith.constant 0 : index
    %26 = vector.load %arg3[%c2_21, %c0_22, %c0_23] : memref<9x64x64xbf16, #tpu.memory_space<vmem>>, vector<1x64x64xbf16>
    %27 = vector.shape_cast %26 : vector<1x64x64xbf16> to vector<64x64xbf16>
    %cst_24 = arith.constant dense<0.000000e+00> : vector<16x64xf32>
    %28 = tpu.matmul %25, %27, %cst_24 {dimension_numbers = #tpu.dot_dimension_numbers<[1], [0], [0], [1], [0, 0, 1, 1], [], []>} : vector<16x64xbf16>, vector<64x64xbf16>, vector<16x64xf32> -> vector<16x64xf32>
    %29 = arith.addf %20, %28 : vector<16x64xf32>
    %c0_i32_25 = arith.constant 0 : i32
    %30 = arith.addi %0, %c0_i32_25 : i32
    %c1_i32 = arith.constant 1 : i32
    %31 = arith.addi %30, %c1_i32 : i32
    %c0_26 = arith.constant 0 : index
    %32 = arith.index_cast %31 : i32 to index
    %c0_27 = arith.constant 0 : index
    %c0_28 = arith.constant 0 : index
    %33 = vector.load %arg2[%c0_26, %32, %c0_27, %c0_28] : memref<1x18x18x64xbf16, #tpu.memory_space<vmem>>, vector<1x1x16x64xbf16>
    %34 = vector.shape_cast %33 : vector<1x1x16x64xbf16> to vector<16x64xbf16>
    %c3 = arith.constant 3 : index
    %c0_29 = arith.constant 0 : index
    %c0_30 = arith.constant 0 : index
    %35 = vector.load %arg3[%c3, %c0_29, %c0_30] : memref<9x64x64xbf16, #tpu.memory_space<vmem>>, vector<1x64x64xbf16>
    %36 = vector.shape_cast %35 : vector<1x64x64xbf16> to vector<64x64xbf16>
    %cst_31 = arith.constant dense<0.000000e+00> : vector<16x64xf32>
    %37 = tpu.matmul %34, %36, %cst_31 {dimension_numbers = #tpu.dot_dimension_numbers<[1], [0], [0], [1], [0, 0, 1, 1], [], []>} : vector<16x64xbf16>, vector<64x64xbf16>, vector<16x64xf32> -> vector<16x64xf32>
    %38 = arith.addf %29, %37 : vector<16x64xf32>
    %c0_i32_32 = arith.constant 0 : i32
    %39 = arith.addi %0, %c0_i32_32 : i32
    %c1_i32_33 = arith.constant 1 : i32
    %40 = arith.addi %39, %c1_i32_33 : i32
    %c0_34 = arith.constant 0 : index
    %41 = arith.index_cast %40 : i32 to index
    %c1_35 = arith.constant 1 : index
    %c0_36 = arith.constant 0 : index
    %42 = vector.load %arg2[%c0_34, %41, %c1_35, %c0_36] : memref<1x18x18x64xbf16, #tpu.memory_space<vmem>>, vector<1x1x16x64xbf16>
    %43 = vector.shape_cast %42 : vector<1x1x16x64xbf16> to vector<16x64xbf16>
    %c4 = arith.constant 4 : index
    %c0_37 = arith.constant 0 : index
    %c0_38 = arith.constant 0 : index
    %44 = vector.load %arg3[%c4, %c0_37, %c0_38] : memref<9x64x64xbf16, #tpu.memory_space<vmem>>, vector<1x64x64xbf16>
    %45 = vector.shape_cast %44 : vector<1x64x64xbf16> to vector<64x64xbf16>
    %cst_39 = arith.constant dense<0.000000e+00> : vector<16x64xf32>
    %46 = tpu.matmul %43, %45, %cst_39 {dimension_numbers = #tpu.dot_dimension_numbers<[1], [0], [0], [1], [0, 0, 1, 1], [], []>} : vector<16x64xbf16>, vector<64x64xbf16>, vector<16x64xf32> -> vector<16x64xf32>
    %47 = arith.addf %38, %46 : vector<16x64xf32>
    %c0_i32_40 = arith.constant 0 : i32
    %48 = arith.addi %0, %c0_i32_40 : i32
    %c1_i32_41 = arith.constant 1 : i32
    %49 = arith.addi %48, %c1_i32_41 : i32
    %c0_42 = arith.constant 0 : index
    %50 = arith.index_cast %49 : i32 to index
    %c2_43 = arith.constant 2 : index
    %c0_44 = arith.constant 0 : index
    %51 = vector.load %arg2[%c0_42, %50, %c2_43, %c0_44] : memref<1x18x18x64xbf16, #tpu.memory_space<vmem>>, vector<1x1x16x64xbf16>
    %52 = vector.shape_cast %51 : vector<1x1x16x64xbf16> to vector<16x64xbf16>
    %c5 = arith.constant 5 : index
    %c0_45 = arith.constant 0 : index
    %c0_46 = arith.constant 0 : index
    %53 = vector.load %arg3[%c5, %c0_45, %c0_46] : memref<9x64x64xbf16, #tpu.memory_space<vmem>>, vector<1x64x64xbf16>
    %54 = vector.shape_cast %53 : vector<1x64x64xbf16> to vector<64x64xbf16>
    %cst_47 = arith.constant dense<0.000000e+00> : vector<16x64xf32>
    %55 = tpu.matmul %52, %54, %cst_47 {dimension_numbers = #tpu.dot_dimension_numbers<[1], [0], [0], [1], [0, 0, 1, 1], [], []>} : vector<16x64xbf16>, vector<64x64xbf16>, vector<16x64xf32> -> vector<16x64xf32>
    %56 = arith.addf %47, %55 : vector<16x64xf32>
    %c0_i32_48 = arith.constant 0 : i32
    %57 = arith.addi %0, %c0_i32_48 : i32
    %c2_i32 = arith.constant 2 : i32
    %58 = arith.addi %57, %c2_i32 : i32
    %c0_49 = arith.constant 0 : index
    %59 = arith.index_cast %58 : i32 to index
    %c0_50 = arith.constant 0 : index
    %c0_51 = arith.constant 0 : index
    %60 = vector.load %arg2[%c0_49, %59, %c0_50, %c0_51] : memref<1x18x18x64xbf16, #tpu.memory_space<vmem>>, vector<1x1x16x64xbf16>
    %61 = vector.shape_cast %60 : vector<1x1x16x64xbf16> to vector<16x64xbf16>
    %c6 = arith.constant 6 : index
    %c0_52 = arith.constant 0 : index
    %c0_53 = arith.constant 0 : index
    %62 = vector.load %arg3[%c6, %c0_52, %c0_53] : memref<9x64x64xbf16, #tpu.memory_space<vmem>>, vector<1x64x64xbf16>
    %63 = vector.shape_cast %62 : vector<1x64x64xbf16> to vector<64x64xbf16>
    %cst_54 = arith.constant dense<0.000000e+00> : vector<16x64xf32>
    %64 = tpu.matmul %61, %63, %cst_54 {dimension_numbers = #tpu.dot_dimension_numbers<[1], [0], [0], [1], [0, 0, 1, 1], [], []>} : vector<16x64xbf16>, vector<64x64xbf16>, vector<16x64xf32> -> vector<16x64xf32>
    %65 = arith.addf %56, %64 : vector<16x64xf32>
    %c0_i32_55 = arith.constant 0 : i32
    %66 = arith.addi %0, %c0_i32_55 : i32
    %c2_i32_56 = arith.constant 2 : i32
    %67 = arith.addi %66, %c2_i32_56 : i32
    %c0_57 = arith.constant 0 : index
    %68 = arith.index_cast %67 : i32 to index
    %c1_58 = arith.constant 1 : index
    %c0_59 = arith.constant 0 : index
    %69 = vector.load %arg2[%c0_57, %68, %c1_58, %c0_59] : memref<1x18x18x64xbf16, #tpu.memory_space<vmem>>, vector<1x1x16x64xbf16>
    %70 = vector.shape_cast %69 : vector<1x1x16x64xbf16> to vector<16x64xbf16>
    %c7 = arith.constant 7 : index
    %c0_60 = arith.constant 0 : index
    %c0_61 = arith.constant 0 : index
    %71 = vector.load %arg3[%c7, %c0_60, %c0_61] : memref<9x64x64xbf16, #tpu.memory_space<vmem>>, vector<1x64x64xbf16>
    %72 = vector.shape_cast %71 : vector<1x64x64xbf16> to vector<64x64xbf16>
    %cst_62 = arith.constant dense<0.000000e+00> : vector<16x64xf32>
    %73 = tpu.matmul %70, %72, %cst_62 {dimension_numbers = #tpu.dot_dimension_numbers<[1], [0], [0], [1], [0, 0, 1, 1], [], []>} : vector<16x64xbf16>, vector<64x64xbf16>, vector<16x64xf32> -> vector<16x64xf32>
    %74 = arith.addf %65, %73 : vector<16x64xf32>
    %c0_i32_63 = arith.constant 0 : i32
    %75 = arith.addi %0, %c0_i32_63 : i32
    %c2_i32_64 = arith.constant 2 : i32
    %76 = arith.addi %75, %c2_i32_64 : i32
    %c0_65 = arith.constant 0 : index
    %77 = arith.index_cast %76 : i32 to index
    %c2_66 = arith.constant 2 : index
    %c0_67 = arith.constant 0 : index
    %78 = vector.load %arg2[%c0_65, %77, %c2_66, %c0_67] : memref<1x18x18x64xbf16, #tpu.memory_space<vmem>>, vector<1x1x16x64xbf16>
    %79 = vector.shape_cast %78 : vector<1x1x16x64xbf16> to vector<16x64xbf16>
    %c8 = arith.constant 8 : index
    %c0_68 = arith.constant 0 : index
    %c0_69 = arith.constant 0 : index
    %80 = vector.load %arg3[%c8, %c0_68, %c0_69] : memref<9x64x64xbf16, #tpu.memory_space<vmem>>, vector<1x64x64xbf16>
    %81 = vector.shape_cast %80 : vector<1x64x64xbf16> to vector<64x64xbf16>
    %cst_70 = arith.constant dense<0.000000e+00> : vector<16x64xf32>
    %82 = tpu.matmul %79, %81, %cst_70 {dimension_numbers = #tpu.dot_dimension_numbers<[1], [0], [0], [1], [0, 0, 1, 1], [], []>} : vector<16x64xbf16>, vector<64x64xbf16>, vector<16x64xf32> -> vector<16x64xf32>
    %83 = arith.addf %74, %82 : vector<16x64xf32>
    %84 = vector.broadcast %1 : vector<1x64xf32> to vector<16x64xf32>
    %85 = arith.addf %83, %84 : vector<16x64xf32>
    %cst_71 = arith.constant 0.000000e+00 : f32
    %86 = vector.broadcast %cst_71 : f32 to vector<16x64xf32>
    %87 = arith.maximumf %85, %86 : vector<16x64xf32>
    %88 = arith.truncf %87 : vector<16x64xf32> to vector<16x64xbf16>
    %c0_72 = arith.constant 0 : index
    %c0_73 = arith.constant 0 : index
    %c0_74 = arith.constant 0 : index
    %c0_75 = arith.constant 0 : index
    %89 = vector.load %arg5[%c0_72, %c0_73, %c0_74, %c0_75] : memref<1x8x16x64xbf16, #tpu.memory_space<vmem>>, vector<1x1x16x64xbf16>
    %90 = vector.shape_cast %89 : vector<1x1x16x64xbf16> to vector<16x64xbf16>
    %91 = vector.shape_cast %88 : vector<16x64xbf16> to vector<1x1x16x64xbf16>
    tpu.vector_store %arg5[%c0_72, %c0_73, %c0_74, %c0_75], %91 {strides = array<i32>} : memref<1x8x16x64xbf16, #tpu.memory_space<vmem>>, vector<1x1x16x64xbf16>,
    %cst_76 = arith.constant 0.000000e+00 : f32
    %92 = vector.broadcast %cst_76 : f32 to vector<16x64xf32>
    %c1_i32_77 = arith.constant 1 : i32
    %93 = arith.addi %0, %c1_i32_77 : i32
    %c0_i32_78 = arith.constant 0 : i32
    %94 = arith.addi %93, %c0_i32_78 : i32
    %c0_79 = arith.constant 0 : index
    %95 = arith.index_cast %94 : i32 to index
    %c0_80 = arith.constant 0 : index
    %c0_81 = arith.constant 0 : index
    %96 = vector.load %arg2[%c0_79, %95, %c0_80, %c0_81] : memref<1x18x18x64xbf16, #tpu.memory_space<vmem>>, vector<1x1x16x64xbf16>
    %97 = vector.shape_cast %96 : vector<1x1x16x64xbf16> to vector<16x64xbf16>
    %c0_82 = arith.constant 0 : index
    %c0_83 = arith.constant 0 : index
    %c0_84 = arith.constant 0 : index
    %98 = vector.load %arg3[%c0_82, %c0_83, %c0_84] : memref<9x64x64xbf16, #tpu.memory_space<vmem>>, vector<1x64x64xbf16>
    %99 = vector.shape_cast %98 : vector<1x64x64xbf16> to vector<64x64xbf16>
    %cst_85 = arith.constant dense<0.000000e+00> : vector<16x64xf32>
    %100 = tpu.matmul %97, %99, %cst_85 {dimension_numbers = #tpu.dot_dimension_numbers<[1], [0], [0], [1], [0, 0, 1, 1], [], []>} : vector<16x64xbf16>, vector<64x64xbf16>, vector<16x64xf32> -> vector<16x64xf32>
    %101 = arith.addf %92, %100 : vector<16x64xf32>
    %c1_i32_86 = arith.constant 1 : i32
    %102 = arith.addi %0, %c1_i32_86 : i32
    %c0_i32_87 = arith.constant 0 : i32
    %103 = arith.addi %102, %c0_i32_87 : i32
    %c0_88 = arith.constant 0 : index
    %104 = arith.index_cast %103 : i32 to index
    %c1_89 = arith.constant 1 : index
    %c0_90 = arith.constant 0 : index
    %105 = vector.load %arg2[%c0_88, %104, %c1_89, %c0_90] : memref<1x18x18x64xbf16, #tpu.memory_space<vmem>>, vector<1x1x16x64xbf16>
    %106 = vector.shape_cast %105 : vector<1x1x16x64xbf16> to vector<16x64xbf16>
    %c1_91 = arith.constant 1 : index
    %c0_92 = arith.constant 0 : index
    %c0_93 = arith.constant 0 : index
    %107 = vector.load %arg3[%c1_91, %c0_92, %c0_93] : memref<9x64x64xbf16, #tpu.memory_space<vmem>>, vector<1x64x64xbf16>
    %108 = vector.shape_cast %107 : vector<1x64x64xbf16> to vector<64x64xbf16>
    %cst_94 = arith.constant dense<0.000000e+00> : vector<16x64xf32>
    %109 = tpu.matmul %106, %108, %cst_94 {dimension_numbers = #tpu.dot_dimension_numbers<[1], [0], [0], [1], [0, 0, 1, 1], [], []>} : vector<16x64xbf16>, vector<64x64xbf16>, vector<16x64xf32> -> vector<16x64xf32>
    %110 = arith.addf %101, %109 : vector<16x64xf32>
    %c1_i32_95 = arith.constant 1 : i32
    %111 = arith.addi %0, %c1_i32_95 : i32
    %c0_i32_96 = arith.constant 0 : i32
    %112 = arith.addi %111, %c0_i32_96 : i32
    %c0_97 = arith.constant 0 : index
    %113 = arith.index_cast %112 : i32 to index
    %c2_98 = arith.constant 2 : index
    %c0_99 = arith.constant 0 : index
    %114 = vector.load %arg2[%c0_97, %113, %c2_98, %c0_99] : memref<1x18x18x64xbf16, #tpu.memory_space<vmem>>, vector<1x1x16x64xbf16>
    %115 = vector.shape_cast %114 : vector<1x1x16x64xbf16> to vector<16x64xbf16>
    %c2_100 = arith.constant 2 : index
    %c0_101 = arith.constant 0 : index
    %c0_102 = arith.constant 0 : index
    %116 = vector.load %arg3[%c2_100, %c0_101, %c0_102] : memref<9x64x64xbf16, #tpu.memory_space<vmem>>, vector<1x64x64xbf16>
    %117 = vector.shape_cast %116 : vector<1x64x64xbf16> to vector<64x64xbf16>
    %cst_103 = arith.constant dense<0.000000e+00> : vector<16x64xf32>
    %118 = tpu.matmul %115, %117, %cst_103 {dimension_numbers = #tpu.dot_dimension_numbers<[1], [0], [0], [1], [0, 0, 1, 1], [], []>} : vector<16x64xbf16>, vector<64x64xbf16>, vector<16x64xf32> -> vector<16x64xf32>
    %119 = arith.addf %110, %118 : vector<16x64xf32>
    %c1_i32_104 = arith.constant 1 : i32
    %120 = arith.addi %0, %c1_i32_104 : i32
    %c1_i32_105 = arith.constant 1 : i32
    %121 = arith.addi %120, %c1_i32_105 : i32
    %c0_106 = arith.constant 0 : index
    %122 = arith.index_cast %121 : i32 to index
    %c0_107 = arith.constant 0 : index
    %c0_108 = arith.constant 0 : index
    %123 = vector.load %arg2[%c0_106, %122, %c0_107, %c0_108] : memref<1x18x18x64xbf16, #tpu.memory_space<vmem>>, vector<1x1x16x64xbf16>
    %124 = vector.shape_cast %123 : vector<1x1x16x64xbf16> to vector<16x64xbf16>
    %c3_109 = arith.constant 3 : index
    %c0_110 = arith.constant 0 : index
    %c0_111 = arith.constant 0 : index
    %125 = vector.load %arg3[%c3_109, %c0_110, %c0_111] : memref<9x64x64xbf16, #tpu.memory_space<vmem>>, vector<1x64x64xbf16>
    %126 = vector.shape_cast %125 : vector<1x64x64xbf16> to vector<64x64xbf16>
    %cst_112 = arith.constant dense<0.000000e+00> : vector<16x64xf32>
    %127 = tpu.matmul %124, %126, %cst_112 {dimension_numbers = #tpu.dot_dimension_numbers<[1], [0], [0], [1], [0, 0, 1, 1], [], []>} : vector<16x64xbf16>, vector<64x64xbf16>, vector<16x64xf32> -> vector<16x64xf32>
    %128 = arith.addf %119, %127 : vector<16x64xf32>
    %c1_i32_113 = arith.constant 1 : i32
    %129 = arith.addi %0, %c1_i32_113 : i32
    %c1_i32_114 = arith.constant 1 : i32
    %130 = arith.addi %129, %c1_i32_114 : i32
    %c0_115 = arith.constant 0 : index
    %131 = arith.index_cast %130 : i32 to index
    %c1_116 = arith.constant 1 : index
    %c0_117 = arith.constant 0 : index
    %132 = vector.load %arg2[%c0_115, %131, %c1_116, %c0_117] : memref<1x18x18x64xbf16, #tpu.memory_space<vmem>>, vector<1x1x16x64xbf16>
    %133 = vector.shape_cast %132 : vector<1x1x16x64xbf16> to vector<16x64xbf16>
    %c4_118 = arith.constant 4 : index
    %c0_119 = arith.constant 0 : index
    %c0_120 = arith.constant 0 : index
    %134 = vector.load %arg3[%c4_118, %c0_119, %c0_120] : memref<9x64x64xbf16, #tpu.memory_space<vmem>>, vector<1x64x64xbf16>
    %135 = vector.shape_cast %134 : vector<1x64x64xbf16> to vector<64x64xbf16>
    %cst_121 = arith.constant dense<0.000000e+00> : vector<16x64xf32>
    %136 = tpu.matmul %133, %135, %cst_121 {dimension_numbers = #tpu.dot_dimension_numbers<[1], [0], [0], [1], [0, 0, 1, 1], [], []>} : vector<16x64xbf16>, vector<64x64xbf16>, vector<16x64xf32> -> vector<16x64xf32>
    %137 = arith.addf %128, %136 : vector<16x64xf32>
    %c1_i32_122 = arith.constant 1 : i32
    %138 = arith.addi %0, %c1_i32_122 : i32
    %c1_i32_123 = arith.constant 1 : i32
    %139 = arith.addi %138, %c1_i32_123 : i32
    %c0_124 = arith.constant 0 : index
    %140 = arith.index_cast %139 : i32 to index
    %c2_125 = arith.constant 2 : index
    %c0_126 = arith.constant 0 : index
    %141 = vector.load %arg2[%c0_124, %140, %c2_125, %c0_126] : memref<1x18x18x64xbf16, #tpu.memory_space<vmem>>, vector<1x1x16x64xbf16>
    %142 = vector.shape_cast %141 : vector<1x1x16x64xbf16> to vector<16x64xbf16>
    %c5_127 = arith.constant 5 : index
    %c0_128 = arith.constant 0 : index
    %c0_129 = arith.constant 0 : index
    %143 = vector.load %arg3[%c5_127, %c0_128, %c0_129] : memref<9x64x64xbf16, #tpu.memory_space<vmem>>, vector<1x64x64xbf16>
    %144 = vector.shape_cast %143 : vector<1x64x64xbf16> to vector<64x64xbf16>
    %cst_130 = arith.constant dense<0.000000e+00> : vector<16x64xf32>
    %145 = tpu.matmul %142, %144, %cst_130 {dimension_numbers = #tpu.dot_dimension_numbers<[1], [0], [0], [1], [0, 0, 1, 1], [], []>} : vector<16x64xbf16>, vector<64x64xbf16>, vector<16x64xf32> -> vector<16x64xf32>
    %146 = arith.addf %137, %145 : vector<16x64xf32>
    %c1_i32_131 = arith.constant 1 : i32
    %147 = arith.addi %0, %c1_i32_131 : i32
    %c2_i32_132 = arith.constant 2 : i32
    %148 = arith.addi %147, %c2_i32_132 : i32
    %c0_133 = arith.constant 0 : index
    %149 = arith.index_cast %148 : i32 to index
    %c0_134 = arith.constant 0 : index
    %c0_135 = arith.constant 0 : index
    %150 = vector.load %arg2[%c0_133, %149, %c0_134, %c0_135] : memref<1x18x18x64xbf16, #tpu.memory_space<vmem>>, vector<1x1x16x64xbf16>
    %151 = vector.shape_cast %150 : vector<1x1x16x64xbf16> to vector<16x64xbf16>
    %c6_136 = arith.constant 6 : index
    %c0_137 = arith.constant 0 : index
    %c0_138 = arith.constant 0 : index
    %152 = vector.load %arg3[%c6_136, %c0_137, %c0_138] : memref<9x64x64xbf16, #tpu.memory_space<vmem>>, vector<1x64x64xbf16>
    %153 = vector.shape_cast %152 : vector<1x64x64xbf16> to vector<64x64xbf16>
    %cst_139 = arith.constant dense<0.000000e+00> : vector<16x64xf32>
    %154 = tpu.matmul %151, %153, %cst_139 {dimension_numbers = #tpu.dot_dimension_numbers<[1], [0], [0], [1], [0, 0, 1, 1], [], []>} : vector<16x64xbf16>, vector<64x64xbf16>, vector<16x64xf32> -> vector<16x64xf32>
    %155 = arith.addf %146, %154 : vector<16x64xf32>
    %c1_i32_140 = arith.constant 1 : i32
    %156 = arith.addi %0, %c1_i32_140 : i32
    %c2_i32_141 = arith.constant 2 : i32
    %157 = arith.addi %156, %c2_i32_141 : i32
    %c0_142 = arith.constant 0 : index
    %158 = arith.index_cast %157 : i32 to index
    %c1_143 = arith.constant 1 : index
    %c0_144 = arith.constant 0 : index
    %159 = vector.load %arg2[%c0_142, %158, %c1_143, %c0_144] : memref<1x18x18x64xbf16, #tpu.memory_space<vmem>>, vector<1x1x16x64xbf16>
    %160 = vector.shape_cast %159 : vector<1x1x16x64xbf16> to vector<16x64xbf16>
    %c7_145 = arith.constant 7 : index
    %c0_146 = arith.constant 0 : index
    %c0_147 = arith.constant 0 : index
    %161 = vector.load %arg3[%c7_145, %c0_146, %c0_147] : memref<9x64x64xbf16, #tpu.memory_space<vmem>>, vector<1x64x64xbf16>
    %162 = vector.shape_cast %161 : vector<1x64x64xbf16> to vector<64x64xbf16>
    %cst_148 = arith.constant dense<0.000000e+00> : vector<16x64xf32>
    %163 = tpu.matmul %160, %162, %cst_148 {dimension_numbers = #tpu.dot_dimension_numbers<[1], [0], [0], [1], [0, 0, 1, 1], [], []>} : vector<16x64xbf16>, vector<64x64xbf16>, vector<16x64xf32> -> vector<16x64xf32>
    %164 = arith.addf %155, %163 : vector<16x64xf32>
    %c1_i32_149 = arith.constant 1 : i32
    %165 = arith.addi %0, %c1_i32_149 : i32
    %c2_i32_150 = arith.constant 2 : i32
    %166 = arith.addi %165, %c2_i32_150 : i32
    %c0_151 = arith.constant 0 : index
    %167 = arith.index_cast %166 : i32 to index
    %c2_152 = arith.constant 2 : index
    %c0_153 = arith.constant 0 : index
    %168 = vector.load %arg2[%c0_151, %167, %c2_152, %c0_153] : memref<1x18x18x64xbf16, #tpu.memory_space<vmem>>, vector<1x1x16x64xbf16>
    %169 = vector.shape_cast %168 : vector<1x1x16x64xbf16> to vector<16x64xbf16>
    %c8_154 = arith.constant 8 : index
    %c0_155 = arith.constant 0 : index
    %c0_156 = arith.constant 0 : index
    %170 = vector.load %arg3[%c8_154, %c0_155, %c0_156] : memref<9x64x64xbf16, #tpu.memory_space<vmem>>, vector<1x64x64xbf16>
    %171 = vector.shape_cast %170 : vector<1x64x64xbf16> to vector<64x64xbf16>
    %cst_157 = arith.constant dense<0.000000e+00> : vector<16x64xf32>
    %172 = tpu.matmul %169, %171, %cst_157 {dimension_numbers = #tpu.dot_dimension_numbers<[1], [0], [0], [1], [0, 0, 1, 1], [], []>} : vector<16x64xbf16>, vector<64x64xbf16>, vector<16x64xf32> -> vector<16x64xf32>
    %173 = arith.addf %164, %172 : vector<16x64xf32>
    %174 = vector.broadcast %1 : vector<1x64xf32> to vector<16x64xf32>
    %175 = arith.addf %173, %174 : vector<16x64xf32>
    %cst_158 = arith.constant 0.000000e+00 : f32
    %176 = vector.broadcast %cst_158 : f32 to vector<16x64xf32>
    %177 = arith.maximumf %175, %176 : vector<16x64xf32>
    %178 = arith.truncf %177 : vector<16x64xf32> to vector<16x64xbf16>
    %c0_159 = arith.constant 0 : index
    %c1_160 = arith.constant 1 : index
    %c0_161 = arith.constant 0 : index
    %c0_162 = arith.constant 0 : index
    %179 = vector.load %arg5[%c0_159, %c1_160, %c0_161, %c0_162] : memref<1x8x16x64xbf16, #tpu.memory_space<vmem>>, vector<1x1x16x64xbf16>
    %180 = vector.shape_cast %179 : vector<1x1x16x64xbf16> to vector<16x64xbf16>
    %181 = vector.shape_cast %178 : vector<16x64xbf16> to vector<1x1x16x64xbf16>
    tpu.vector_store %arg5[%c0_159, %c1_160, %c0_161, %c0_162], %181 {strides = array<i32>} : memref<1x8x16x64xbf16, #tpu.memory_space<vmem>>, vector<1x1x16x64xbf16>,
    %cst_163 = arith.constant 0.000000e+00 : f32
    %182 = vector.broadcast %cst_163 : f32 to vector<16x64xf32>
    %c2_i32_164 = arith.constant 2 : i32
    %183 = arith.addi %0, %c2_i32_164 : i32
    %c0_i32_165 = arith.constant 0 : i32
    %184 = arith.addi %183, %c0_i32_165 : i32
    %c0_166 = arith.constant 0 : index
    %185 = arith.index_cast %184 : i32 to index
    %c0_167 = arith.constant 0 : index
    %c0_168 = arith.constant 0 : index
    %186 = vector.load %arg2[%c0_166, %185, %c0_167, %c0_168] : memref<1x18x18x64xbf16, #tpu.memory_space<vmem>>, vector<1x1x16x64xbf16>
    %187 = vector.shape_cast %186 : vector<1x1x16x64xbf16> to vector<16x64xbf16>
    %c0_169 = arith.constant 0 : index
    %c0_170 = arith.constant 0 : index
    %c0_171 = arith.constant 0 : index
    %188 = vector.load %arg3[%c0_169, %c0_170, %c0_171] : memref<9x64x64xbf16, #tpu.memory_space<vmem>>, vector<1x64x64xbf16>
    %189 = vector.shape_cast %188 : vector<1x64x64xbf16> to vector<64x64xbf16>
    %cst_172 = arith.constant dense<0.000000e+00> : vector<16x64xf32>
    %190 = tpu.matmul %187, %189, %cst_172 {dimension_numbers = #tpu.dot_dimension_numbers<[1], [0], [0], [1], [0, 0, 1, 1], [], []>} : vector<16x64xbf16>, vector<64x64xbf16>, vector<16x64xf32> -> vector<16x64xf32>
    %191 = arith.addf %182, %190 : vector<16x64xf32>
    %c2_i32_173 = arith.constant 2 : i32
    %192 = arith.addi %0, %c2_i32_173 : i32
    %c0_i32_174 = arith.constant 0 : i32
    %193 = arith.addi %192, %c0_i32_174 : i32
    %c0_175 = arith.constant 0 : index
    %194 = arith.index_cast %193 : i32 to index
    %c1_176 = arith.constant 1 : index
    %c0_177 = arith.constant 0 : index
    %195 = vector.load %arg2[%c0_175, %194, %c1_176, %c0_177] : memref<1x18x18x64xbf16, #tpu.memory_space<vmem>>, vector<1x1x16x64xbf16>
    %196 = vector.shape_cast %195 : vector<1x1x16x64xbf16> to vector<16x64xbf16>
    %c1_178 = arith.constant 1 : index
    %c0_179 = arith.constant 0 : index
    %c0_180 = arith.constant 0 : index
    %197 = vector.load %arg3[%c1_178, %c0_179, %c0_180] : memref<9x64x64xbf16, #tpu.memory_space<vmem>>, vector<1x64x64xbf16>
    %198 = vector.shape_cast %197 : vector<1x64x64xbf16> to vector<64x64xbf16>
    %cst_181 = arith.constant dense<0.000000e+00> : vector<16x64xf32>
    %199 = tpu.matmul %196, %198, %cst_181 {dimension_numbers = #tpu.dot_dimension_numbers<[1], [0], [0], [1], [0, 0, 1, 1], [], []>} : vector<16x64xbf16>, vector<64x64xbf16>, vector<16x64xf32> -> vector<16x64xf32>
    %200 = arith.addf %191, %199 : vector<16x64xf32>
    %c2_i32_182 = arith.constant 2 : i32
    %201 = arith.addi %0, %c2_i32_182 : i32
    %c0_i32_183 = arith.constant 0 : i32
    %202 = arith.addi %201, %c0_i32_183 : i32
    %c0_184 = arith.constant 0 : index
    %203 = arith.index_cast %202 : i32 to index
    %c2_185 = arith.constant 2 : index
    %c0_186 = arith.constant 0 : index
    %204 = vector.load %arg2[%c0_184, %203, %c2_185, %c0_186] : memref<1x18x18x64xbf16, #tpu.memory_space<vmem>>, vector<1x1x16x64xbf16>
    %205 = vector.shape_cast %204 : vector<1x1x16x64xbf16> to vector<16x64xbf16>
    %c2_187 = arith.constant 2 : index
    %c0_188 = arith.constant 0 : index
    %c0_189 = arith.constant 0 : index
    %206 = vector.load %arg3[%c2_187, %c0_188, %c0_189] : memref<9x64x64xbf16, #tpu.memory_space<vmem>>, vector<1x64x64xbf16>
    %207 = vector.shape_cast %206 : vector<1x64x64xbf16> to vector<64x64xbf16>
    %cst_190 = arith.constant dense<0.000000e+00> : vector<16x64xf32>
    %208 = tpu.matmul %205, %207, %cst_190 {dimension_numbers = #tpu.dot_dimension_numbers<[1], [0], [0], [1], [0, 0, 1, 1], [], []>} : vector<16x64xbf16>, vector<64x64xbf16>, vector<16x64xf32> -> vector<16x64xf32>
    %209 = arith.addf %200, %208 : vector<16x64xf32>
    %c2_i32_191 = arith.constant 2 : i32
    %210 = arith.addi %0, %c2_i32_191 : i32
    %c1_i32_192 = arith.constant 1 : i32
    %211 = arith.addi %210, %c1_i32_192 : i32
    %c0_193 = arith.constant 0 : index
    %212 = arith.index_cast %211 : i32 to index
    %c0_194 = arith.constant 0 : index
    %c0_195 = arith.constant 0 : index
    %213 = vector.load %arg2[%c0_193, %212, %c0_194, %c0_195] : memref<1x18x18x64xbf16, #tpu.memory_space<vmem>>, vector<1x1x16x64xbf16>
    %214 = vector.shape_cast %213 : vector<1x1x16x64xbf16> to vector<16x64xbf16>
    %c3_196 = arith.constant 3 : index
    %c0_197 = arith.constant 0 : index
    %c0_198 = arith.constant 0 : index
    %215 = vector.load %arg3[%c3_196, %c0_197, %c0_198] : memref<9x64x64xbf16, #tpu.memory_space<vmem>>, vector<1x64x64xbf16>
    %216 = vector.shape_cast %215 : vector<1x64x64xbf16> to vector<64x64xbf16>
    %cst_199 = arith.constant dense<0.000000e+00> : vector<16x64xf32>
    %217 = tpu.matmul %214, %216, %cst_199 {dimension_numbers = #tpu.dot_dimension_numbers<[1], [0], [0], [1], [0, 0, 1, 1], [], []>} : vector<16x64xbf16>, vector<64x64xbf16>, vector<16x64xf32> -> vector<16x64xf32>
    %218 = arith.addf %209, %217 : vector<16x64xf32>
    %c2_i32_200 = arith.constant 2 : i32
    %219 = arith.addi %0, %c2_i32_200 : i32
    %c1_i32_201 = arith.constant 1 : i32
    %220 = arith.addi %219, %c1_i32_201 : i32
    %c0_202 = arith.constant 0 : index
    %221 = arith.index_cast %220 : i32 to index
    %c1_203 = arith.constant 1 : index
    %c0_204 = arith.constant 0 : index
    %222 = vector.load %arg2[%c0_202, %221, %c1_203, %c0_204] : memref<1x18x18x64xbf16, #tpu.memory_space<vmem>>, vector<1x1x16x64xbf16>
    %223 = vector.shape_cast %222 : vector<1x1x16x64xbf16> to vector<16x64xbf16>
    %c4_205 = arith.constant 4 : index
    %c0_206 = arith.constant 0 : index
    %c0_207 = arith.constant 0 : index
    %224 = vector.load %arg3[%c4_205, %c0_206, %c0_207] : memref<9x64x64xbf16, #tpu.memory_space<vmem>>, vector<1x64x64xbf16>
    %225 = vector.shape_cast %224 : vector<1x64x64xbf16> to vector<64x64xbf16>
    %cst_208 = arith.constant dense<0.000000e+00> : vector<16x64xf32>
    %226 = tpu.matmul %223, %225, %cst_208 {dimension_numbers = #tpu.dot_dimension_numbers<[1], [0], [0], [1], [0, 0, 1, 1], [], []>} : vector<16x64xbf16>, vector<64x64xbf16>, vector<16x64xf32> -> vector<16x64xf32>
    %227 = arith.addf %218, %226 : vector<16x64xf32>
    %c2_i32_209 = arith.constant 2 : i32
    %228 = arith.addi %0, %c2_i32_209 : i32
    %c1_i32_210 = arith.constant 1 : i32
    %229 = arith.addi %228, %c1_i32_210 : i32
    %c0_211 = arith.constant 0 : index
    %230 = arith.index_cast %229 : i32 to index
    %c2_212 = arith.constant 2 : index
    %c0_213 = arith.constant 0 : index
    %231 = vector.load %arg2[%c0_211, %230, %c2_212, %c0_213] : memref<1x18x18x64xbf16, #tpu.memory_space<vmem>>, vector<1x1x16x64xbf16>
    %232 = vector.shape_cast %231 : vector<1x1x16x64xbf16> to vector<16x64xbf16>
    %c5_214 = arith.constant 5 : index
    %c0_215 = arith.constant 0 : index
    %c0_216 = arith.constant 0 : index
    %233 = vector.load %arg3[%c5_214, %c0_215, %c0_216] : memref<9x64x64xbf16, #tpu.memory_space<vmem>>, vector<1x64x64xbf16>
    %234 = vector.shape_cast %233 : vector<1x64x64xbf16> to vector<64x64xbf16>
    %cst_217 = arith.constant dense<0.000000e+00> : vector<16x64xf32>
    %235 = tpu.matmul %232, %234, %cst_217 {dimension_numbers = #tpu.dot_dimension_numbers<[1], [0], [0], [1], [0, 0, 1, 1], [], []>} : vector<16x64xbf16>, vector<64x64xbf16>, vector<16x64xf32> -> vector<16x64xf32>
    %236 = arith.addf %227, %235 : vector<16x64xf32>
    %c2_i32_218 = arith.constant 2 : i32
    %237 = arith.addi %0, %c2_i32_218 : i32
    %c2_i32_219 = arith.constant 2 : i32
    %238 = arith.addi %237, %c2_i32_219 : i32
    %c0_220 = arith.constant 0 : index
    %239 = arith.index_cast %238 : i32 to index
    %c0_221 = arith.constant 0 : index
    %c0_222 = arith.constant 0 : index
    %240 = vector.load %arg2[%c0_220, %239, %c0_221, %c0_222] : memref<1x18x18x64xbf16, #tpu.memory_space<vmem>>, vector<1x1x16x64xbf16>
    %241 = vector.shape_cast %240 : vector<1x1x16x64xbf16> to vector<16x64xbf16>
    %c6_223 = arith.constant 6 : index
    %c0_224 = arith.constant 0 : index
    %c0_225 = arith.constant 0 : index
    %242 = vector.load %arg3[%c6_223, %c0_224, %c0_225] : memref<9x64x64xbf16, #tpu.memory_space<vmem>>, vector<1x64x64xbf16>
    %243 = vector.shape_cast %242 : vector<1x64x64xbf16> to vector<64x64xbf16>
    %cst_226 = arith.constant dense<0.000000e+00> : vector<16x64xf32>
    %244 = tpu.matmul %241, %243, %cst_226 {dimension_numbers = #tpu.dot_dimension_numbers<[1], [0], [0], [1], [0, 0, 1, 1], [], []>} : vector<16x64xbf16>, vector<64x64xbf16>, vector<16x64xf32> -> vector<16x64xf32>
    %245 = arith.addf %236, %244 : vector<16x64xf32>
    %c2_i32_227 = arith.constant 2 : i32
    %246 = arith.addi %0, %c2_i32_227 : i32
    %c2_i32_228 = arith.constant 2 : i32
    %247 = arith.addi %246, %c2_i32_228 : i32
    %c0_229 = arith.constant 0 : index
    %248 = arith.index_cast %247 : i32 to index
    %c1_230 = arith.constant 1 : index
    %c0_231 = arith.constant 0 : index
    %249 = vector.load %arg2[%c0_229, %248, %c1_230, %c0_231] : memref<1x18x18x64xbf16, #tpu.memory_space<vmem>>, vector<1x1x16x64xbf16>
    %250 = vector.shape_cast %249 : vector<1x1x16x64xbf16> to vector<16x64xbf16>
    %c7_232 = arith.constant 7 : index
    %c0_233 = arith.constant 0 : index
    %c0_234 = arith.constant 0 : index
    %251 = vector.load %arg3[%c7_232, %c0_233, %c0_234] : memref<9x64x64xbf16, #tpu.memory_space<vmem>>, vector<1x64x64xbf16>
    %252 = vector.shape_cast %251 : vector<1x64x64xbf16> to vector<64x64xbf16>
    %cst_235 = arith.constant dense<0.000000e+00> : vector<16x64xf32>
    %253 = tpu.matmul %250, %252, %cst_235 {dimension_numbers = #tpu.dot_dimension_numbers<[1], [0], [0], [1], [0, 0, 1, 1], [], []>} : vector<16x64xbf16>, vector<64x64xbf16>, vector<16x64xf32> -> vector<16x64xf32>
    %254 = arith.addf %245, %253 : vector<16x64xf32>
    %c2_i32_236 = arith.constant 2 : i32
    %255 = arith.addi %0, %c2_i32_236 : i32
    %c2_i32_237 = arith.constant 2 : i32
    %256 = arith.addi %255, %c2_i32_237 : i32
    %c0_238 = arith.constant 0 : index
    %257 = arith.index_cast %256 : i32 to index
    %c2_239 = arith.constant 2 : index
    %c0_240 = arith.constant 0 : index
    %258 = vector.load %arg2[%c0_238, %257, %c2_239, %c0_240] : memref<1x18x18x64xbf16, #tpu.memory_space<vmem>>, vector<1x1x16x64xbf16>
    %259 = vector.shape_cast %258 : vector<1x1x16x64xbf16> to vector<16x64xbf16>
    %c8_241 = arith.constant 8 : index
    %c0_242 = arith.constant 0 : index
    %c0_243 = arith.constant 0 : index
    %260 = vector.load %arg3[%c8_241, %c0_242, %c0_243] : memref<9x64x64xbf16, #tpu.memory_space<vmem>>, vector<1x64x64xbf16>
    %261 = vector.shape_cast %260 : vector<1x64x64xbf16> to vector<64x64xbf16>
    %cst_244 = arith.constant dense<0.000000e+00> : vector<16x64xf32>
    %262 = tpu.matmul %259, %261, %cst_244 {dimension_numbers = #tpu.dot_dimension_numbers<[1], [0], [0], [1], [0, 0, 1, 1], [], []>} : vector<16x64xbf16>, vector<64x64xbf16>, vector<16x64xf32> -> vector<16x64xf32>
    %263 = arith.addf %254, %262 : vector<16x64xf32>
    %264 = vector.broadcast %1 : vector<1x64xf32> to vector<16x64xf32>
    %265 = arith.addf %263, %264 : vector<16x64xf32>
    %cst_245 = arith.constant 0.000000e+00 : f32
    %266 = vector.broadcast %cst_245 : f32 to vector<16x64xf32>
    %267 = arith.maximumf %265, %266 : vector<16x64xf32>
    %268 = arith.truncf %267 : vector<16x64xf32> to vector<16x64xbf16>
    %c0_246 = arith.constant 0 : index
    %c2_247 = arith.constant 2 : index
    %c0_248 = arith.constant 0 : index
    %c0_249 = arith.constant 0 : index
    %269 = vector.load %arg5[%c0_246, %c2_247, %c0_248, %c0_249] : memref<1x8x16x64xbf16, #tpu.memory_space<vmem>>, vector<1x1x16x64xbf16>
    %270 = vector.shape_cast %269 : vector<1x1x16x64xbf16> to vector<16x64xbf16>
    %271 = vector.shape_cast %268 : vector<16x64xbf16> to vector<1x1x16x64xbf16>
    tpu.vector_store %arg5[%c0_246, %c2_247, %c0_248, %c0_249], %271 {strides = array<i32>} : memref<1x8x16x64xbf16, #tpu.memory_space<vmem>>, vector<1x1x16x64xbf16>,
    %cst_250 = arith.constant 0.000000e+00 : f32
    %272 = vector.broadcast %cst_250 : f32 to vector<16x64xf32>
    %c3_i32 = arith.constant 3 : i32
    %273 = arith.addi %0, %c3_i32 : i32
    %c0_i32_251 = arith.constant 0 : i32
    %274 = arith.addi %273, %c0_i32_251 : i32
    %c0_252 = arith.constant 0 : index
    %275 = arith.index_cast %274 : i32 to index
    %c0_253 = arith.constant 0 : index
    %c0_254 = arith.constant 0 : index
    %276 = vector.load %arg2[%c0_252, %275, %c0_253, %c0_254] : memref<1x18x18x64xbf16, #tpu.memory_space<vmem>>, vector<1x1x16x64xbf16>
    %277 = vector.shape_cast %276 : vector<1x1x16x64xbf16> to vector<16x64xbf16>
    %c0_255 = arith.constant 0 : index
    %c0_256 = arith.constant 0 : index
    %c0_257 = arith.constant 0 : index
    %278 = vector.load %arg3[%c0_255, %c0_256, %c0_257] : memref<9x64x64xbf16, #tpu.memory_space<vmem>>, vector<1x64x64xbf16>
    %279 = vector.shape_cast %278 : vector<1x64x64xbf16> to vector<64x64xbf16>
    %cst_258 = arith.constant dense<0.000000e+00> : vector<16x64xf32>
    %280 = tpu.matmul %277, %279, %cst_258 {dimension_numbers = #tpu.dot_dimension_numbers<[1], [0], [0], [1], [0, 0, 1, 1], [], []>} : vector<16x64xbf16>, vector<64x64xbf16>, vector<16x64xf32> -> vector<16x64xf32>
    %281 = arith.addf %272, %280 : vector<16x64xf32>
    %c3_i32_259 = arith.constant 3 : i32
    %282 = arith.addi %0, %c3_i32_259 : i32
    %c0_i32_260 = arith.constant 0 : i32
    %283 = arith.addi %282, %c0_i32_260 : i32
    %c0_261 = arith.constant 0 : index
    %284 = arith.index_cast %283 : i32 to index
    %c1_262 = arith.constant 1 : index
    %c0_263 = arith.constant 0 : index
    %285 = vector.load %arg2[%c0_261, %284, %c1_262, %c0_263] : memref<1x18x18x64xbf16, #tpu.memory_space<vmem>>, vector<1x1x16x64xbf16>
    %286 = vector.shape_cast %285 : vector<1x1x16x64xbf16> to vector<16x64xbf16>
    %c1_264 = arith.constant 1 : index
    %c0_265 = arith.constant 0 : index
    %c0_266 = arith.constant 0 : index
    %287 = vector.load %arg3[%c1_264, %c0_265, %c0_266] : memref<9x64x64xbf16, #tpu.memory_space<vmem>>, vector<1x64x64xbf16>
    %288 = vector.shape_cast %287 : vector<1x64x64xbf16> to vector<64x64xbf16>
    %cst_267 = arith.constant dense<0.000000e+00> : vector<16x64xf32>
    %289 = tpu.matmul %286, %288, %cst_267 {dimension_numbers = #tpu.dot_dimension_numbers<[1], [0], [0], [1], [0, 0, 1, 1], [], []>} : vector<16x64xbf16>, vector<64x64xbf16>, vector<16x64xf32> -> vector<16x64xf32>
    %290 = arith.addf %281, %289 : vector<16x64xf32>
    %c3_i32_268 = arith.constant 3 : i32
    %291 = arith.addi %0, %c3_i32_268 : i32
    %c0_i32_269 = arith.constant 0 : i32
    %292 = arith.addi %291, %c0_i32_269 : i32
    %c0_270 = arith.constant 0 : index
    %293 = arith.index_cast %292 : i32 to index
    %c2_271 = arith.constant 2 : index
    %c0_272 = arith.constant 0 : index
    %294 = vector.load %arg2[%c0_270, %293, %c2_271, %c0_272] : memref<1x18x18x64xbf16, #tpu.memory_space<vmem>>, vector<1x1x16x64xbf16>
    %295 = vector.shape_cast %294 : vector<1x1x16x64xbf16> to vector<16x64xbf16>
    %c2_273 = arith.constant 2 : index
    %c0_274 = arith.constant 0 : index
    %c0_275 = arith.constant 0 : index
    %296 = vector.load %arg3[%c2_273, %c0_274, %c0_275] : memref<9x64x64xbf16, #tpu.memory_space<vmem>>, vector<1x64x64xbf16>
    %297 = vector.shape_cast %296 : vector<1x64x64xbf16> to vector<64x64xbf16>
    %cst_276 = arith.constant dense<0.000000e+00> : vector<16x64xf32>
    %298 = tpu.matmul %295, %297, %cst_276 {dimension_numbers = #tpu.dot_dimension_numbers<[1], [0], [0], [1], [0, 0, 1, 1], [], []>} : vector<16x64xbf16>, vector<64x64xbf16>, vector<16x64xf32> -> vector<16x64xf32>
    %299 = arith.addf %290, %298 : vector<16x64xf32>
    %c3_i32_277 = arith.constant 3 : i32
    %300 = arith.addi %0, %c3_i32_277 : i32
    %c1_i32_278 = arith.constant 1 : i32
    %301 = arith.addi %300, %c1_i32_278 : i32
    %c0_279 = arith.constant 0 : index
    %302 = arith.index_cast %301 : i32 to index
    %c0_280 = arith.constant 0 : index
    %c0_281 = arith.constant 0 : index
    %303 = vector.load %arg2[%c0_279, %302, %c0_280, %c0_281] : memref<1x18x18x64xbf16, #tpu.memory_space<vmem>>, vector<1x1x16x64xbf16>
    %304 = vector.shape_cast %303 : vector<1x1x16x64xbf16> to vector<16x64xbf16>
    %c3_282 = arith.constant 3 : index
    %c0_283 = arith.constant 0 : index
    %c0_284 = arith.constant 0 : index
    %305 = vector.load %arg3[%c3_282, %c0_283, %c0_284] : memref<9x64x64xbf16, #tpu.memory_space<vmem>>, vector<1x64x64xbf16>
    %306 = vector.shape_cast %305 : vector<1x64x64xbf16> to vector<64x64xbf16>
    %cst_285 = arith.constant dense<0.000000e+00> : vector<16x64xf32>
    %307 = tpu.matmul %304, %306, %cst_285 {dimension_numbers = #tpu.dot_dimension_numbers<[1], [0], [0], [1], [0, 0, 1, 1], [], []>} : vector<16x64xbf16>, vector<64x64xbf16>, vector<16x64xf32> -> vector<16x64xf32>
    %308 = arith.addf %299, %307 : vector<16x64xf32>
    %c3_i32_286 = arith.constant 3 : i32
    %309 = arith.addi %0, %c3_i32_286 : i32
    %c1_i32_287 = arith.constant 1 : i32
    %310 = arith.addi %309, %c1_i32_287 : i32
    %c0_288 = arith.constant 0 : index
    %311 = arith.index_cast %310 : i32 to index
    %c1_289 = arith.constant 1 : index
    %c0_290 = arith.constant 0 : index
    %312 = vector.load %arg2[%c0_288, %311, %c1_289, %c0_290] : memref<1x18x18x64xbf16, #tpu.memory_space<vmem>>, vector<1x1x16x64xbf16>
    %313 = vector.shape_cast %312 : vector<1x1x16x64xbf16> to vector<16x64xbf16>
    %c4_291 = arith.constant 4 : index
    %c0_292 = arith.constant 0 : index
    %c0_293 = arith.constant 0 : index
    %314 = vector.load %arg3[%c4_291, %c0_292, %c0_293] : memref<9x64x64xbf16, #tpu.memory_space<vmem>>, vector<1x64x64xbf16>
    %315 = vector.shape_cast %314 : vector<1x64x64xbf16> to vector<64x64xbf16>
    %cst_294 = arith.constant dense<0.000000e+00> : vector<16x64xf32>
    %316 = tpu.matmul %313, %315, %cst_294 {dimension_numbers = #tpu.dot_dimension_numbers<[1], [0], [0], [1], [0, 0, 1, 1], [], []>} : vector<16x64xbf16>, vector<64x64xbf16>, vector<16x64xf32> -> vector<16x64xf32>
    %317 = arith.addf %308, %316 : vector<16x64xf32>
    %c3_i32_295 = arith.constant 3 : i32
    %318 = arith.addi %0, %c3_i32_295 : i32
    %c1_i32_296 = arith.constant 1 : i32
    %319 = arith.addi %318, %c1_i32_296 : i32
    %c0_297 = arith.constant 0 : index
    %320 = arith.index_cast %319 : i32 to index
    %c2_298 = arith.constant 2 : index
    %c0_299 = arith.constant 0 : index
    %321 = vector.load %arg2[%c0_297, %320, %c2_298, %c0_299] : memref<1x18x18x64xbf16, #tpu.memory_space<vmem>>, vector<1x1x16x64xbf16>
    %322 = vector.shape_cast %321 : vector<1x1x16x64xbf16> to vector<16x64xbf16>
    %c5_300 = arith.constant 5 : index
    %c0_301 = arith.constant 0 : index
    %c0_302 = arith.constant 0 : index
    %323 = vector.load %arg3[%c5_300, %c0_301, %c0_302] : memref<9x64x64xbf16, #tpu.memory_space<vmem>>, vector<1x64x64xbf16>
    %324 = vector.shape_cast %323 : vector<1x64x64xbf16> to vector<64x64xbf16>
    %cst_303 = arith.constant dense<0.000000e+00> : vector<16x64xf32>
    %325 = tpu.matmul %322, %324, %cst_303 {dimension_numbers = #tpu.dot_dimension_numbers<[1], [0], [0], [1], [0, 0, 1, 1], [], []>} : vector<16x64xbf16>, vector<64x64xbf16>, vector<16x64xf32> -> vector<16x64xf32>
    %326 = arith.addf %317, %325 : vector<16x64xf32>
    %c3_i32_304 = arith.constant 3 : i32
    %327 = arith.addi %0, %c3_i32_304 : i32
    %c2_i32_305 = arith.constant 2 : i32
    %328 = arith.addi %327, %c2_i32_305 : i32
    %c0_306 = arith.constant 0 : index
    %329 = arith.index_cast %328 : i32 to index
    %c0_307 = arith.constant 0 : index
    %c0_308 = arith.constant 0 : index
    %330 = vector.load %arg2[%c0_306, %329, %c0_307, %c0_308] : memref<1x18x18x64xbf16, #tpu.memory_space<vmem>>, vector<1x1x16x64xbf16>
    %331 = vector.shape_cast %330 : vector<1x1x16x64xbf16> to vector<16x64xbf16>
    %c6_309 = arith.constant 6 : index
    %c0_310 = arith.constant 0 : index
    %c0_311 = arith.constant 0 : index
    %332 = vector.load %arg3[%c6_309, %c0_310, %c0_311] : memref<9x64x64xbf16, #tpu.memory_space<vmem>>, vector<1x64x64xbf16>
    %333 = vector.shape_cast %332 : vector<1x64x64xbf16> to vector<64x64xbf16>
    %cst_312 = arith.constant dense<0.000000e+00> : vector<16x64xf32>
    %334 = tpu.matmul %331, %333, %cst_312 {dimension_numbers = #tpu.dot_dimension_numbers<[1], [0], [0], [1], [0, 0, 1, 1], [], []>} : vector<16x64xbf16>, vector<64x64xbf16>, vector<16x64xf32> -> vector<16x64xf32>
    %335 = arith.addf %326, %334 : vector<16x64xf32>
    %c3_i32_313 = arith.constant 3 : i32
    %336 = arith.addi %0, %c3_i32_313 : i32
    %c2_i32_314 = arith.constant 2 : i32
    %337 = arith.addi %336, %c2_i32_314 : i32
    %c0_315 = arith.constant 0 : index
    %338 = arith.index_cast %337 : i32 to index
    %c1_316 = arith.constant 1 : index
    %c0_317 = arith.constant 0 : index
    %339 = vector.load %arg2[%c0_315, %338, %c1_316, %c0_317] : memref<1x18x18x64xbf16, #tpu.memory_space<vmem>>, vector<1x1x16x64xbf16>
    %340 = vector.shape_cast %339 : vector<1x1x16x64xbf16> to vector<16x64xbf16>
    %c7_318 = arith.constant 7 : index
    %c0_319 = arith.constant 0 : index
    %c0_320 = arith.constant 0 : index
    %341 = vector.load %arg3[%c7_318, %c0_319, %c0_320] : memref<9x64x64xbf16, #tpu.memory_space<vmem>>, vector<1x64x64xbf16>
    %342 = vector.shape_cast %341 : vector<1x64x64xbf16> to vector<64x64xbf16>
    %cst_321 = arith.constant dense<0.000000e+00> : vector<16x64xf32>
    %343 = tpu.matmul %340, %342, %cst_321 {dimension_numbers = #tpu.dot_dimension_numbers<[1], [0], [0], [1], [0, 0, 1, 1], [], []>} : vector<16x64xbf16>, vector<64x64xbf16>, vector<16x64xf32> -> vector<16x64xf32>
    %344 = arith.addf %335, %343 : vector<16x64xf32>
    %c3_i32_322 = arith.constant 3 : i32
    %345 = arith.addi %0, %c3_i32_322 : i32
    %c2_i32_323 = arith.constant 2 : i32
    %346 = arith.addi %345, %c2_i32_323 : i32
    %c0_324 = arith.constant 0 : index
    %347 = arith.index_cast %346 : i32 to index
    %c2_325 = arith.constant 2 : index
    %c0_326 = arith.constant 0 : index
    %348 = vector.load %arg2[%c0_324, %347, %c2_325, %c0_326] : memref<1x18x18x64xbf16, #tpu.memory_space<vmem>>, vector<1x1x16x64xbf16>
    %349 = vector.shape_cast %348 : vector<1x1x16x64xbf16> to vector<16x64xbf16>
    %c8_327 = arith.constant 8 : index
    %c0_328 = arith.constant 0 : index
    %c0_329 = arith.constant 0 : index
    %350 = vector.load %arg3[%c8_327, %c0_328, %c0_329] : memref<9x64x64xbf16, #tpu.memory_space<vmem>>, vector<1x64x64xbf16>
    %351 = vector.shape_cast %350 : vector<1x64x64xbf16> to vector<64x64xbf16>
    %cst_330 = arith.constant dense<0.000000e+00> : vector<16x64xf32>
    %352 = tpu.matmul %349, %351, %cst_330 {dimension_numbers = #tpu.dot_dimension_numbers<[1], [0], [0], [1], [0, 0, 1, 1], [], []>} : vector<16x64xbf16>, vector<64x64xbf16>, vector<16x64xf32> -> vector<16x64xf32>
    %353 = arith.addf %344, %352 : vector<16x64xf32>
    %354 = vector.broadcast %1 : vector<1x64xf32> to vector<16x64xf32>
    %355 = arith.addf %353, %354 : vector<16x64xf32>
    %cst_331 = arith.constant 0.000000e+00 : f32
    %356 = vector.broadcast %cst_331 : f32 to vector<16x64xf32>
    %357 = arith.maximumf %355, %356 : vector<16x64xf32>
    %358 = arith.truncf %357 : vector<16x64xf32> to vector<16x64xbf16>
    %c0_332 = arith.constant 0 : index
    %c3_333 = arith.constant 3 : index
    %c0_334 = arith.constant 0 : index
    %c0_335 = arith.constant 0 : index
    %359 = vector.load %arg5[%c0_332, %c3_333, %c0_334, %c0_335] : memref<1x8x16x64xbf16, #tpu.memory_space<vmem>>, vector<1x1x16x64xbf16>
    %360 = vector.shape_cast %359 : vector<1x1x16x64xbf16> to vector<16x64xbf16>
    %361 = vector.shape_cast %358 : vector<16x64xbf16> to vector<1x1x16x64xbf16>
    tpu.vector_store %arg5[%c0_332, %c3_333, %c0_334, %c0_335], %361 {strides = array<i32>} : memref<1x8x16x64xbf16, #tpu.memory_space<vmem>>, vector<1x1x16x64xbf16>,
    %cst_336 = arith.constant 0.000000e+00 : f32
    %362 = vector.broadcast %cst_336 : f32 to vector<16x64xf32>
    %c4_i32 = arith.constant 4 : i32
    %363 = arith.addi %0, %c4_i32 : i32
    %c0_i32_337 = arith.constant 0 : i32
    %364 = arith.addi %363, %c0_i32_337 : i32
    %c0_338 = arith.constant 0 : index
    %365 = arith.index_cast %364 : i32 to index
    %c0_339 = arith.constant 0 : index
    %c0_340 = arith.constant 0 : index
    %366 = vector.load %arg2[%c0_338, %365, %c0_339, %c0_340] : memref<1x18x18x64xbf16, #tpu.memory_space<vmem>>, vector<1x1x16x64xbf16>
    %367 = vector.shape_cast %366 : vector<1x1x16x64xbf16> to vector<16x64xbf16>
    %c0_341 = arith.constant 0 : index
    %c0_342 = arith.constant 0 : index
    %c0_343 = arith.constant 0 : index
    %368 = vector.load %arg3[%c0_341, %c0_342, %c0_343] : memref<9x64x64xbf16, #tpu.memory_space<vmem>>, vector<1x64x64xbf16>
    %369 = vector.shape_cast %368 : vector<1x64x64xbf16> to vector<64x64xbf16>
    %cst_344 = arith.constant dense<0.000000e+00> : vector<16x64xf32>
    %370 = tpu.matmul %367, %369, %cst_344 {dimension_numbers = #tpu.dot_dimension_numbers<[1], [0], [0], [1], [0, 0, 1, 1], [], []>} : vector<16x64xbf16>, vector<64x64xbf16>, vector<16x64xf32> -> vector<16x64xf32>
    %371 = arith.addf %362, %370 : vector<16x64xf32>
    %c4_i32_345 = arith.constant 4 : i32
    %372 = arith.addi %0, %c4_i32_345 : i32
    %c0_i32_346 = arith.constant 0 : i32
    %373 = arith.addi %372, %c0_i32_346 : i32
    %c0_347 = arith.constant 0 : index
    %374 = arith.index_cast %373 : i32 to index
    %c1_348 = arith.constant 1 : index
    %c0_349 = arith.constant 0 : index
    %375 = vector.load %arg2[%c0_347, %374, %c1_348, %c0_349] : memref<1x18x18x64xbf16, #tpu.memory_space<vmem>>, vector<1x1x16x64xbf16>
    %376 = vector.shape_cast %375 : vector<1x1x16x64xbf16> to vector<16x64xbf16>
    %c1_350 = arith.constant 1 : index
    %c0_351 = arith.constant 0 : index
    %c0_352 = arith.constant 0 : index
    %377 = vector.load %arg3[%c1_350, %c0_351, %c0_352] : memref<9x64x64xbf16, #tpu.memory_space<vmem>>, vector<1x64x64xbf16>
    %378 = vector.shape_cast %377 : vector<1x64x64xbf16> to vector<64x64xbf16>
    %cst_353 = arith.constant dense<0.000000e+00> : vector<16x64xf32>
    %379 = tpu.matmul %376, %378, %cst_353 {dimension_numbers = #tpu.dot_dimension_numbers<[1], [0], [0], [1], [0, 0, 1, 1], [], []>} : vector<16x64xbf16>, vector<64x64xbf16>, vector<16x64xf32> -> vector<16x64xf32>
    %380 = arith.addf %371, %379 : vector<16x64xf32>
    %c4_i32_354 = arith.constant 4 : i32
    %381 = arith.addi %0, %c4_i32_354 : i32
    %c0_i32_355 = arith.constant 0 : i32
    %382 = arith.addi %381, %c0_i32_355 : i32
    %c0_356 = arith.constant 0 : index
    %383 = arith.index_cast %382 : i32 to index
    %c2_357 = arith.constant 2 : index
    %c0_358 = arith.constant 0 : index
    %384 = vector.load %arg2[%c0_356, %383, %c2_357, %c0_358] : memref<1x18x18x64xbf16, #tpu.memory_space<vmem>>, vector<1x1x16x64xbf16>
    %385 = vector.shape_cast %384 : vector<1x1x16x64xbf16> to vector<16x64xbf16>
    %c2_359 = arith.constant 2 : index
    %c0_360 = arith.constant 0 : index
    %c0_361 = arith.constant 0 : index
    %386 = vector.load %arg3[%c2_359, %c0_360, %c0_361] : memref<9x64x64xbf16, #tpu.memory_space<vmem>>, vector<1x64x64xbf16>
    %387 = vector.shape_cast %386 : vector<1x64x64xbf16> to vector<64x64xbf16>
    %cst_362 = arith.constant dense<0.000000e+00> : vector<16x64xf32>
    %388 = tpu.matmul %385, %387, %cst_362 {dimension_numbers = #tpu.dot_dimension_numbers<[1], [0], [0], [1], [0, 0, 1, 1], [], []>} : vector<16x64xbf16>, vector<64x64xbf16>, vector<16x64xf32> -> vector<16x64xf32>
    %389 = arith.addf %380, %388 : vector<16x64xf32>
    %c4_i32_363 = arith.constant 4 : i32
    %390 = arith.addi %0, %c4_i32_363 : i32
    %c1_i32_364 = arith.constant 1 : i32
    %391 = arith.addi %390, %c1_i32_364 : i32
    %c0_365 = arith.constant 0 : index
    %392 = arith.index_cast %391 : i32 to index
    %c0_366 = arith.constant 0 : index
    %c0_367 = arith.constant 0 : index
    %393 = vector.load %arg2[%c0_365, %392, %c0_366, %c0_367] : memref<1x18x18x64xbf16, #tpu.memory_space<vmem>>, vector<1x1x16x64xbf16>
    %394 = vector.shape_cast %393 : vector<1x1x16x64xbf16> to vector<16x64xbf16>
    %c3_368 = arith.constant 3 : index
    %c0_369 = arith.constant 0 : index
    %c0_370 = arith.constant 0 : index
    %395 = vector.load %arg3[%c3_368, %c0_369, %c0_370] : memref<9x64x64xbf16, #tpu.memory_space<vmem>>, vector<1x64x64xbf16>
    %396 = vector.shape_cast %395 : vector<1x64x64xbf16> to vector<64x64xbf16>
    %cst_371 = arith.constant dense<0.000000e+00> : vector<16x64xf32>
    %397 = tpu.matmul %394, %396, %cst_371 {dimension_numbers = #tpu.dot_dimension_numbers<[1], [0], [0], [1], [0, 0, 1, 1], [], []>} : vector<16x64xbf16>, vector<64x64xbf16>, vector<16x64xf32> -> vector<16x64xf32>
    %398 = arith.addf %389, %397 : vector<16x64xf32>
    %c4_i32_372 = arith.constant 4 : i32
    %399 = arith.addi %0, %c4_i32_372 : i32
    %c1_i32_373 = arith.constant 1 : i32
    %400 = arith.addi %399, %c1_i32_373 : i32
    %c0_374 = arith.constant 0 : index
    %401 = arith.index_cast %400 : i32 to index
    %c1_375 = arith.constant 1 : index
    %c0_376 = arith.constant 0 : index
    %402 = vector.load %arg2[%c0_374, %401, %c1_375, %c0_376] : memref<1x18x18x64xbf16, #tpu.memory_space<vmem>>, vector<1x1x16x64xbf16>
    %403 = vector.shape_cast %402 : vector<1x1x16x64xbf16> to vector<16x64xbf16>
    %c4_377 = arith.constant 4 : index
    %c0_378 = arith.constant 0 : index
    %c0_379 = arith.constant 0 : index
    %404 = vector.load %arg3[%c4_377, %c0_378, %c0_379] : memref<9x64x64xbf16, #tpu.memory_space<vmem>>, vector<1x64x64xbf16>
    %405 = vector.shape_cast %404 : vector<1x64x64xbf16> to vector<64x64xbf16>
    %cst_380 = arith.constant dense<0.000000e+00> : vector<16x64xf32>
    %406 = tpu.matmul %403, %405, %cst_380 {dimension_numbers = #tpu.dot_dimension_numbers<[1], [0], [0], [1], [0, 0, 1, 1], [], []>} : vector<16x64xbf16>, vector<64x64xbf16>, vector<16x64xf32> -> vector<16x64xf32>
    %407 = arith.addf %398, %406 : vector<16x64xf32>
    %c4_i32_381 = arith.constant 4 : i32
    %408 = arith.addi %0, %c4_i32_381 : i32
    %c1_i32_382 = arith.constant 1 : i32
    %409 = arith.addi %408, %c1_i32_382 : i32
    %c0_383 = arith.constant 0 : index
    %410 = arith.index_cast %409 : i32 to index
    %c2_384 = arith.constant 2 : index
    %c0_385 = arith.constant 0 : index
    %411 = vector.load %arg2[%c0_383, %410, %c2_384, %c0_385] : memref<1x18x18x64xbf16, #tpu.memory_space<vmem>>, vector<1x1x16x64xbf16>
    %412 = vector.shape_cast %411 : vector<1x1x16x64xbf16> to vector<16x64xbf16>
    %c5_386 = arith.constant 5 : index
    %c0_387 = arith.constant 0 : index
    %c0_388 = arith.constant 0 : index
    %413 = vector.load %arg3[%c5_386, %c0_387, %c0_388] : memref<9x64x64xbf16, #tpu.memory_space<vmem>>, vector<1x64x64xbf16>
    %414 = vector.shape_cast %413 : vector<1x64x64xbf16> to vector<64x64xbf16>
    %cst_389 = arith.constant dense<0.000000e+00> : vector<16x64xf32>
    %415 = tpu.matmul %412, %414, %cst_389 {dimension_numbers = #tpu.dot_dimension_numbers<[1], [0], [0], [1], [0, 0, 1, 1], [], []>} : vector<16x64xbf16>, vector<64x64xbf16>, vector<16x64xf32> -> vector<16x64xf32>
    %416 = arith.addf %407, %415 : vector<16x64xf32>
    %c4_i32_390 = arith.constant 4 : i32
    %417 = arith.addi %0, %c4_i32_390 : i32
    %c2_i32_391 = arith.constant 2 : i32
    %418 = arith.addi %417, %c2_i32_391 : i32
    %c0_392 = arith.constant 0 : index
    %419 = arith.index_cast %418 : i32 to index
    %c0_393 = arith.constant 0 : index
    %c0_394 = arith.constant 0 : index
    %420 = vector.load %arg2[%c0_392, %419, %c0_393, %c0_394] : memref<1x18x18x64xbf16, #tpu.memory_space<vmem>>, vector<1x1x16x64xbf16>
    %421 = vector.shape_cast %420 : vector<1x1x16x64xbf16> to vector<16x64xbf16>
    %c6_395 = arith.constant 6 : index
    %c0_396 = arith.constant 0 : index
    %c0_397 = arith.constant 0 : index
    %422 = vector.load %arg3[%c6_395, %c0_396, %c0_397] : memref<9x64x64xbf16, #tpu.memory_space<vmem>>, vector<1x64x64xbf16>
    %423 = vector.shape_cast %422 : vector<1x64x64xbf16> to vector<64x64xbf16>
    %cst_398 = arith.constant dense<0.000000e+00> : vector<16x64xf32>
    %424 = tpu.matmul %421, %423, %cst_398 {dimension_numbers = #tpu.dot_dimension_numbers<[1], [0], [0], [1], [0, 0, 1, 1], [], []>} : vector<16x64xbf16>, vector<64x64xbf16>, vector<16x64xf32> -> vector<16x64xf32>
    %425 = arith.addf %416, %424 : vector<16x64xf32>
    %c4_i32_399 = arith.constant 4 : i32
    %426 = arith.addi %0, %c4_i32_399 : i32
    %c2_i32_400 = arith.constant 2 : i32
    %427 = arith.addi %426, %c2_i32_400 : i32
    %c0_401 = arith.constant 0 : index
    %428 = arith.index_cast %427 : i32 to index
    %c1_402 = arith.constant 1 : index
    %c0_403 = arith.constant 0 : index
    %429 = vector.load %arg2[%c0_401, %428, %c1_402, %c0_403] : memref<1x18x18x64xbf16, #tpu.memory_space<vmem>>, vector<1x1x16x64xbf16>
    %430 = vector.shape_cast %429 : vector<1x1x16x64xbf16> to vector<16x64xbf16>
    %c7_404 = arith.constant 7 : index
    %c0_405 = arith.constant 0 : index
    %c0_406 = arith.constant 0 : index
    %431 = vector.load %arg3[%c7_404, %c0_405, %c0_406] : memref<9x64x64xbf16, #tpu.memory_space<vmem>>, vector<1x64x64xbf16>
    %432 = vector.shape_cast %431 : vector<1x64x64xbf16> to vector<64x64xbf16>
    %cst_407 = arith.constant dense<0.000000e+00> : vector<16x64xf32>
    %433 = tpu.matmul %430, %432, %cst_407 {dimension_numbers = #tpu.dot_dimension_numbers<[1], [0], [0], [1], [0, 0, 1, 1], [], []>} : vector<16x64xbf16>, vector<64x64xbf16>, vector<16x64xf32> -> vector<16x64xf32>
    %434 = arith.addf %425, %433 : vector<16x64xf32>
    %c4_i32_408 = arith.constant 4 : i32
    %435 = arith.addi %0, %c4_i32_408 : i32
    %c2_i32_409 = arith.constant 2 : i32
    %436 = arith.addi %435, %c2_i32_409 : i32
    %c0_410 = arith.constant 0 : index
    %437 = arith.index_cast %436 : i32 to index
    %c2_411 = arith.constant 2 : index
    %c0_412 = arith.constant 0 : index
    %438 = vector.load %arg2[%c0_410, %437, %c2_411, %c0_412] : memref<1x18x18x64xbf16, #tpu.memory_space<vmem>>, vector<1x1x16x64xbf16>
    %439 = vector.shape_cast %438 : vector<1x1x16x64xbf16> to vector<16x64xbf16>
    %c8_413 = arith.constant 8 : index
    %c0_414 = arith.constant 0 : index
    %c0_415 = arith.constant 0 : index
    %440 = vector.load %arg3[%c8_413, %c0_414, %c0_415] : memref<9x64x64xbf16, #tpu.memory_space<vmem>>, vector<1x64x64xbf16>
    %441 = vector.shape_cast %440 : vector<1x64x64xbf16> to vector<64x64xbf16>
    %cst_416 = arith.constant dense<0.000000e+00> : vector<16x64xf32>
    %442 = tpu.matmul %439, %441, %cst_416 {dimension_numbers = #tpu.dot_dimension_numbers<[1], [0], [0], [1], [0, 0, 1, 1], [], []>} : vector<16x64xbf16>, vector<64x64xbf16>, vector<16x64xf32> -> vector<16x64xf32>
    %443 = arith.addf %434, %442 : vector<16x64xf32>
    %444 = vector.broadcast %1 : vector<1x64xf32> to vector<16x64xf32>
    %445 = arith.addf %443, %444 : vector<16x64xf32>
    %cst_417 = arith.constant 0.000000e+00 : f32
    %446 = vector.broadcast %cst_417 : f32 to vector<16x64xf32>
    %447 = arith.maximumf %445, %446 : vector<16x64xf32>
    %448 = arith.truncf %447 : vector<16x64xf32> to vector<16x64xbf16>
    %c0_418 = arith.constant 0 : index
    %c4_419 = arith.constant 4 : index
    %c0_420 = arith.constant 0 : index
    %c0_421 = arith.constant 0 : index
    %449 = vector.load %arg5[%c0_418, %c4_419, %c0_420, %c0_421] : memref<1x8x16x64xbf16, #tpu.memory_space<vmem>>, vector<1x1x16x64xbf16>
    %450 = vector.shape_cast %449 : vector<1x1x16x64xbf16> to vector<16x64xbf16>
    %451 = vector.shape_cast %448 : vector<16x64xbf16> to vector<1x1x16x64xbf16>
    tpu.vector_store %arg5[%c0_418, %c4_419, %c0_420, %c0_421], %451 {strides = array<i32>} : memref<1x8x16x64xbf16, #tpu.memory_space<vmem>>, vector<1x1x16x64xbf16>,
    %cst_422 = arith.constant 0.000000e+00 : f32
    %452 = vector.broadcast %cst_422 : f32 to vector<16x64xf32>
    %c5_i32 = arith.constant 5 : i32
    %453 = arith.addi %0, %c5_i32 : i32
    %c0_i32_423 = arith.constant 0 : i32
    %454 = arith.addi %453, %c0_i32_423 : i32
    %c0_424 = arith.constant 0 : index
    %455 = arith.index_cast %454 : i32 to index
    %c0_425 = arith.constant 0 : index
    %c0_426 = arith.constant 0 : index
    %456 = vector.load %arg2[%c0_424, %455, %c0_425, %c0_426] : memref<1x18x18x64xbf16, #tpu.memory_space<vmem>>, vector<1x1x16x64xbf16>
    %457 = vector.shape_cast %456 : vector<1x1x16x64xbf16> to vector<16x64xbf16>
    %c0_427 = arith.constant 0 : index
    %c0_428 = arith.constant 0 : index
    %c0_429 = arith.constant 0 : index
    %458 = vector.load %arg3[%c0_427, %c0_428, %c0_429] : memref<9x64x64xbf16, #tpu.memory_space<vmem>>, vector<1x64x64xbf16>
    %459 = vector.shape_cast %458 : vector<1x64x64xbf16> to vector<64x64xbf16>
    %cst_430 = arith.constant dense<0.000000e+00> : vector<16x64xf32>
    %460 = tpu.matmul %457, %459, %cst_430 {dimension_numbers = #tpu.dot_dimension_numbers<[1], [0], [0], [1], [0, 0, 1, 1], [], []>} : vector<16x64xbf16>, vector<64x64xbf16>, vector<16x64xf32> -> vector<16x64xf32>
    %461 = arith.addf %452, %460 : vector<16x64xf32>
    %c5_i32_431 = arith.constant 5 : i32
    %462 = arith.addi %0, %c5_i32_431 : i32
    %c0_i32_432 = arith.constant 0 : i32
    %463 = arith.addi %462, %c0_i32_432 : i32
    %c0_433 = arith.constant 0 : index
    %464 = arith.index_cast %463 : i32 to index
    %c1_434 = arith.constant 1 : index
    %c0_435 = arith.constant 0 : index
    %465 = vector.load %arg2[%c0_433, %464, %c1_434, %c0_435] : memref<1x18x18x64xbf16, #tpu.memory_space<vmem>>, vector<1x1x16x64xbf16>
    %466 = vector.shape_cast %465 : vector<1x1x16x64xbf16> to vector<16x64xbf16>
    %c1_436 = arith.constant 1 : index
    %c0_437 = arith.constant 0 : index
    %c0_438 = arith.constant 0 : index
    %467 = vector.load %arg3[%c1_436, %c0_437, %c0_438] : memref<9x64x64xbf16, #tpu.memory_space<vmem>>, vector<1x64x64xbf16>
    %468 = vector.shape_cast %467 : vector<1x64x64xbf16> to vector<64x64xbf16>
    %cst_439 = arith.constant dense<0.000000e+00> : vector<16x64xf32>
    %469 = tpu.matmul %466, %468, %cst_439 {dimension_numbers = #tpu.dot_dimension_numbers<[1], [0], [0], [1], [0, 0, 1, 1], [], []>} : vector<16x64xbf16>, vector<64x64xbf16>, vector<16x64xf32> -> vector<16x64xf32>
    %470 = arith.addf %461, %469 : vector<16x64xf32>
    %c5_i32_440 = arith.constant 5 : i32
    %471 = arith.addi %0, %c5_i32_440 : i32
    %c0_i32_441 = arith.constant 0 : i32
    %472 = arith.addi %471, %c0_i32_441 : i32
    %c0_442 = arith.constant 0 : index
    %473 = arith.index_cast %472 : i32 to index
    %c2_443 = arith.constant 2 : index
    %c0_444 = arith.constant 0 : index
    %474 = vector.load %arg2[%c0_442, %473, %c2_443, %c0_444] : memref<1x18x18x64xbf16, #tpu.memory_space<vmem>>, vector<1x1x16x64xbf16>
    %475 = vector.shape_cast %474 : vector<1x1x16x64xbf16> to vector<16x64xbf16>
    %c2_445 = arith.constant 2 : index
    %c0_446 = arith.constant 0 : index
    %c0_447 = arith.constant 0 : index
    %476 = vector.load %arg3[%c2_445, %c0_446, %c0_447] : memref<9x64x64xbf16, #tpu.memory_space<vmem>>, vector<1x64x64xbf16>
    %477 = vector.shape_cast %476 : vector<1x64x64xbf16> to vector<64x64xbf16>
    %cst_448 = arith.constant dense<0.000000e+00> : vector<16x64xf32>
    %478 = tpu.matmul %475, %477, %cst_448 {dimension_numbers = #tpu.dot_dimension_numbers<[1], [0], [0], [1], [0, 0, 1, 1], [], []>} : vector<16x64xbf16>, vector<64x64xbf16>, vector<16x64xf32> -> vector<16x64xf32>
    %479 = arith.addf %470, %478 : vector<16x64xf32>
    %c5_i32_449 = arith.constant 5 : i32
    %480 = arith.addi %0, %c5_i32_449 : i32
    %c1_i32_450 = arith.constant 1 : i32
    %481 = arith.addi %480, %c1_i32_450 : i32
    %c0_451 = arith.constant 0 : index
    %482 = arith.index_cast %481 : i32 to index
    %c0_452 = arith.constant 0 : index
    %c0_453 = arith.constant 0 : index
    %483 = vector.load %arg2[%c0_451, %482, %c0_452, %c0_453] : memref<1x18x18x64xbf16, #tpu.memory_space<vmem>>, vector<1x1x16x64xbf16>
    %484 = vector.shape_cast %483 : vector<1x1x16x64xbf16> to vector<16x64xbf16>
    %c3_454 = arith.constant 3 : index
    %c0_455 = arith.constant 0 : index
    %c0_456 = arith.constant 0 : index
    %485 = vector.load %arg3[%c3_454, %c0_455, %c0_456] : memref<9x64x64xbf16, #tpu.memory_space<vmem>>, vector<1x64x64xbf16>
    %486 = vector.shape_cast %485 : vector<1x64x64xbf16> to vector<64x64xbf16>
    %cst_457 = arith.constant dense<0.000000e+00> : vector<16x64xf32>
    %487 = tpu.matmul %484, %486, %cst_457 {dimension_numbers = #tpu.dot_dimension_numbers<[1], [0], [0], [1], [0, 0, 1, 1], [], []>} : vector<16x64xbf16>, vector<64x64xbf16>, vector<16x64xf32> -> vector<16x64xf32>
    %488 = arith.addf %479, %487 : vector<16x64xf32>
    %c5_i32_458 = arith.constant 5 : i32
    %489 = arith.addi %0, %c5_i32_458 : i32
    %c1_i32_459 = arith.constant 1 : i32
    %490 = arith.addi %489, %c1_i32_459 : i32
    %c0_460 = arith.constant 0 : index
    %491 = arith.index_cast %490 : i32 to index
    %c1_461 = arith.constant 1 : index
    %c0_462 = arith.constant 0 : index
    %492 = vector.load %arg2[%c0_460, %491, %c1_461, %c0_462] : memref<1x18x18x64xbf16, #tpu.memory_space<vmem>>, vector<1x1x16x64xbf16>
    %493 = vector.shape_cast %492 : vector<1x1x16x64xbf16> to vector<16x64xbf16>
    %c4_463 = arith.constant 4 : index
    %c0_464 = arith.constant 0 : index
    %c0_465 = arith.constant 0 : index
    %494 = vector.load %arg3[%c4_463, %c0_464, %c0_465] : memref<9x64x64xbf16, #tpu.memory_space<vmem>>, vector<1x64x64xbf16>
    %495 = vector.shape_cast %494 : vector<1x64x64xbf16> to vector<64x64xbf16>
    %cst_466 = arith.constant dense<0.000000e+00> : vector<16x64xf32>
    %496 = tpu.matmul %493, %495, %cst_466 {dimension_numbers = #tpu.dot_dimension_numbers<[1], [0], [0], [1], [0, 0, 1, 1], [], []>} : vector<16x64xbf16>, vector<64x64xbf16>, vector<16x64xf32> -> vector<16x64xf32>
    %497 = arith.addf %488, %496 : vector<16x64xf32>
    %c5_i32_467 = arith.constant 5 : i32
    %498 = arith.addi %0, %c5_i32_467 : i32
    %c1_i32_468 = arith.constant 1 : i32
    %499 = arith.addi %498, %c1_i32_468 : i32
    %c0_469 = arith.constant 0 : index
    %500 = arith.index_cast %499 : i32 to index
    %c2_470 = arith.constant 2 : index
    %c0_471 = arith.constant 0 : index
    %501 = vector.load %arg2[%c0_469, %500, %c2_470, %c0_471] : memref<1x18x18x64xbf16, #tpu.memory_space<vmem>>, vector<1x1x16x64xbf16>
    %502 = vector.shape_cast %501 : vector<1x1x16x64xbf16> to vector<16x64xbf16>
    %c5_472 = arith.constant 5 : index
    %c0_473 = arith.constant 0 : index
    %c0_474 = arith.constant 0 : index
    %503 = vector.load %arg3[%c5_472, %c0_473, %c0_474] : memref<9x64x64xbf16, #tpu.memory_space<vmem>>, vector<1x64x64xbf16>
    %504 = vector.shape_cast %503 : vector<1x64x64xbf16> to vector<64x64xbf16>
    %cst_475 = arith.constant dense<0.000000e+00> : vector<16x64xf32>
    %505 = tpu.matmul %502, %504, %cst_475 {dimension_numbers = #tpu.dot_dimension_numbers<[1], [0], [0], [1], [0, 0, 1, 1], [], []>} : vector<16x64xbf16>, vector<64x64xbf16>, vector<16x64xf32> -> vector<16x64xf32>
    %506 = arith.addf %497, %505 : vector<16x64xf32>
    %c5_i32_476 = arith.constant 5 : i32
    %507 = arith.addi %0, %c5_i32_476 : i32
    %c2_i32_477 = arith.constant 2 : i32
    %508 = arith.addi %507, %c2_i32_477 : i32
    %c0_478 = arith.constant 0 : index
    %509 = arith.index_cast %508 : i32 to index
    %c0_479 = arith.constant 0 : index
    %c0_480 = arith.constant 0 : index
    %510 = vector.load %arg2[%c0_478, %509, %c0_479, %c0_480] : memref<1x18x18x64xbf16, #tpu.memory_space<vmem>>, vector<1x1x16x64xbf16>
    %511 = vector.shape_cast %510 : vector<1x1x16x64xbf16> to vector<16x64xbf16>
    %c6_481 = arith.constant 6 : index
    %c0_482 = arith.constant 0 : index
    %c0_483 = arith.constant 0 : index
    %512 = vector.load %arg3[%c6_481, %c0_482, %c0_483] : memref<9x64x64xbf16, #tpu.memory_space<vmem>>, vector<1x64x64xbf16>
    %513 = vector.shape_cast %512 : vector<1x64x64xbf16> to vector<64x64xbf16>
    %cst_484 = arith.constant dense<0.000000e+00> : vector<16x64xf32>
    %514 = tpu.matmul %511, %513, %cst_484 {dimension_numbers = #tpu.dot_dimension_numbers<[1], [0], [0], [1], [0, 0, 1, 1], [], []>} : vector<16x64xbf16>, vector<64x64xbf16>, vector<16x64xf32> -> vector<16x64xf32>
    %515 = arith.addf %506, %514 : vector<16x64xf32>
    %c5_i32_485 = arith.constant 5 : i32
    %516 = arith.addi %0, %c5_i32_485 : i32
    %c2_i32_486 = arith.constant 2 : i32
    %517 = arith.addi %516, %c2_i32_486 : i32
    %c0_487 = arith.constant 0 : index
    %518 = arith.index_cast %517 : i32 to index
    %c1_488 = arith.constant 1 : index
    %c0_489 = arith.constant 0 : index
    %519 = vector.load %arg2[%c0_487, %518, %c1_488, %c0_489] : memref<1x18x18x64xbf16, #tpu.memory_space<vmem>>, vector<1x1x16x64xbf16>
    %520 = vector.shape_cast %519 : vector<1x1x16x64xbf16> to vector<16x64xbf16>
    %c7_490 = arith.constant 7 : index
    %c0_491 = arith.constant 0 : index
    %c0_492 = arith.constant 0 : index
    %521 = vector.load %arg3[%c7_490, %c0_491, %c0_492] : memref<9x64x64xbf16, #tpu.memory_space<vmem>>, vector<1x64x64xbf16>
    %522 = vector.shape_cast %521 : vector<1x64x64xbf16> to vector<64x64xbf16>
    %cst_493 = arith.constant dense<0.000000e+00> : vector<16x64xf32>
    %523 = tpu.matmul %520, %522, %cst_493 {dimension_numbers = #tpu.dot_dimension_numbers<[1], [0], [0], [1], [0, 0, 1, 1], [], []>} : vector<16x64xbf16>, vector<64x64xbf16>, vector<16x64xf32> -> vector<16x64xf32>
    %524 = arith.addf %515, %523 : vector<16x64xf32>
    %c5_i32_494 = arith.constant 5 : i32
    %525 = arith.addi %0, %c5_i32_494 : i32
    %c2_i32_495 = arith.constant 2 : i32
    %526 = arith.addi %525, %c2_i32_495 : i32
    %c0_496 = arith.constant 0 : index
    %527 = arith.index_cast %526 : i32 to index
    %c2_497 = arith.constant 2 : index
    %c0_498 = arith.constant 0 : index
    %528 = vector.load %arg2[%c0_496, %527, %c2_497, %c0_498] : memref<1x18x18x64xbf16, #tpu.memory_space<vmem>>, vector<1x1x16x64xbf16>
    %529 = vector.shape_cast %528 : vector<1x1x16x64xbf16> to vector<16x64xbf16>
    %c8_499 = arith.constant 8 : index
    %c0_500 = arith.constant 0 : index
    %c0_501 = arith.constant 0 : index
    %530 = vector.load %arg3[%c8_499, %c0_500, %c0_501] : memref<9x64x64xbf16, #tpu.memory_space<vmem>>, vector<1x64x64xbf16>
    %531 = vector.shape_cast %530 : vector<1x64x64xbf16> to vector<64x64xbf16>
    %cst_502 = arith.constant dense<0.000000e+00> : vector<16x64xf32>
    %532 = tpu.matmul %529, %531, %cst_502 {dimension_numbers = #tpu.dot_dimension_numbers<[1], [0], [0], [1], [0, 0, 1, 1], [], []>} : vector<16x64xbf16>, vector<64x64xbf16>, vector<16x64xf32> -> vector<16x64xf32>
    %533 = arith.addf %524, %532 : vector<16x64xf32>
    %534 = vector.broadcast %1 : vector<1x64xf32> to vector<16x64xf32>
    %535 = arith.addf %533, %534 : vector<16x64xf32>
    %cst_503 = arith.constant 0.000000e+00 : f32
    %536 = vector.broadcast %cst_503 : f32 to vector<16x64xf32>
    %537 = arith.maximumf %535, %536 : vector<16x64xf32>
    %538 = arith.truncf %537 : vector<16x64xf32> to vector<16x64xbf16>
    %c0_504 = arith.constant 0 : index
    %c5_505 = arith.constant 5 : index
    %c0_506 = arith.constant 0 : index
    %c0_507 = arith.constant 0 : index
    %539 = vector.load %arg5[%c0_504, %c5_505, %c0_506, %c0_507] : memref<1x8x16x64xbf16, #tpu.memory_space<vmem>>, vector<1x1x16x64xbf16>
    %540 = vector.shape_cast %539 : vector<1x1x16x64xbf16> to vector<16x64xbf16>
    %541 = vector.shape_cast %538 : vector<16x64xbf16> to vector<1x1x16x64xbf16>
    tpu.vector_store %arg5[%c0_504, %c5_505, %c0_506, %c0_507], %541 {strides = array<i32>} : memref<1x8x16x64xbf16, #tpu.memory_space<vmem>>, vector<1x1x16x64xbf16>,
    %cst_508 = arith.constant 0.000000e+00 : f32
    %542 = vector.broadcast %cst_508 : f32 to vector<16x64xf32>
    %c6_i32 = arith.constant 6 : i32
    %543 = arith.addi %0, %c6_i32 : i32
    %c0_i32_509 = arith.constant 0 : i32
    %544 = arith.addi %543, %c0_i32_509 : i32
    %c0_510 = arith.constant 0 : index
    %545 = arith.index_cast %544 : i32 to index
    %c0_511 = arith.constant 0 : index
    %c0_512 = arith.constant 0 : index
    %546 = vector.load %arg2[%c0_510, %545, %c0_511, %c0_512] : memref<1x18x18x64xbf16, #tpu.memory_space<vmem>>, vector<1x1x16x64xbf16>
    %547 = vector.shape_cast %546 : vector<1x1x16x64xbf16> to vector<16x64xbf16>
    %c0_513 = arith.constant 0 : index
    %c0_514 = arith.constant 0 : index
    %c0_515 = arith.constant 0 : index
    %548 = vector.load %arg3[%c0_513, %c0_514, %c0_515] : memref<9x64x64xbf16, #tpu.memory_space<vmem>>, vector<1x64x64xbf16>
    %549 = vector.shape_cast %548 : vector<1x64x64xbf16> to vector<64x64xbf16>
    %cst_516 = arith.constant dense<0.000000e+00> : vector<16x64xf32>
    %550 = tpu.matmul %547, %549, %cst_516 {dimension_numbers = #tpu.dot_dimension_numbers<[1], [0], [0], [1], [0, 0, 1, 1], [], []>} : vector<16x64xbf16>, vector<64x64xbf16>, vector<16x64xf32> -> vector<16x64xf32>
    %551 = arith.addf %542, %550 : vector<16x64xf32>
    %c6_i32_517 = arith.constant 6 : i32
    %552 = arith.addi %0, %c6_i32_517 : i32
    %c0_i32_518 = arith.constant 0 : i32
    %553 = arith.addi %552, %c0_i32_518 : i32
    %c0_519 = arith.constant 0 : index
    %554 = arith.index_cast %553 : i32 to index
    %c1_520 = arith.constant 1 : index
    %c0_521 = arith.constant 0 : index
    %555 = vector.load %arg2[%c0_519, %554, %c1_520, %c0_521] : memref<1x18x18x64xbf16, #tpu.memory_space<vmem>>, vector<1x1x16x64xbf16>
    %556 = vector.shape_cast %555 : vector<1x1x16x64xbf16> to vector<16x64xbf16>
    %c1_522 = arith.constant 1 : index
    %c0_523 = arith.constant 0 : index
    %c0_524 = arith.constant 0 : index
    %557 = vector.load %arg3[%c1_522, %c0_523, %c0_524] : memref<9x64x64xbf16, #tpu.memory_space<vmem>>, vector<1x64x64xbf16>
    %558 = vector.shape_cast %557 : vector<1x64x64xbf16> to vector<64x64xbf16>
    %cst_525 = arith.constant dense<0.000000e+00> : vector<16x64xf32>
    %559 = tpu.matmul %556, %558, %cst_525 {dimension_numbers = #tpu.dot_dimension_numbers<[1], [0], [0], [1], [0, 0, 1, 1], [], []>} : vector<16x64xbf16>, vector<64x64xbf16>, vector<16x64xf32> -> vector<16x64xf32>
    %560 = arith.addf %551, %559 : vector<16x64xf32>
    %c6_i32_526 = arith.constant 6 : i32
    %561 = arith.addi %0, %c6_i32_526 : i32
    %c0_i32_527 = arith.constant 0 : i32
    %562 = arith.addi %561, %c0_i32_527 : i32
    %c0_528 = arith.constant 0 : index
    %563 = arith.index_cast %562 : i32 to index
    %c2_529 = arith.constant 2 : index
    %c0_530 = arith.constant 0 : index
    %564 = vector.load %arg2[%c0_528, %563, %c2_529, %c0_530] : memref<1x18x18x64xbf16, #tpu.memory_space<vmem>>, vector<1x1x16x64xbf16>
    %565 = vector.shape_cast %564 : vector<1x1x16x64xbf16> to vector<16x64xbf16>
    %c2_531 = arith.constant 2 : index
    %c0_532 = arith.constant 0 : index
    %c0_533 = arith.constant 0 : index
    %566 = vector.load %arg3[%c2_531, %c0_532, %c0_533] : memref<9x64x64xbf16, #tpu.memory_space<vmem>>, vector<1x64x64xbf16>
    %567 = vector.shape_cast %566 : vector<1x64x64xbf16> to vector<64x64xbf16>
    %cst_534 = arith.constant dense<0.000000e+00> : vector<16x64xf32>
    %568 = tpu.matmul %565, %567, %cst_534 {dimension_numbers = #tpu.dot_dimension_numbers<[1], [0], [0], [1], [0, 0, 1, 1], [], []>} : vector<16x64xbf16>, vector<64x64xbf16>, vector<16x64xf32> -> vector<16x64xf32>
    %569 = arith.addf %560, %568 : vector<16x64xf32>
    %c6_i32_535 = arith.constant 6 : i32
    %570 = arith.addi %0, %c6_i32_535 : i32
    %c1_i32_536 = arith.constant 1 : i32
    %571 = arith.addi %570, %c1_i32_536 : i32
    %c0_537 = arith.constant 0 : index
    %572 = arith.index_cast %571 : i32 to index
    %c0_538 = arith.constant 0 : index
    %c0_539 = arith.constant 0 : index
    %573 = vector.load %arg2[%c0_537, %572, %c0_538, %c0_539] : memref<1x18x18x64xbf16, #tpu.memory_space<vmem>>, vector<1x1x16x64xbf16>
    %574 = vector.shape_cast %573 : vector<1x1x16x64xbf16> to vector<16x64xbf16>
    %c3_540 = arith.constant 3 : index
    %c0_541 = arith.constant 0 : index
    %c0_542 = arith.constant 0 : index
    %575 = vector.load %arg3[%c3_540, %c0_541, %c0_542] : memref<9x64x64xbf16, #tpu.memory_space<vmem>>, vector<1x64x64xbf16>
    %576 = vector.shape_cast %575 : vector<1x64x64xbf16> to vector<64x64xbf16>
    %cst_543 = arith.constant dense<0.000000e+00> : vector<16x64xf32>
    %577 = tpu.matmul %574, %576, %cst_543 {dimension_numbers = #tpu.dot_dimension_numbers<[1], [0], [0], [1], [0, 0, 1, 1], [], []>} : vector<16x64xbf16>, vector<64x64xbf16>, vector<16x64xf32> -> vector<16x64xf32>
    %578 = arith.addf %569, %577 : vector<16x64xf32>
    %c6_i32_544 = arith.constant 6 : i32
    %579 = arith.addi %0, %c6_i32_544 : i32
    %c1_i32_545 = arith.constant 1 : i32
    %580 = arith.addi %579, %c1_i32_545 : i32
    %c0_546 = arith.constant 0 : index
    %581 = arith.index_cast %580 : i32 to index
    %c1_547 = arith.constant 1 : index
    %c0_548 = arith.constant 0 : index
    %582 = vector.load %arg2[%c0_546, %581, %c1_547, %c0_548] : memref<1x18x18x64xbf16, #tpu.memory_space<vmem>>, vector<1x1x16x64xbf16>
    %583 = vector.shape_cast %582 : vector<1x1x16x64xbf16> to vector<16x64xbf16>
    %c4_549 = arith.constant 4 : index
    %c0_550 = arith.constant 0 : index
    %c0_551 = arith.constant 0 : index
    %584 = vector.load %arg3[%c4_549, %c0_550, %c0_551] : memref<9x64x64xbf16, #tpu.memory_space<vmem>>, vector<1x64x64xbf16>
    %585 = vector.shape_cast %584 : vector<1x64x64xbf16> to vector<64x64xbf16>
    %cst_552 = arith.constant dense<0.000000e+00> : vector<16x64xf32>
    %586 = tpu.matmul %583, %585, %cst_552 {dimension_numbers = #tpu.dot_dimension_numbers<[1], [0], [0], [1], [0, 0, 1, 1], [], []>} : vector<16x64xbf16>, vector<64x64xbf16>, vector<16x64xf32> -> vector<16x64xf32>
    %587 = arith.addf %578, %586 : vector<16x64xf32>
    %c6_i32_553 = arith.constant 6 : i32
    %588 = arith.addi %0, %c6_i32_553 : i32
    %c1_i32_554 = arith.constant 1 : i32
    %589 = arith.addi %588, %c1_i32_554 : i32
    %c0_555 = arith.constant 0 : index
    %590 = arith.index_cast %589 : i32 to index
    %c2_556 = arith.constant 2 : index
    %c0_557 = arith.constant 0 : index
    %591 = vector.load %arg2[%c0_555, %590, %c2_556, %c0_557] : memref<1x18x18x64xbf16, #tpu.memory_space<vmem>>, vector<1x1x16x64xbf16>
    %592 = vector.shape_cast %591 : vector<1x1x16x64xbf16> to vector<16x64xbf16>
    %c5_558 = arith.constant 5 : index
    %c0_559 = arith.constant 0 : index
    %c0_560 = arith.constant 0 : index
    %593 = vector.load %arg3[%c5_558, %c0_559, %c0_560] : memref<9x64x64xbf16, #tpu.memory_space<vmem>>, vector<1x64x64xbf16>
    %594 = vector.shape_cast %593 : vector<1x64x64xbf16> to vector<64x64xbf16>
    %cst_561 = arith.constant dense<0.000000e+00> : vector<16x64xf32>
    %595 = tpu.matmul %592, %594, %cst_561 {dimension_numbers = #tpu.dot_dimension_numbers<[1], [0], [0], [1], [0, 0, 1, 1], [], []>} : vector<16x64xbf16>, vector<64x64xbf16>, vector<16x64xf32> -> vector<16x64xf32>
    %596 = arith.addf %587, %595 : vector<16x64xf32>
    %c6_i32_562 = arith.constant 6 : i32
    %597 = arith.addi %0, %c6_i32_562 : i32
    %c2_i32_563 = arith.constant 2 : i32
    %598 = arith.addi %597, %c2_i32_563 : i32
    %c0_564 = arith.constant 0 : index
    %599 = arith.index_cast %598 : i32 to index
    %c0_565 = arith.constant 0 : index
    %c0_566 = arith.constant 0 : index
    %600 = vector.load %arg2[%c0_564, %599, %c0_565, %c0_566] : memref<1x18x18x64xbf16, #tpu.memory_space<vmem>>, vector<1x1x16x64xbf16>
    %601 = vector.shape_cast %600 : vector<1x1x16x64xbf16> to vector<16x64xbf16>
    %c6_567 = arith.constant 6 : index
    %c0_568 = arith.constant 0 : index
    %c0_569 = arith.constant 0 : index
    %602 = vector.load %arg3[%c6_567, %c0_568, %c0_569] : memref<9x64x64xbf16, #tpu.memory_space<vmem>>, vector<1x64x64xbf16>
    %603 = vector.shape_cast %602 : vector<1x64x64xbf16> to vector<64x64xbf16>
    %cst_570 = arith.constant dense<0.000000e+00> : vector<16x64xf32>
    %604 = tpu.matmul %601, %603, %cst_570 {dimension_numbers = #tpu.dot_dimension_numbers<[1], [0], [0], [1], [0, 0, 1, 1], [], []>} : vector<16x64xbf16>, vector<64x64xbf16>, vector<16x64xf32> -> vector<16x64xf32>
    %605 = arith.addf %596, %604 : vector<16x64xf32>
    %c6_i32_571 = arith.constant 6 : i32
    %606 = arith.addi %0, %c6_i32_571 : i32
    %c2_i32_572 = arith.constant 2 : i32
    %607 = arith.addi %606, %c2_i32_572 : i32
    %c0_573 = arith.constant 0 : index
    %608 = arith.index_cast %607 : i32 to index
    %c1_574 = arith.constant 1 : index
    %c0_575 = arith.constant 0 : index
    %609 = vector.load %arg2[%c0_573, %608, %c1_574, %c0_575] : memref<1x18x18x64xbf16, #tpu.memory_space<vmem>>, vector<1x1x16x64xbf16>
    %610 = vector.shape_cast %609 : vector<1x1x16x64xbf16> to vector<16x64xbf16>
    %c7_576 = arith.constant 7 : index
    %c0_577 = arith.constant 0 : index
    %c0_578 = arith.constant 0 : index
    %611 = vector.load %arg3[%c7_576, %c0_577, %c0_578] : memref<9x64x64xbf16, #tpu.memory_space<vmem>>, vector<1x64x64xbf16>
    %612 = vector.shape_cast %611 : vector<1x64x64xbf16> to vector<64x64xbf16>
    %cst_579 = arith.constant dense<0.000000e+00> : vector<16x64xf32>
    %613 = tpu.matmul %610, %612, %cst_579 {dimension_numbers = #tpu.dot_dimension_numbers<[1], [0], [0], [1], [0, 0, 1, 1], [], []>} : vector<16x64xbf16>, vector<64x64xbf16>, vector<16x64xf32> -> vector<16x64xf32>
    %614 = arith.addf %605, %613 : vector<16x64xf32>
    %c6_i32_580 = arith.constant 6 : i32
    %615 = arith.addi %0, %c6_i32_580 : i32
    %c2_i32_581 = arith.constant 2 : i32
    %616 = arith.addi %615, %c2_i32_581 : i32
    %c0_582 = arith.constant 0 : index
    %617 = arith.index_cast %616 : i32 to index
    %c2_583 = arith.constant 2 : index
    %c0_584 = arith.constant 0 : index
    %618 = vector.load %arg2[%c0_582, %617, %c2_583, %c0_584] : memref<1x18x18x64xbf16, #tpu.memory_space<vmem>>, vector<1x1x16x64xbf16>
    %619 = vector.shape_cast %618 : vector<1x1x16x64xbf16> to vector<16x64xbf16>
    %c8_585 = arith.constant 8 : index
    %c0_586 = arith.constant 0 : index
    %c0_587 = arith.constant 0 : index
    %620 = vector.load %arg3[%c8_585, %c0_586, %c0_587] : memref<9x64x64xbf16, #tpu.memory_space<vmem>>, vector<1x64x64xbf16>
    %621 = vector.shape_cast %620 : vector<1x64x64xbf16> to vector<64x64xbf16>
    %cst_588 = arith.constant dense<0.000000e+00> : vector<16x64xf32>
    %622 = tpu.matmul %619, %621, %cst_588 {dimension_numbers = #tpu.dot_dimension_numbers<[1], [0], [0], [1], [0, 0, 1, 1], [], []>} : vector<16x64xbf16>, vector<64x64xbf16>, vector<16x64xf32> -> vector<16x64xf32>
    %623 = arith.addf %614, %622 : vector<16x64xf32>
    %624 = vector.broadcast %1 : vector<1x64xf32> to vector<16x64xf32>
    %625 = arith.addf %623, %624 : vector<16x64xf32>
    %cst_589 = arith.constant 0.000000e+00 : f32
    %626 = vector.broadcast %cst_589 : f32 to vector<16x64xf32>
    %627 = arith.maximumf %625, %626 : vector<16x64xf32>
    %628 = arith.truncf %627 : vector<16x64xf32> to vector<16x64xbf16>
    %c0_590 = arith.constant 0 : index
    %c6_591 = arith.constant 6 : index
    %c0_592 = arith.constant 0 : index
    %c0_593 = arith.constant 0 : index
    %629 = vector.load %arg5[%c0_590, %c6_591, %c0_592, %c0_593] : memref<1x8x16x64xbf16, #tpu.memory_space<vmem>>, vector<1x1x16x64xbf16>
    %630 = vector.shape_cast %629 : vector<1x1x16x64xbf16> to vector<16x64xbf16>
    %631 = vector.shape_cast %628 : vector<16x64xbf16> to vector<1x1x16x64xbf16>
    tpu.vector_store %arg5[%c0_590, %c6_591, %c0_592, %c0_593], %631 {strides = array<i32>} : memref<1x8x16x64xbf16, #tpu.memory_space<vmem>>, vector<1x1x16x64xbf16>,
    %cst_594 = arith.constant 0.000000e+00 : f32
    %632 = vector.broadcast %cst_594 : f32 to vector<16x64xf32>
    %c7_i32 = arith.constant 7 : i32
    %633 = arith.addi %0, %c7_i32 : i32
    %c0_i32_595 = arith.constant 0 : i32
    %634 = arith.addi %633, %c0_i32_595 : i32
    %c0_596 = arith.constant 0 : index
    %635 = arith.index_cast %634 : i32 to index
    %c0_597 = arith.constant 0 : index
    %c0_598 = arith.constant 0 : index
    %636 = vector.load %arg2[%c0_596, %635, %c0_597, %c0_598] : memref<1x18x18x64xbf16, #tpu.memory_space<vmem>>, vector<1x1x16x64xbf16>
    %637 = vector.shape_cast %636 : vector<1x1x16x64xbf16> to vector<16x64xbf16>
    %c0_599 = arith.constant 0 : index
    %c0_600 = arith.constant 0 : index
    %c0_601 = arith.constant 0 : index
    %638 = vector.load %arg3[%c0_599, %c0_600, %c0_601] : memref<9x64x64xbf16, #tpu.memory_space<vmem>>, vector<1x64x64xbf16>
    %639 = vector.shape_cast %638 : vector<1x64x64xbf16> to vector<64x64xbf16>
    %cst_602 = arith.constant dense<0.000000e+00> : vector<16x64xf32>
    %640 = tpu.matmul %637, %639, %cst_602 {dimension_numbers = #tpu.dot_dimension_numbers<[1], [0], [0], [1], [0, 0, 1, 1], [], []>} : vector<16x64xbf16>, vector<64x64xbf16>, vector<16x64xf32> -> vector<16x64xf32>
    %641 = arith.addf %632, %640 : vector<16x64xf32>
    %c7_i32_603 = arith.constant 7 : i32
    %642 = arith.addi %0, %c7_i32_603 : i32
    %c0_i32_604 = arith.constant 0 : i32
    %643 = arith.addi %642, %c0_i32_604 : i32
    %c0_605 = arith.constant 0 : index
    %644 = arith.index_cast %643 : i32 to index
    %c1_606 = arith.constant 1 : index
    %c0_607 = arith.constant 0 : index
    %645 = vector.load %arg2[%c0_605, %644, %c1_606, %c0_607] : memref<1x18x18x64xbf16, #tpu.memory_space<vmem>>, vector<1x1x16x64xbf16>
    %646 = vector.shape_cast %645 : vector<1x1x16x64xbf16> to vector<16x64xbf16>
    %c1_608 = arith.constant 1 : index
    %c0_609 = arith.constant 0 : index
    %c0_610 = arith.constant 0 : index
    %647 = vector.load %arg3[%c1_608, %c0_609, %c0_610] : memref<9x64x64xbf16, #tpu.memory_space<vmem>>, vector<1x64x64xbf16>
    %648 = vector.shape_cast %647 : vector<1x64x64xbf16> to vector<64x64xbf16>
    %cst_611 = arith.constant dense<0.000000e+00> : vector<16x64xf32>
    %649 = tpu.matmul %646, %648, %cst_611 {dimension_numbers = #tpu.dot_dimension_numbers<[1], [0], [0], [1], [0, 0, 1, 1], [], []>} : vector<16x64xbf16>, vector<64x64xbf16>, vector<16x64xf32> -> vector<16x64xf32>
    %650 = arith.addf %641, %649 : vector<16x64xf32>
    %c7_i32_612 = arith.constant 7 : i32
    %651 = arith.addi %0, %c7_i32_612 : i32
    %c0_i32_613 = arith.constant 0 : i32
    %652 = arith.addi %651, %c0_i32_613 : i32
    %c0_614 = arith.constant 0 : index
    %653 = arith.index_cast %652 : i32 to index
    %c2_615 = arith.constant 2 : index
    %c0_616 = arith.constant 0 : index
    %654 = vector.load %arg2[%c0_614, %653, %c2_615, %c0_616] : memref<1x18x18x64xbf16, #tpu.memory_space<vmem>>, vector<1x1x16x64xbf16>
    %655 = vector.shape_cast %654 : vector<1x1x16x64xbf16> to vector<16x64xbf16>
    %c2_617 = arith.constant 2 : index
    %c0_618 = arith.constant 0 : index
    %c0_619 = arith.constant 0 : index
    %656 = vector.load %arg3[%c2_617, %c0_618, %c0_619] : memref<9x64x64xbf16, #tpu.memory_space<vmem>>, vector<1x64x64xbf16>
    %657 = vector.shape_cast %656 : vector<1x64x64xbf16> to vector<64x64xbf16>
    %cst_620 = arith.constant dense<0.000000e+00> : vector<16x64xf32>
    %658 = tpu.matmul %655, %657, %cst_620 {dimension_numbers = #tpu.dot_dimension_numbers<[1], [0], [0], [1], [0, 0, 1, 1], [], []>} : vector<16x64xbf16>, vector<64x64xbf16>, vector<16x64xf32> -> vector<16x64xf32>
    %659 = arith.addf %650, %658 : vector<16x64xf32>
    %c7_i32_621 = arith.constant 7 : i32
    %660 = arith.addi %0, %c7_i32_621 : i32
    %c1_i32_622 = arith.constant 1 : i32
    %661 = arith.addi %660, %c1_i32_622 : i32
    %c0_623 = arith.constant 0 : index
    %662 = arith.index_cast %661 : i32 to index
    %c0_624 = arith.constant 0 : index
    %c0_625 = arith.constant 0 : index
    %663 = vector.load %arg2[%c0_623, %662, %c0_624, %c0_625] : memref<1x18x18x64xbf16, #tpu.memory_space<vmem>>, vector<1x1x16x64xbf16>
    %664 = vector.shape_cast %663 : vector<1x1x16x64xbf16> to vector<16x64xbf16>
    %c3_626 = arith.constant 3 : index
    %c0_627 = arith.constant 0 : index
    %c0_628 = arith.constant 0 : index
    %665 = vector.load %arg3[%c3_626, %c0_627, %c0_628] : memref<9x64x64xbf16, #tpu.memory_space<vmem>>, vector<1x64x64xbf16>
    %666 = vector.shape_cast %665 : vector<1x64x64xbf16> to vector<64x64xbf16>
    %cst_629 = arith.constant dense<0.000000e+00> : vector<16x64xf32>
    %667 = tpu.matmul %664, %666, %cst_629 {dimension_numbers = #tpu.dot_dimension_numbers<[1], [0], [0], [1], [0, 0, 1, 1], [], []>} : vector<16x64xbf16>, vector<64x64xbf16>, vector<16x64xf32> -> vector<16x64xf32>
    %668 = arith.addf %659, %667 : vector<16x64xf32>
    %c7_i32_630 = arith.constant 7 : i32
    %669 = arith.addi %0, %c7_i32_630 : i32
    %c1_i32_631 = arith.constant 1 : i32
    %670 = arith.addi %669, %c1_i32_631 : i32
    %c0_632 = arith.constant 0 : index
    %671 = arith.index_cast %670 : i32 to index
    %c1_633 = arith.constant 1 : index
    %c0_634 = arith.constant 0 : index
    %672 = vector.load %arg2[%c0_632, %671, %c1_633, %c0_634] : memref<1x18x18x64xbf16, #tpu.memory_space<vmem>>, vector<1x1x16x64xbf16>
    %673 = vector.shape_cast %672 : vector<1x1x16x64xbf16> to vector<16x64xbf16>
    %c4_635 = arith.constant 4 : index
    %c0_636 = arith.constant 0 : index
    %c0_637 = arith.constant 0 : index
    %674 = vector.load %arg3[%c4_635, %c0_636, %c0_637] : memref<9x64x64xbf16, #tpu.memory_space<vmem>>, vector<1x64x64xbf16>
    %675 = vector.shape_cast %674 : vector<1x64x64xbf16> to vector<64x64xbf16>
    %cst_638 = arith.constant dense<0.000000e+00> : vector<16x64xf32>
    %676 = tpu.matmul %673, %675, %cst_638 {dimension_numbers = #tpu.dot_dimension_numbers<[1], [0], [0], [1], [0, 0, 1, 1], [], []>} : vector<16x64xbf16>, vector<64x64xbf16>, vector<16x64xf32> -> vector<16x64xf32>
    %677 = arith.addf %668, %676 : vector<16x64xf32>
    %c7_i32_639 = arith.constant 7 : i32
    %678 = arith.addi %0, %c7_i32_639 : i32
    %c1_i32_640 = arith.constant 1 : i32
    %679 = arith.addi %678, %c1_i32_640 : i32
    %c0_641 = arith.constant 0 : index
    %680 = arith.index_cast %679 : i32 to index
    %c2_642 = arith.constant 2 : index
    %c0_643 = arith.constant 0 : index
    %681 = vector.load %arg2[%c0_641, %680, %c2_642, %c0_643] : memref<1x18x18x64xbf16, #tpu.memory_space<vmem>>, vector<1x1x16x64xbf16>
    %682 = vector.shape_cast %681 : vector<1x1x16x64xbf16> to vector<16x64xbf16>
    %c5_644 = arith.constant 5 : index
    %c0_645 = arith.constant 0 : index
    %c0_646 = arith.constant 0 : index
    %683 = vector.load %arg3[%c5_644, %c0_645, %c0_646] : memref<9x64x64xbf16, #tpu.memory_space<vmem>>, vector<1x64x64xbf16>
    %684 = vector.shape_cast %683 : vector<1x64x64xbf16> to vector<64x64xbf16>
    %cst_647 = arith.constant dense<0.000000e+00> : vector<16x64xf32>
    %685 = tpu.matmul %682, %684, %cst_647 {dimension_numbers = #tpu.dot_dimension_numbers<[1], [0], [0], [1], [0, 0, 1, 1], [], []>} : vector<16x64xbf16>, vector<64x64xbf16>, vector<16x64xf32> -> vector<16x64xf32>
    %686 = arith.addf %677, %685 : vector<16x64xf32>
    %c7_i32_648 = arith.constant 7 : i32
    %687 = arith.addi %0, %c7_i32_648 : i32
    %c2_i32_649 = arith.constant 2 : i32
    %688 = arith.addi %687, %c2_i32_649 : i32
    %c0_650 = arith.constant 0 : index
    %689 = arith.index_cast %688 : i32 to index
    %c0_651 = arith.constant 0 : index
    %c0_652 = arith.constant 0 : index
    %690 = vector.load %arg2[%c0_650, %689, %c0_651, %c0_652] : memref<1x18x18x64xbf16, #tpu.memory_space<vmem>>, vector<1x1x16x64xbf16>
    %691 = vector.shape_cast %690 : vector<1x1x16x64xbf16> to vector<16x64xbf16>
    %c6_653 = arith.constant 6 : index
    %c0_654 = arith.constant 0 : index
    %c0_655 = arith.constant 0 : index
    %692 = vector.load %arg3[%c6_653, %c0_654, %c0_655] : memref<9x64x64xbf16, #tpu.memory_space<vmem>>, vector<1x64x64xbf16>
    %693 = vector.shape_cast %692 : vector<1x64x64xbf16> to vector<64x64xbf16>
    %cst_656 = arith.constant dense<0.000000e+00> : vector<16x64xf32>
    %694 = tpu.matmul %691, %693, %cst_656 {dimension_numbers = #tpu.dot_dimension_numbers<[1], [0], [0], [1], [0, 0, 1, 1], [], []>} : vector<16x64xbf16>, vector<64x64xbf16>, vector<16x64xf32> -> vector<16x64xf32>
    %695 = arith.addf %686, %694 : vector<16x64xf32>
    %c7_i32_657 = arith.constant 7 : i32
    %696 = arith.addi %0, %c7_i32_657 : i32
    %c2_i32_658 = arith.constant 2 : i32
    %697 = arith.addi %696, %c2_i32_658 : i32
    %c0_659 = arith.constant 0 : index
    %698 = arith.index_cast %697 : i32 to index
    %c1_660 = arith.constant 1 : index
    %c0_661 = arith.constant 0 : index
    %699 = vector.load %arg2[%c0_659, %698, %c1_660, %c0_661] : memref<1x18x18x64xbf16, #tpu.memory_space<vmem>>, vector<1x1x16x64xbf16>
    %700 = vector.shape_cast %699 : vector<1x1x16x64xbf16> to vector<16x64xbf16>
    %c7_662 = arith.constant 7 : index
    %c0_663 = arith.constant 0 : index
    %c0_664 = arith.constant 0 : index
    %701 = vector.load %arg3[%c7_662, %c0_663, %c0_664] : memref<9x64x64xbf16, #tpu.memory_space<vmem>>, vector<1x64x64xbf16>
    %702 = vector.shape_cast %701 : vector<1x64x64xbf16> to vector<64x64xbf16>
    %cst_665 = arith.constant dense<0.000000e+00> : vector<16x64xf32>
    %703 = tpu.matmul %700, %702, %cst_665 {dimension_numbers = #tpu.dot_dimension_numbers<[1], [0], [0], [1], [0, 0, 1, 1], [], []>} : vector<16x64xbf16>, vector<64x64xbf16>, vector<16x64xf32> -> vector<16x64xf32>
    %704 = arith.addf %695, %703 : vector<16x64xf32>
    %c7_i32_666 = arith.constant 7 : i32
    %705 = arith.addi %0, %c7_i32_666 : i32
    %c2_i32_667 = arith.constant 2 : i32
    %706 = arith.addi %705, %c2_i32_667 : i32
    %c0_668 = arith.constant 0 : index
    %707 = arith.index_cast %706 : i32 to index
    %c2_669 = arith.constant 2 : index
    %c0_670 = arith.constant 0 : index
    %708 = vector.load %arg2[%c0_668, %707, %c2_669, %c0_670] : memref<1x18x18x64xbf16, #tpu.memory_space<vmem>>, vector<1x1x16x64xbf16>
    %709 = vector.shape_cast %708 : vector<1x1x16x64xbf16> to vector<16x64xbf16>
    %c8_671 = arith.constant 8 : index
    %c0_672 = arith.constant 0 : index
    %c0_673 = arith.constant 0 : index
    %710 = vector.load %arg3[%c8_671, %c0_672, %c0_673] : memref<9x64x64xbf16, #tpu.memory_space<vmem>>, vector<1x64x64xbf16>
    %711 = vector.shape_cast %710 : vector<1x64x64xbf16> to vector<64x64xbf16>
    %cst_674 = arith.constant dense<0.000000e+00> : vector<16x64xf32>
    %712 = tpu.matmul %709, %711, %cst_674 {dimension_numbers = #tpu.dot_dimension_numbers<[1], [0], [0], [1], [0, 0, 1, 1], [], []>} : vector<16x64xbf16>, vector<64x64xbf16>, vector<16x64xf32> -> vector<16x64xf32>
    %713 = arith.addf %704, %712 : vector<16x64xf32>
    %714 = vector.broadcast %1 : vector<1x64xf32> to vector<16x64xf32>
    %715 = arith.addf %713, %714 : vector<16x64xf32>
    %cst_675 = arith.constant 0.000000e+00 : f32
    %716 = vector.broadcast %cst_675 : f32 to vector<16x64xf32>
    %717 = arith.maximumf %715, %716 : vector<16x64xf32>
    %718 = arith.truncf %717 : vector<16x64xf32> to vector<16x64xbf16>
    %c0_676 = arith.constant 0 : index
    %c7_677 = arith.constant 7 : index
    %c0_678 = arith.constant 0 : index
    %c0_679 = arith.constant 0 : index
    %719 = vector.load %arg5[%c0_676, %c7_677, %c0_678, %c0_679] : memref<1x8x16x64xbf16, #tpu.memory_space<vmem>>, vector<1x1x16x64xbf16>
    %720 = vector.shape_cast %719 : vector<1x1x16x64xbf16> to vector<16x64xbf16>
    %721 = vector.shape_cast %718 : vector<16x64xbf16> to vector<1x1x16x64xbf16>
    tpu.vector_store %arg5[%c0_676, %c7_677, %c0_678, %c0_679], %721 {strides = array<i32>} : memref<1x8x16x64xbf16, #tpu.memory_space<vmem>>, vector<1x1x16x64xbf16>,
    return
  }
  func.func @transform_0(%arg0: i32, %arg1: i32) -> (i32, i32, i32, i32) {
    %c0_i32 = arith.constant 0 : i32
    %c0_i32_0 = arith.constant 0 : i32
    %c0_i32_1 = arith.constant 0 : i32
    %c0_i32_2 = arith.constant 0 : i32
    return %arg0, %c0_i32, %c0_i32_0, %c0_i32_1 : i32, i32, i32, i32
  }
  func.func @transform_1(%arg0: i32, %arg1: i32) -> (i32, i32, i32) {
    %c0_i32 = arith.constant 0 : i32
    %c0_i32_0 = arith.constant 0 : i32
    %c0_i32_1 = arith.constant 0 : i32
    %c0_i32_2 = arith.constant 0 : i32
    return %c0_i32, %c0_i32_0, %c0_i32_1 : i32, i32, i32
  }
  func.func @transform_2(%arg0: i32, %arg1: i32) -> (i32, i32) {
    %c0_i32 = arith.constant 0 : i32
    %c0_i32_0 = arith.constant 0 : i32
    %c0_i32_1 = arith.constant 0 : i32
    return %c0_i32, %c0_i32_0 : i32, i32
  }
  func.func @transform_3(%arg0: i32, %arg1: i32) -> (i32, i32, i32, i32) {
    %c0_i32 = arith.constant 0 : i32
    %c0_i32_0 = arith.constant 0 : i32
    %c0_i32_1 = arith.constant 0 : i32
    return %arg0, %arg1, %c0_i32, %c0_i32_0 : i32, i32, i32, i32
  }
}

</mosaic_0001>

<bundles_post_ra>
// kernel: tpu_custom_call.1
= control target key start
LH: loop header
LB: loop body
LE: loop exit
PB: predicated region body
PF: predicated region fallthrough
CT: control target
= control target key end

     0   :  { %8 = vsyncpa [#allocation3], 0  ;;  %s11758_s0 = inlined_call_operand.vmem [shape: bf16[2,18,18,64], index: 0, kind: input, shape index: {}]   ;;  %s11759_s1 = inlined_call_operand.vmem [shape: bf16[9,64,64], index: 1, kind: input, shape index: {}]   ;;  %s11760_s2 = inlined_call_operand.vmem [shape: f32[1,64], index: 2, kind: input, shape index: {}]   ;;  %s11761_s3 = inlined_call_operand.hbm [shape: bf16[2,16,16,64], index: 3, kind: output, shape index: {}]  }
   0x1   :  { %10 = vsyncpa [#allocation3 + $0x1], 0  ;;  %s9867_s12 = smov 0   ;;  %s9869_s13 = smov 0  }
   0x2   :  { %s9871_s14 = smov 0   ;;  %s9873_s15 = smov 0  }
   0x3   :  { %s9875_s16 = smov 0   ;;  %s9877_s17 = smov 0  }
   0x4   :  { %s9879_s18 = smov 0   ;;  %s9881_s19 = smov 0  }
   0x5 LB: > { %s6902_s20 = sadd.s32 4294967295, %s9840_s19   ;;  %s6903_s21 = sadd.s32 4294967294, %s9840_s19   ;;  %s9840_s19 = sphi %s9881_s19, %s16_s19   ;;  %s9836_s18 = sphi %s9879_s18, %s11770_s18   ;;  %s9832_s17 = sphi %s9877_s17, %s11769_s17   ;;  %s9828_s16 = sphi %s9875_s16, %s11768_s16   ;;  %s9824_s15 = sphi %s9873_s15, %s11767_s15   ;;  %s9820_s14 = sphi %s9871_s14, %s11766_s14   ;;  %s9816_s13 = sphi %s9869_s13, %s11765_s13   ;;  %s9812_s12 = sphi %s9867_s12, %s11764_s12  }
   0x6   : > { %s25_s22 = sadd.s32 1, %s9832_s17  ;;  %s28_s23 = sadd.s32 1, %s9836_s18 }
   0x7   : > { %p26_p0 = scmp.ge.s32.totalorder %s25_s22, 2  ;;  %p115_p1 = scmp.ne.s32.totalorder %s9820_s14, %s9816_s13 }
   0x8   : > { %p116_p2 = scmp.eq.s32.totalorder %s6902_s20, 3  ;;  %p121_p5 = scmp.ne.s32.totalorder %s9816_s13, %s9812_s12 }
   0x9   : > { %s11772_s22 = smov (%p26_p0, %s25_s22), 0  ;;  %s11774_s23 = smov (!%p26_p0, %s28_s23), %s9836_s18 }
   0xa   : > { %s101_s24 = ssub.s32 %s9832_s17, %s11772_s22  ;;  %p9918_p3 = por %p116_p2, %p115_p1 }
   0xb   : > { %p30_p4 = scmp.ge.s32.totalorder %s11774_s23, 2  ;;  %p122_p6 = scmp.eq.s32.totalorder %s6903_s21, 3 }
   0xc   : > { %p6906_p7 = scmp.ge.s32.totalorder %s9840_s19, 1  ;;  %p154_p9 = scmp.lt.s32.totalorder %s9840_s19, 5 }
   0xd   : > { %s11776_s23 = smov (%p30_p4, %s11774_s23), 0  ;;  %p9927_p8 = por %p122_p6, %p121_p5 }
   0xe   : > { %s100_s27 = ssub.s32 %s9836_s18, %s11776_s23  ;;  %s105_s28 = sadd.s32 1, %s9820_s14 }
   0xf   : > { %s102_s29 = sor.u32 %s101_s24, %s100_s27  ;;  %p155_p10 = pnand %p6906_p7, %p154_p9 }
  0x10   : > { %p103_p11 = scmp.eq.s32.totalorder %s102_s29, 0  ;;  %v9370_v0 = vld [vmem:[%s11759_s1 + $0x20] sm:$0xff] (!%p155_p10)   ;;  %v9842_v1 = vmov (!%p155_p10), 0.0   ;;  %v9372_v3 = vld [vmem:[%s11759_s1 + $0x28] sm:$0xff] (!%p155_p10)   ;;  %vm9843_vm0 = vmmov (!%p155_p10), 0   ;;  %p178_p12 = scmp.lt.s32.totalorder (!%p155_p10), %s9828_s16, 1 }
  0x11   : > { %158 = sbr.rel (%p155_p10) target bundleno = 839 (0x347), region = 32  ;;  %8430 = vmatprep.subr.bf16.mxu0 (!%p155_p10), %v9842_v1  ;;  %8442 = vmatprep.subr.bf16.mxu1 (!%p155_p10), %v9842_v1  ;;  %v9371_v2 = vld [vmem:[%s11759_s1] sm:$0xff] (!%p155_p10)   ;;  %v9373_v4 = vld [vmem:[%s11759_s1 + $0x8] sm:$0xff] (!%p155_p10)   ;;  %v9374_v5 = vld [vmem:[%s11759_s1 + $0x30] sm:$0xff] (!%p155_p10)   ;;  %vm255_vm1 = vcmask (!%p155_p10), 523264   ;;  %vm380_vm3 = vcmask (!%p155_p10), 1046528  }
  0x12   : > { %s9936_s30 = scalar_select %p103_p11, %s9820_s14, %s105_s28  }
  0x13   : > { %8431 = vmatpush3.bf16.msra.mxu0 (!%p155_p10), %v9370_v0  ;;  %8438 = vmatprep.mubr.msk.bf16.mxu0 (!%p155_p10), %vm9843_vm0, %v9842_v1  ;;  %s8052_s21 = smul.u32 (!%p155_p10), 96, %s9824_s15  ;;  %v9375_v6 = vld [vmem:[%s11759_s1 + $0x10] sm:$0xff] (!%p155_p10)   ;;  %v9376_v7 = vld [vmem:[%s11759_s1 + $0x38] sm:$0xff] (!%p155_p10)   ;;  %v9381_v16 = vld [vmem:[%s11759_s1 + $0x60] sm:$0xff] (!%p155_p10)   ;;  %vm218_vm2 = vsmask.f32 (!%p155_p10), 7424 }
  0x14   : > { %8443 = vmatpush3.bf16.msra.mxu1 (!%p155_p10), %v9371_v2  ;;  %8432 = vmatprep.subr.bf16.mxu0 (!%p155_p10), %v9842_v1  ;;  %v9377_v10 = vld [vmem:[%s11759_s1 + $0x18] sm:$0xff] (!%p155_p10)   ;;  %v9380_v20 = vld [vmem:[%s11759_s1 + $0x40] sm:$0xff] (!%p155_p10)   ;;  %v9383_v22 = vld [vmem:[%s11759_s1 + $0x68] sm:$0xff] (!%p155_p10)   ;;  %vm1028_vm4 = vcmask (!%p155_p10), 519168   ;;  %s8069_s6 = sshll.u32 (!%p155_p10), %s9824_s15, 4  ;;  %s9844_s27 = smov (!%p155_p10), [#allocation2]  }
  0x15   : > { %8444 = vmatprep.subr.bf16.mxu1 (!%p155_p10), %v9842_v1  ;;  %8450 = vmatprep.mubr.msk.bf16.mxu1 (!%p155_p10), %vm9843_vm0, %v9842_v1  ;;  %v9382_v23 = vld [vmem:[%s11759_s1 + $0x48] sm:$0xff] (!%p155_p10)   ;;  %v9385_v25 = vld [vmem:[%s11759_s1 + $0x70] sm:$0xff] (!%p155_p10)   ;;  %v9387_v28 = vld [vmem:[%s11759_s1 + $0x78] sm:$0xff] (!%p155_p10)   ;;  %s9750_s29 = sshll.u32 (!%p155_p10), %s9844_s27, 4  ;;  %s9751_s29 = int_to_ptr.vmem [resolvable:$false] %s9750_s29 }
  0x16   : > { %v9384_v27 = vld [vmem:[%s11759_s1 + $0x50] sm:$0xff] (!%p155_p10)   ;;  %v9386_v29 = vld [vmem:[%s11759_s1 + $0x58] sm:$0xff] (!%p155_p10)   ;;  %v9391_v35 = vld [vmem:[%s11759_s1 + $0xa0] sm:$0xff] (!%p155_p10)   ;;  %s9752_s4 = scalar_lea.vmem (!%p155_p10), %s9751_s29, 2048 }
  0x17   : > { %8433 = vmatpush3.bf16.msra.mxu0 (!%p155_p10), %v9372_v3  ;;  %v9390_v38 = vld [vmem:[%s11759_s1 + $0x80] sm:$0xff] (!%p155_p10)   ;;  %v9393_v39 = vld [vmem:[%s11759_s1 + $0xa8] sm:$0xff] (!%p155_p10)   ;;  %v9395_v45 = vld [vmem:[%s11759_s1 + $0xb0] sm:$0xff] (!%p155_p10)  }
  0x18   : > { %s179_s20 = scalar_select %p178_p12, %s9828_s16, 1  ;;  %8445 = vmatpush3.bf16.msra.mxu1 %v9373_v4  ;;  %8434 = vmatprep.subr.bf16.mxu0 %v9842_v1  ;;  %v9392_v43 = vld [vmem:[%s11759_s1 + $0x88] sm:$0xff]   ;;  %v9394_v46 = vld [vmem:[%s11759_s1 + $0x90] sm:$0xff]   ;;  %v9397_v50 = vld [vmem:[%s11759_s1 + $0xb8] sm:$0xff]  }
  0x19   : > { %8446 = vmatprep.subr.bf16.mxu1 %v9842_v1  ;;  %v9396_v55 = vld [vmem:[%s11759_s1 + $0x98] sm:$0xff]   ;;  %v9402_v60 = vld [vmem:[%s11759_s1 + $0xe0] sm:$0xff]   ;;  %v9404_v2 = vld [vmem:[%s11759_s1 + $0xe8] sm:$0xff]  }
  0x1a   : > { %s9294_s28 = smul.u32 216, %s179_s20  ;;  %v9401_v62 = vld [vmem:[%s11759_s1 + $0xc0] sm:$0xff]   ;;  %v9403_v3 = vld [vmem:[%s11759_s1 + $0xc8] sm:$0xff]   ;;  %v9406_v4 = vld [vmem:[%s11759_s1 + $0xf0] sm:$0xff]  }
  0x1b   : > { %8435 = vmatpush3.bf16.msra.mxu0 %v9374_v5 }
  0x1c   : > { %s182_s7 = scalar_lea.vmem %s11758_s0, %s9294_s28  ;;  %8447 = vmatpush3.bf16.msra.mxu1 %v9375_v6  ;;  %8436 = vmatprep.subr.bf16.mxu0 %v9842_v1  ;;  %s175_s28 = sand.u32 1, %s9816_s13  }
  0x1d   : > { %s9975_s10 = scalar_lea.vmem %s182_s7, %s8052_s21  ;;  %8448 = vmatprep.subr.bf16.mxu1 %v9842_v1  ;;  %s6907_s24 = sshll.u32 %s175_s28, 6 }
  0x1e   : > { %v190_v8 = vld [vmem:[%s9975_s10] sm:$0xf]  ;;  %v191_v9 = vld [vmem:[%s9975_s10 + $0x4] sm:$0xf]  ;;  %v9389_v32 = vld [vmem:[%s9975_s10 + $0xc] sm:$0xff]   ;;  %s10838_s8 = scalar_lea.vmem [#allocation2], %s6907_s24 }
  0x1f   : > { %v6920_v11 = vcombine.low %v190_v8, %v191_v9  ;;  %v9379_v12 = vld [vmem:[%s9975_s10 + $0x8] ss:$0 sps:$4 sm:$0x11]   ;;  %8437 = vmatpush3.bf16.msra.mxu0 %v9376_v7  ;;  %v367_v24 = vld [vmem:[%s9975_s10] sm:$0xe]  ;;  %v9405_v8 = vld [vmem:[%s11759_s1 + $0xd0] sm:$0xff]  }
  0x20   : > { %v227_v15 = vshll.u32 %v9379_v12, 16  ;;  %8449 = vmatpush3.bf16.msra.mxu1 %v9377_v10  ;;  %8454 = vmatprep.subr.bf16.mxu0 %v9842_v1  ;;  %v6940_v26 = vcombine.low %v367_v24, %v191_v9  ;;  %v382_v31 = vrot.slane %v9379_v12, 1  ;;  %v6964_v33 = vld [vmem:[%s9975_s10 + $0xc] sm:$0xf]  ;;  %v6965_v34 = vld [vmem:[%s9975_s10 + $0x10] sm:$0xf] }
  0x21   : > { %v220_v13 = vshrl.u32 %v6920_v11, 16  ;;  %v222_v14 = vshll.u32 %v6920_v11, 16  ;;  %8466 = vmatprep.subr.bf16.mxu1 %v9842_v1  ;;  %v6975_v36 = vcombine.low %v6964_v33, %v6965_v34  ;;  %v9399_v40 = vld [vmem:[%s9975_s10 + $0x14] ss:$0 sps:$4 sm:$0x11]   ;;  %v9408_v9 = vld [vmem:[%s11759_s1 + $0xf8] sm:$0xff]  }
  0x22   : > { %v229_v18 = vrot.slane %v227_v15, 1  ;;  %v381_v30 = vrot.slane %v6940_v26, 1  ;;  %v6982_v41 = vld [vmem:[%s9975_s10 + $0xc] sm:$0xe]  ;;  %v572_v49 = vshll.u32 %v9399_v40, 16  ;;  %v660_v52 = vrot.slane %v9399_v40, 1 }
  0x23   : > { %v224_v17 = vrot.slane %v222_v14, 1  ;;  %8451 = vmatmul.mubr.msk.bf16.vlgmr.msra.gmra.mrb[0].mxu1 %vm255_vm1, %v6920_v11  ;;  %v567_v42 = vshll.u32 %v6975_v36, 16  ;;  %v6991_v44 = vcombine.low %v6982_v41, %v6965_v34  ;;  %v565_v47 = vshrl.u32 %v6975_v36, 16  ;;  %v7015_v53 = vld [vmem:[%s9975_s10 + $0x18] sm:$0xf]  ;;  %v9423_v40 = vld [vmem:[%s11759_s1] sm:$0xff]  }
  0x24   : > { %8467 = vmatpush3.bf16.msra.mxu1 %v9381_v16  ;;  %8474 = vmatprep.mubr.msk.bf16.mxu1 %vm9843_vm0, %v9842_v1  ;;  %v383_v37 = vsel %vm380_vm3, %v381_v30, %v382_v31  ;;  %v10066_v54 = vld [vmem:[%s9975_s10 + $0x1c] sm:$0xf]  ;;  %v574_v56 = vrot.slane %v572_v49, 1  ;;  %v10086_v63 = vld [vmem:[%s9975_s10 + $0x20] ss:$0 sps:$4 sm:$0x11]  }
  0x25   : > { %v225_v19 = vor.u32 %v224_v17, %v220_v13  ;;  %8468 = vmatprep.subr.bf16.mxu1 %v9842_v1  ;;  %v569_v48 = vrot.slane %v567_v42, 1  ;;  %v659_v51 = vrot.slane %v6991_v44, 1  ;;  %v7026_v58 = vcombine.low %v7015_v53, %v10066_v54  ;;  %v7051_v12 = vld [vmem:[%s9975_s10 + $0xc] sm:$0xf]  ;;  %v10116_v13 = vld [vmem:[%s9975_s10 + $0x10] sm:$0xf] }
  0x26   : > { %v850_v7 = vshll.u32 %v10086_v63, 16  ;;  %v9407_v14 = vld [vmem:[%s11759_s1 + $0xd8] sm:$0xff]   ;;  %v9413_v16 = vld [vmem:[%s11759_s1 + $0x20] sm:$0xff]   ;;  %v10127_v17 = vcombine.low %v7051_v12, %v10116_v13  ;;  %v938_v36 = vrot.slane %v10086_v63, 1  ;;  %v9426_v41 = vld [vmem:[%s11759_s1 + $0x48] sm:$0xff]   ;;  %s8048_s7 = sshll.u32 %s9828_s16, 5 }
  0x27   : > { %v230_v21 = vsel %vm218_vm2, %v225_v19, %v229_v18  ;;  %v570_v57 = vor.u32 %v569_v48, %v565_v47  ;;  %v661_v59 = vsel %vm380_vm3, %v659_v51, %v660_v52  ;;  %v845_v0 = vshll.u32 %v7026_v58, 16  ;;  %v9409_v18 = vld [vmem:[%s9975_s10 + $0x18] sm:$0xff]   ;;  %v9412_v19 = vld [vmem:[%s11759_s1 + $0x100] sm:$0xff]   ;;  %v7074_v42 = vld [vmem:[%s9975_s10 + $0xc] sm:$0xe]  ;;  %s6785_s9 = sadd.s32 %s8069_s6, %s8048_s7  ;;  %s11706_s21 = scalar_lea.sflag [#allocation3], %s175_s28 }
  0x28   : > { %8439 = vmatmul.mubr.msk.bf16.vlgmr.msra.gmra.mrb[0].mxu0 %vm255_vm1, %v230_v21  ;;  %8469 = vmatpush3.bf16.msra.mxu1 %v9383_v22  ;;  %v843_v5 = vshrl.u32 %v7026_v58, 16  ;;  %v852_v10 = vrot.slane %v850_v7, 1  ;;  %v9415_v21 = vld [vmem:[%s11759_s1 + $0x28] sm:$0xff]   ;;  %v1061_v22 = vshll.u32 %v10127_v17, 16  ;;  %v7033_v24 = vld [vmem:[%s9975_s10 + $0x18] sm:$0xe]  ;;  %v7083_v44 = vcombine.low %v7074_v42, %v10116_v13 }
  0x29   : > { %8455 = vmatpush3.bf16.msra.mxu0 %v9380_v20  ;;  %8462 = vmatprep.mubr.msk.bf16.mxu0 %vm9843_vm0, %v9842_v1  ;;  %v575_v61 = vsel %vm218_vm2, %v570_v57, %v574_v56  ;;  %v847_v6 = vrot.slane %v845_v0, 1  ;;  %v10135_v20 = vld [vmem:[%s9975_s10 + $0x14] ss:$0 sps:$4 sm:$0x11]   ;;  %v1059_v26 = vshrl.u32 %v10127_v17, 16  ;;  %v7042_v30 = vcombine.low %v7033_v24, %v10066_v54  ;;  %v9419_v31 = vld [vmem:[%s11759_s1 + $0x38] sm:$0xff]  }
  0x2a   : > { %8456 = vmatprep.subr.bf16.mxu0 %v9842_v1  ;;  %8470 = vmatprep.subr.bf16.mxu1 %v9842_v1  ;;  %v9418_v34 = vld [vmem:[%s11759_s1 + $0x118] sm:$0xff]   ;;  %v1218_v47 = vrot.slane %v10135_v20, 1  ;;  %v1217_v49 = vrot.slane %v7083_v44, 1  ;;  %v9432_v56 = vld [vmem:[%s11759_s1 + $0x60] sm:$0xff]   ;;  %v9435_v57 = vld [vmem:[%s11759_s1 + $0x88] sm:$0xff]   ;;  %s8049_s11 = sshll.u32 %s6785_s9, 6 }
  0x2b   : > { %v848_v11 = vor.u32 %v847_v6, %v843_v5  ;;  %v9430_v48 = vld [vmem:[%s11759_s1 + $0x58] sm:$0xff]   ;;  %v10236_v58 = vld [vmem:[%s9975_s10 + $0x20] ss:$0 sps:$4 sm:$0x11]   ;;  %v9445_v12 = vld [vmem:[%s11759_s1 + $0xa8] sm:$0xff]   ;;  %s11696_s20 = scalar_lea.hbm %s11761_s3, %s8049_s11 }
  0x2c   : > { %8471 = vmatpush3.bf16.msra.mxu1 %v9385_v25  ;;  %v9417_v25 = vld [vmem:[%s11759_s1 + $0x30] sm:$0xff]   ;;  %v10214_v51 = vld [vmem:[%s9975_s10 + $0x1c] sm:$0xf]  ;;  %v1219_v54 = vsel %vm380_vm3, %v1217_v49, %v1218_v47  ;;  %v1402_v0 = vshll.u32 %v10236_v58, 16  ;;  %v7123_v13 = vld [vmem:[%s9975_s10 + $0x18] sm:$0xe] }
  0x2d   : > { %8457 = vmatpush3.bf16.msra.mxu0 %v9382_v23  ;;  %8472 = vmatprep.subr.bf16.mxu1 %v9842_v1  ;;  %v853_v15 = vsel %vm218_vm2, %v848_v11, %v852_v10  ;;  %v9414_v23 = vld [vmem:[%s11759_s1 + $0x108] sm:$0xff]   ;;  %v9429_v52 = vld [vmem:[%s11759_s1 + $0x18] sm:$0xff]   ;;  %v9443_v10 = vld [vmem:[%s11759_s1 + $0xa0] sm:$0xff]  }
  0x2e   : > { %8458 = vmatprep.subr.bf16.mxu0 %v9842_v1  ;;  %v1404_v5 = vrot.slane %v1402_v0, 1  ;;  %v9438_v6 = vld [vmem:[%s11759_s1 + $0x78] sm:$0xff]   ;;  %v9446_v11 = vld [vmem:[%s11759_s1 + $0xc8] sm:$0xff]   ;;  %v9454_v24 = vld [vmem:[%s11759_s1 + $0x100] sm:$0xff]  }
  0x2f   : > { %v9459_v42 = vld [vmem:[%s11759_s1 + $0xf8] sm:$0xff]  }
  0x30   : > { %8473 = vmatpush3.bf16.msra.mxu1 %v9387_v28  ;;  %v1066_v28 = vshll.u32 %v10135_v20, 16 }
  0x31   : > { %8459 = vmatpush3.bf16.msra.mxu0 %v9384_v27  ;;  %8490 = vmatprep.subr.bf16.mxu1 %v9842_v1  ;;  %v1063_v27 = vrot.slane %v1061_v22, 1  ;;  %v7156_v22 = vld [vmem:[%s9975_s10 + $0x24] sm:$0xf] }
  0x32   : > { %8460 = vmatprep.subr.bf16.mxu0 %v9842_v1  ;;  %v1068_v33 = vrot.slane %v1066_v28, 1  ;;  %v9456_v28 = vld [vmem:[%s11759_s1 + $0x108] sm:$0xff]  }
  0x33   : > { %8475 = vmatmul.mubr.msk.bf16.vlgmr.msra.gmra.mrb[4].mxu1 %vm255_vm1, %v9389_v32  ;;  %v1064_v32 = vor.u32 %v1063_v27, %v1059_v26  ;;  %v9453_v26 = vld [vmem:[%s11759_s1 + $0xe0] sm:$0xff]  }
  0x34   : > { %8491 = vmatpush3.bf16.msra.mxu1 %v9391_v35  ;;  %8498 = vmatprep.mubr.msk.bf16.mxu1 %vm9843_vm0, %v9842_v1  ;;  %v937_v35 = vrot.slane %v7042_v30, 1  ;;  %v7174_v30 = vld [vmem:[%s9975_s10 + $0x24] sm:$0xe] }
  0x35   : > { %8461 = vmatpush3.bf16.msra.mxu0 %v9386_v29  ;;  %8492 = vmatprep.subr.bf16.mxu1 %v9842_v1  ;;  %v9416_v29 = vld [vmem:[%s11759_s1 + $0x110] sm:$0xff]  }
  0x36   : > { %8478 = vmatprep.subr.bf16.mxu0 %v9842_v1 }
  0x38   : > { %8463 = vmatmul.mubr.msk.bf16.vlgmr.msra.gmra.mrb[4].mxu0 %vm255_vm1, %v383_v37  ;;  %8493 = vmatpush3.bf16.msra.mxu1 %v9393_v39  ;;  %v1069_v37 = vsel %vm218_vm2, %v1064_v32, %v1068_v33  ;;  %v939_v39 = vsel %vm380_vm3, %v937_v35, %v938_v36  ;;  %v9458_v33 = vld [vmem:[%s11759_s1 + $0x110] sm:$0xff]  }
  0x39   : > { %8479 = vmatpush3.bf16.msra.mxu0 %v9390_v38  ;;  %8486 = vmatprep.mubr.msk.bf16.mxu0 %vm9843_vm0, %v9842_v1  ;;  %v9424_v38 = vld [vmem:[%s11759_s1 + $0x40] sm:$0xff]   ;;  %v9457_v36 = vld [vmem:[%s11759_s1 + $0xf0] sm:$0xff]  }
  0x3a   : > { %8480 = vmatprep.subr.bf16.mxu0 %v9842_v1  ;;  %8494 = vmatprep.subr.bf16.mxu1 %v9842_v1 }
  0x3c   : > { %8495 = vmatpush3.bf16.msra.mxu1 %v9395_v45  ;;  %v9428_v45 = vld [vmem:[%s11759_s1 + $0x50] sm:$0xff]  }
  0x3d   : > { %8481 = vmatpush3.bf16.msra.mxu0 %v9392_v43  ;;  %8496 = vmatprep.subr.bf16.mxu1 %v9842_v1  ;;  %v9425_v43 = vld [vmem:[%s11759_s1 + $0x8] sm:$0xff]  }
  0x3e   : > { %8482 = vmatprep.subr.bf16.mxu0 %v9842_v1 }
  0x40   : > { %8497 = vmatpush3.bf16.msra.mxu1 %v9397_v50  ;;  %v7105_v50 = vld [vmem:[%s9975_s10 + $0x18] sm:$0xf] }
  0x41   : > { %8483 = vmatpush3.bf16.msra.mxu0 %v9394_v46  ;;  %8514 = vmatprep.subr.bf16.mxu1 %v9842_v1  ;;  %v9427_v46 = vld [vmem:[%s11759_s1 + $0x10] sm:$0xff]   ;;  %v7116_v53 = vcombine.low %v7105_v50, %v10214_v51  ;;  %v9464_v50 = vld [vmem:[%s11759_s1 + $0x20] sm:$0xff]  }
  0x42   : > { %8484 = vmatprep.subr.bf16.mxu0 %v9842_v1 }
  0x43   : > { %8499 = vmatmul.mubr.msk.bf16.vlgmr.msra.gmra.mrb[8].mxu1 %vm255_vm1, %v661_v59  ;;  %v1397_v59 = vshll.u32 %v7116_v53, 16 }
  0x44   : > { %8515 = vmatpush3.bf16.msra.mxu1 %v9402_v60  ;;  %8522 = vmatprep.mubr.msk.bf16.mxu1 %vm9843_vm0, %v9842_v1  ;;  %v9434_v60 = vld [vmem:[%s11759_s1 + $0x68] sm:$0xff]  }
  0x45   : > { %8485 = vmatpush3.bf16.msra.mxu0 %v9396_v55  ;;  %8516 = vmatprep.subr.bf16.mxu1 %v9842_v1  ;;  %v9433_v55 = vld [vmem:[%s11759_s1 + $0x80] sm:$0xff]   ;;  %v1399_v63 = vrot.slane %v1397_v59, 1 }
  0x46   : > { %8502 = vmatprep.subr.bf16.mxu0 %v9842_v1 }
  0x48   : > { %8487 = vmatmul.mubr.msk.bf16.vlgmr.msra.gmra.mrb[8].mxu0 %vm255_vm1, %v575_v61  ;;  %8517 = vmatpush3.bf16.msra.mxu1 %v9404_v2  ;;  %v9437_v61 = vld [vmem:[%s11759_s1 + $0x90] sm:$0xff]  }
  0x49   : > { %8503 = vmatpush3.bf16.msra.mxu0 %v9401_v62  ;;  %8510 = vmatprep.mubr.msk.bf16.mxu0 %vm9843_vm0, %v9842_v1  ;;  %v1395_v62 = vshrl.u32 %v7116_v53, 16  ;;  %v9436_v2 = vld [vmem:[%s11759_s1 + $0x70] sm:$0xff]   ;;  %v10375_v53 = vld [vmem:[%s9975_s10 + $0x20] ss:$0 sps:$4 sm:$0x11]  }
  0x4a   : > { %8504 = vmatprep.subr.bf16.mxu0 %v9842_v1  ;;  %8518 = vmatprep.subr.bf16.mxu1 %v9842_v1 }
  0x4c   : > { %8519 = vmatpush3.bf16.msra.mxu1 %v9406_v4  ;;  %v1400_v4 = vor.u32 %v1399_v63, %v1395_v62  ;;  %v9470_v62 = vld [vmem:[%s11759_s1 + $0x38] sm:$0xff]  }
  0x4d   : > { %8505 = vmatpush3.bf16.msra.mxu0 %v9403_v3  ;;  %8520 = vmatprep.subr.bf16.mxu1 %v9842_v1  ;;  %v9439_v3 = vld [vmem:[%s11759_s1 + $0x98] sm:$0xff]  }
  0x4e   : > { %8506 = vmatprep.subr.bf16.mxu0 %v9842_v1  ;;  %v1405_v7 = vsel %vm218_vm2, %v1400_v4, %v1404_v5  ;;  %v9474_v4 = vld [vmem:[%s11759_s1 + $0x40] sm:$0xff]   ;;  %v9477_v5 = vld [vmem:[%s11759_s1 + $0x68] sm:$0xff]  }
  0x50   : > { %8521 = vmatpush3.bf16.msra.mxu1 %v9408_v9  ;;  %v9440_v9 = vld [vmem:[%s9975_s10 + $0x18] sm:$0xff]  }
  0x51   : > { %8507 = vmatpush3.bf16.msra.mxu0 %v9405_v8  ;;  %8538 = vmatprep.subr.bf16.mxu1 %v9842_v1  ;;  %v9444_v8 = vld [vmem:[%s11759_s1 + $0xc0] sm:$0xff]  }
  0x52   : > { %8508 = vmatprep.subr.bf16.mxu0 %v9842_v1 }
  0x53   : > { %8523 = vmatmul.mubr.msk.bf16.vlgmr.msra.gmra.mrb[12].mxu1 %vm255_vm1, %v853_v15  ;;  %v7132_v15 = vcombine.low %v7123_v13, %v10214_v51  ;;  %v2038_v13 = vrot.slane %v10375_v53, 1 }
  0x54   : > { %8539 = vmatpush3.bf16.msra.mxu1 %v9413_v16  ;;  %8546 = vmatprep.mubr.msk.bf16.mxu1 %vm9843_vm0, %v9842_v1  ;;  %v9447_v16 = vld [vmem:[%s11759_s1 + $0xb0] sm:$0xff]  }
  0x55   : > { %8509 = vmatpush3.bf16.msra.mxu0 %v9407_v14  ;;  %8540 = vmatprep.subr.bf16.mxu1 %v9842_v1  ;;  %v9448_v14 = vld [vmem:[%s11759_s1 + $0xd0] sm:$0xff]   ;;  %v1488_v20 = vrot.slane %v7132_v15, 1  ;;  %v9483_v15 = vld [vmem:[%s9975_s10 + $0x24] sm:$0xff]  }
  0x56   : > { %8526 = vmatprep.subr.bf16.mxu0 %v9842_v1 }
  0x58   : > { %8511 = vmatmul.mubr.msk.bf16.vlgmr.msra.gmra.mrb[12].mxu0 %vm255_vm1, %v9409_v18  ;;  %8541 = vmatpush3.bf16.msra.mxu1 %v9415_v21  ;;  %v9450_v18 = vld [vmem:[%s11759_s1 + $0xd8] sm:$0xff]   ;;  %v9452_v21 = vld [vmem:[%s9975_s10 + $0x24] sm:$0xff]  }
  0x59   : > { %8527 = vmatpush3.bf16.msra.mxu0 %v9412_v19  ;;  %8534 = vmatprep.mubr.msk.bf16.mxu0 %vm9843_vm0, %v9842_v1  ;;  %v1489_v19 = vrot.slane %v10236_v58, 1 }
  0x5a   : > { %8528 = vmatprep.subr.bf16.mxu0 %v9842_v1  ;;  %8542 = vmatprep.subr.bf16.mxu1 %v9842_v1 }
  0x5c   : > { %8543 = vmatpush3.bf16.msra.mxu1 %v9417_v25  ;;  %v1490_v25 = vsel %vm380_vm3, %v1488_v20, %v1489_v19  ;;  %v9484_v20 = vld [vmem:[%s11759_s1 + $0x80] sm:$0xff]  }
  0x5d   : > { %8529 = vmatpush3.bf16.msra.mxu0 %v9414_v23  ;;  %8544 = vmatprep.subr.bf16.mxu1 %v9842_v1  ;;  %v7157_v23 = vld [vmem:[%s9975_s10 + $0x28] sm:$0xf] }
  0x5e   : > { %8530 = vmatprep.subr.bf16.mxu0 %v9842_v1  ;;  %v7167_v27 = vcombine.low %v7156_v22, %v7157_v23  ;;  %v9487_v22 = vld [vmem:[%s11759_s1 + $0xa8] sm:$0xff]  }
  0x60   : > { %8545 = vmatpush3.bf16.msra.mxu1 %v9419_v31  ;;  %v9455_v31 = vld [vmem:[%s11759_s1 + $0xe8] sm:$0xff]   ;;  %v1672_v32 = vshll.u32 %v7167_v27, 16 }
  0x61   : > { %8531 = vmatpush3.bf16.msra.mxu0 %v9416_v29  ;;  %8562 = vmatprep.subr.bf16.mxu1 %v9842_v1  ;;  %v9462_v29 = vld [vmem:[%s9975_s10 + $0x2c] ss:$0 sps:$4 sm:$0x11]  }
  0x62   : > { %8532 = vmatprep.subr.bf16.mxu0 %v9842_v1  ;;  %v1677_v35 = vshll.u32 %v9462_v29, 16 }
  0x63   : > { %8547 = vmatmul.mubr.msk.bf16.vlgmr.msra.gmra.mrb[16].mxu1 %vm255_vm1, %v1069_v37  ;;  %v1670_v37 = vshrl.u32 %v7167_v27, 16  ;;  %v9489_v27 = vld [vmem:[%s11759_s1 + $0xb0] sm:$0xff]  }
  0x64   : > { %8563 = vmatpush3.bf16.msra.mxu1 %v9424_v38  ;;  %8570 = vmatprep.mubr.msk.bf16.mxu1 %vm9843_vm0, %v9842_v1  ;;  %v1674_v38 = vrot.slane %v1672_v32, 1 }
  0x65   : > { %8533 = vmatpush3.bf16.msra.mxu0 %v9418_v34  ;;  %8564 = vmatprep.subr.bf16.mxu1 %v9842_v1  ;;  %v7183_v34 = vcombine.low %v7174_v30, %v7157_v23  ;;  %v9493_v23 = vld [vmem:[%s9975_s10 + $0x2c] ss:$0 sps:$4 sm:$0x11]   ;;  %v9488_v30 = vld [vmem:[%s11759_s1 + $0x90] sm:$0xff]  }
  0x66   : > { %8550 = vmatprep.subr.bf16.mxu0 %v9842_v1  ;;  %v1675_v44 = vor.u32 %v1674_v38, %v1670_v37  ;;  %v2309_v37 = vrot.slane %v9493_v23, 1  ;;  %v7298_v38 = vld [vmem:[%s9975_s10 + $0x30] sm:$0xf] }
  0x68   : > { %8535 = vmatmul.mubr.msk.bf16.vlgmr.msra.gmra.mrb[16].mxu0 %vm255_vm1, %v939_v39  ;;  %8565 = vmatpush3.bf16.msra.mxu1 %v9426_v41  ;;  %v9460_v39 = vld [vmem:[%s11759_s1 + $0x118] sm:$0xff]   ;;  %v1764_v41 = vrot.slane %v9462_v29, 1 }
  0x69   : > { %8551 = vmatpush3.bf16.msra.mxu0 %v9423_v40  ;;  %8558 = vmatprep.mubr.msk.bf16.mxu0 %vm9843_vm0, %v9842_v1  ;;  %v1763_v40 = vrot.slane %v7183_v34, 1  ;;  %v9491_v34 = vld [vmem:[%s11759_s1 + $0xb8] sm:$0xff]  }
  0x6a   : > { %8552 = vmatprep.subr.bf16.mxu0 %v9842_v1  ;;  %8566 = vmatprep.subr.bf16.mxu1 %v9842_v1 }
  0x6b   : > { %v1765_v47 = vsel %vm380_vm3, %v1763_v40, %v1764_v41 }
  0x6c   : > { %8567 = vmatpush3.bf16.msra.mxu1 %v9428_v45  ;;  %v7193_v45 = vld [vmem:[%s9975_s10 + $0x18] sm:$0xf] }
  0x6d   : > { %8553 = vmatpush3.bf16.msra.mxu0 %v9425_v43  ;;  %8568 = vmatprep.subr.bf16.mxu1 %v9842_v1  ;;  %v1679_v43 = vrot.slane %v1677_v35, 1 }
  0x6e   : > { %8554 = vmatprep.subr.bf16.mxu0 %v9842_v1 }
  0x6f   : > { %v1680_v49 = vsel %vm218_vm2, %v1675_v44, %v1679_v43  ;;  %v9495_v44 = vld [vmem:[%s11759_s1 + $0xc0] sm:$0xff]  }
  0x70   : > { %8569 = vmatpush3.bf16.msra.mxu1 %v9430_v48  ;;  %v9465_v48 = vld [vmem:[%s11759_s1] sm:$0xff]  }
  0x71   : > { %8555 = vmatpush3.bf16.msra.mxu0 %v9427_v46  ;;  %8586 = vmatprep.subr.bf16.mxu1 %v9842_v1  ;;  %v10354_v46 = vld [vmem:[%s9975_s10 + $0x1c] sm:$0xf] }
  0x72   : > { %8556 = vmatprep.subr.bf16.mxu0 %v9842_v1  ;;  %v7204_v51 = vcombine.low %v7193_v45, %v10354_v46  ;;  %v10502_v45 = vld [vmem:[%s9975_s10 + $0x38] ss:$0 sps:$4 sm:$0x11]  }
  0x73   : > { %8571 = vmatmul.mubr.msk.bf16.vlgmr.msra.gmra.mrb[20].mxu1 %vm255_vm1, %v1219_v54  ;;  %v9466_v54 = vld [vmem:[%s11759_s1 + $0x28] sm:$0xff]  }
  0x74   : > { %8587 = vmatpush3.bf16.msra.mxu1 %v9433_v55  ;;  %8594 = vmatprep.mubr.msk.bf16.mxu1 %vm9843_vm0, %v9842_v1  ;;  %v1881_v55 = vshll.u32 %v7204_v51, 16  ;;  %v1879_v58 = vshrl.u32 %v7204_v51, 16 }
  0x75   : > { %8557 = vmatpush3.bf16.msra.mxu0 %v9429_v52  ;;  %8588 = vmatprep.subr.bf16.mxu1 %v9842_v1  ;;  %v9467_v52 = vld [vmem:[%s11759_s1 + $0x8] sm:$0xff]  }
  0x76   : > { %8574 = vmatprep.subr.bf16.mxu0 %v9842_v1  ;;  %v1883_v59 = vrot.slane %v1881_v55, 1  ;;  %v9502_v55 = vld [vmem:[%s11759_s1 + $0xf8] sm:$0xff]  }
  0x78   : > { %8559 = vmatmul.mubr.msk.bf16.vlgmr.msra.gmra.mrb[20].mxu0 %vm255_vm1, %v10127_v17  ;;  %8589 = vmatpush3.bf16.msra.mxu1 %v9435_v57  ;;  %v9449_v17 = vld [vmem:[%s11759_s1 + $0xb8] sm:$0xff]   ;;  %v9468_v57 = vld [vmem:[%s11759_s1 + $0x30] sm:$0xff]   ;;  %v1884_v63 = vor.u32 %v1883_v59, %v1879_v58  ;;  %v7335_v58 = vld [vmem:[%s9975_s10 + $0x24] sm:$0xf] }
  0x79   : > { %8575 = vmatpush3.bf16.msra.mxu0 %v9432_v56  ;;  %8582 = vmatprep.mubr.msk.bf16.mxu0 %vm9843_vm0, %v9842_v1  ;;  %v9469_v56 = vld [vmem:[%s11759_s1 + $0x10] sm:$0xff]   ;;  %v10534_v59 = vld [vmem:[%s9975_s10 + $0x28] sm:$0xf] }
  0x7a   : > { %8576 = vmatprep.subr.bf16.mxu0 %v9842_v1  ;;  %8590 = vmatprep.subr.bf16.mxu1 %v9842_v1 }
  0x7c   : > { %8591 = vmatpush3.bf16.msra.mxu1 %v9437_v61  ;;  %v9471_v61 = vld [vmem:[%s11759_s1 + $0x18] sm:$0xff]  }
  0x7d   : > { %8577 = vmatpush3.bf16.msra.mxu0 %v9434_v60  ;;  %8592 = vmatprep.subr.bf16.mxu1 %v9842_v1  ;;  %v1886_v60 = vshll.u32 %v10375_v53, 16 }
  0x7e   : > { %8578 = vmatprep.subr.bf16.mxu0 %v9842_v1 }
  0x7f   : > { %v1888_v0 = vrot.slane %v1886_v60, 1  ;;  %v9501_v60 = vld [vmem:[%s11759_s1 + $0xd8] sm:$0xff]  }
  0x80   : > { %8593 = vmatpush3.bf16.msra.mxu1 %v9439_v3 }
  0x81   : > { %8579 = vmatpush3.bf16.msra.mxu0 %v9436_v2  ;;  %8610 = vmatprep.subr.bf16.mxu1 %v9842_v1  ;;  %v9475_v2 = vld [vmem:[%s11759_s1 + $0x60] sm:$0xff]   ;;  %v1889_v3 = vsel %vm218_vm2, %v1884_v63, %v1888_v0  ;;  %v10546_v63 = vcombine.low %v7335_v58, %v10534_v59  ;;  %v9503_v0 = vld [vmem:[%s9975_s10 + $0x30] sm:$0xff]  }
  0x82   : > { %8580 = vmatprep.subr.bf16.mxu0 %v9842_v1 }
  0x83   : > { %8595 = vmatmul.mubr.msk.bf16.vlgmr.msra.gmra.mrb[24].mxu1 %vm255_vm1, %v1405_v7  ;;  %v7216_v7 = vld [vmem:[%s9975_s10 + $0x18] sm:$0xe] }
  0x84   : > { %8611 = vmatpush3.bf16.msra.mxu1 %v9444_v8  ;;  %8618 = vmatprep.mubr.msk.bf16.mxu1 %vm9843_vm0, %v9842_v1  ;;  %v9479_v8 = vld [vmem:[%s11759_s1 + $0x70] sm:$0xff]  }
  0x85   : > { %8581 = vmatpush3.bf16.msra.mxu0 %v9438_v6  ;;  %8612 = vmatprep.subr.bf16.mxu1 %v9842_v1  ;;  %v9476_v6 = vld [vmem:[%s11759_s1 + $0x48] sm:$0xff]  }
  0x86   : > { %8598 = vmatprep.subr.bf16.mxu0 %v9842_v1 }
  0x88   : > { %8583 = vmatmul.mubr.msk.bf16.vlgmr.msra.gmra.mrb[24].mxu0 %vm255_vm1, %v9440_v9  ;;  %8613 = vmatpush3.bf16.msra.mxu1 %v9446_v11  ;;  %v7225_v9 = vcombine.low %v7216_v7, %v10354_v46  ;;  %v9480_v11 = vld [vmem:[%s11759_s1 + $0x58] sm:$0xff]   ;;  %v7316_v7 = vld [vmem:[%s9975_s10 + $0x30] sm:$0xe] }
  0x89   : > { %8599 = vmatpush3.bf16.msra.mxu0 %v9443_v10  ;;  %8606 = vmatprep.mubr.msk.bf16.mxu0 %vm9843_vm0, %v9842_v1  ;;  %v9478_v10 = vld [vmem:[%s11759_s1 + $0x50] sm:$0xff]  }
  0x8a   : > { %8600 = vmatprep.subr.bf16.mxu0 %v9842_v1  ;;  %8614 = vmatprep.subr.bf16.mxu1 %v9842_v1 }
  0x8c   : > { %8615 = vmatpush3.bf16.msra.mxu1 %v9448_v14  ;;  %v2037_v14 = vrot.slane %v7225_v9, 1  ;;  %v9511_v9 = vld [vmem:[%s11759_s1 + $0x30] sm:$0xff]  }
  0x8d   : > { %8601 = vmatpush3.bf16.msra.mxu0 %v9445_v12  ;;  %8616 = vmatprep.subr.bf16.mxu1 %v9842_v1  ;;  %v9481_v12 = vld [vmem:[%s11759_s1 + $0x78] sm:$0xff]  }
  0x8e   : > { %8602 = vmatprep.subr.bf16.mxu0 %v9842_v1  ;;  %v2039_v19 = vsel %vm380_vm3, %v2037_v14, %v2038_v13  ;;  %v9513_v14 = vld [vmem:[%s11759_s1 + $0x38] sm:$0xff]  }
  0x90   : > { %8617 = vmatpush3.bf16.msra.mxu1 %v9450_v18  ;;  %v9485_v18 = vld [vmem:[%s11759_s1 + $0xa0] sm:$0xff]  }
  0x91   : > { %8603 = vmatpush3.bf16.msra.mxu0 %v9447_v16  ;;  %8634 = vmatprep.subr.bf16.mxu1 %v9842_v1  ;;  %v7247_v16 = vld [vmem:[%s9975_s10 + $0x24] sm:$0xf] }
  0x92   : > { %8604 = vmatprep.subr.bf16.mxu0 %v9842_v1 }
  0x93   : > { %8619 = vmatmul.mubr.msk.bf16.vlgmr.msra.gmra.mrb[28].mxu1 %vm255_vm1, %v9452_v21 }
  0x94   : > { %8635 = vmatpush3.bf16.msra.mxu1 %v9454_v24  ;;  %8642 = vmatprep.mubr.msk.bf16.mxu1 %vm9843_vm0, %v9842_v1  ;;  %v7265_v24 = vld [vmem:[%s9975_s10 + $0x24] sm:$0xe] }
  0x95   : > { %8605 = vmatpush3.bf16.msra.mxu0 %v9449_v17  ;;  %8636 = vmatprep.subr.bf16.mxu1 %v9842_v1  ;;  %v7248_v17 = vld [vmem:[%s9975_s10 + $0x28] sm:$0xf] }
  0x96   : > { %8622 = vmatprep.subr.bf16.mxu0 %v9842_v1  ;;  %v7258_v21 = vcombine.low %v7247_v16, %v7248_v17  ;;  %v7274_v29 = vcombine.low %v7265_v24, %v7248_v17  ;;  %v9512_v17 = vld [vmem:[%s11759_s1 + $0x118] sm:$0xff]   ;;  %v9520_v24 = vld [vmem:[%s11759_s1 + $0x48] sm:$0xff]  }
  0x98   : > { %8607 = vmatmul.mubr.msk.bf16.vlgmr.msra.gmra.mrb[28].mxu0 %vm255_vm1, %v1490_v25  ;;  %8637 = vmatpush3.bf16.msra.mxu1 %v9456_v28  ;;  %v9486_v25 = vld [vmem:[%s11759_s1 + $0x88] sm:$0xff]   ;;  %v2222_v28 = vshll.u32 %v9493_v23, 16  ;;  %v9517_v23 = vld [vmem:[%s11759_s1] sm:$0xff]  }
  0x99   : > { %8623 = vmatpush3.bf16.msra.mxu0 %v9453_v26  ;;  %8630 = vmatprep.mubr.msk.bf16.mxu0 %vm9843_vm0, %v9842_v1  ;;  %v2217_v26 = vshll.u32 %v7258_v21, 16 }
  0x9a   : > { %8624 = vmatprep.subr.bf16.mxu0 %v9842_v1  ;;  %8638 = vmatprep.subr.bf16.mxu1 %v9842_v1  ;;  %v2224_v35 = vrot.slane %v2222_v28, 1 }
  0x9b   : > { %v2219_v32 = vrot.slane %v2217_v26, 1 }
  0x9c   : > { %8639 = vmatpush3.bf16.msra.mxu1 %v9458_v33  ;;  %v9490_v33 = vld [vmem:[%s11759_s1 + $0x98] sm:$0xff]  }
  0x9d   : > { %8625 = vmatpush3.bf16.msra.mxu0 %v9455_v31  ;;  %8640 = vmatprep.subr.bf16.mxu1 %v9842_v1  ;;  %v2215_v31 = vshrl.u32 %v7258_v21, 16  ;;  %v9518_v21 = vld [vmem:[%s11759_s1 + $0x40] sm:$0xff]  }
  0x9e   : > { %8626 = vmatprep.subr.bf16.mxu0 %v9842_v1 }
  0x9f   : > { %v2220_v40 = vor.u32 %v2219_v32, %v2215_v31  ;;  %v9522_v32 = vld [vmem:[%s11759_s1 + $0x50] sm:$0xff]  }
  0xa0   : > { %8641 = vmatpush3.bf16.msra.mxu1 %v9460_v39  ;;  %v10489_v39 = vld [vmem:[%s9975_s10 + $0x34] sm:$0xf] }
  0xa1   : > { %8627 = vmatpush3.bf16.msra.mxu0 %v9457_v36  ;;  %8658 = vmatprep.subr.bf16.mxu1 %v9842_v1  ;;  %v2308_v36 = vrot.slane %v7274_v29, 1  ;;  %v7309_v43 = vcombine.low %v7298_v38, %v10489_v39  ;;  %v2225_v46 = vsel %vm218_vm2, %v2220_v40, %v2224_v35  ;;  %v7325_v13 = vcombine.low %v7316_v7, %v10489_v39  ;;  %v9524_v40 = vld [vmem:[%s11759_s1 + $0x58] sm:$0xff]  }
  0xa2   : > { %8628 = vmatprep.subr.bf16.mxu0 %v9842_v1  ;;  %v9532_v7 = vld [vmem:[%s11759_s1 + $0x78] sm:$0xff]  }
  0xa3   : > { %8643 = vmatmul.mubr.msk.bf16.vlgmr.msra.gmra.mrb[32].mxu1 %vm255_vm1, %v1765_v47  ;;  %v2310_v41 = vsel %vm380_vm3, %v2308_v36, %v2309_v37  ;;  %v9498_v47 = vld [vmem:[%s11759_s1 + $0xe8] sm:$0xff]   ;;  %v9521_v37 = vld [vmem:[%s11759_s1 + $0x10] sm:$0xff]  }
  0xa4   : > { %8659 = vmatpush3.bf16.msra.mxu1 %v9465_v48  ;;  %8666 = vmatprep.mubr.msk.bf16.mxu1 %vm9843_vm0, %v9842_v1  ;;  %v2492_v48 = vshll.u32 %v7309_v43, 16 }
  0xa5   : > { %8629 = vmatpush3.bf16.msra.mxu0 %v9459_v42  ;;  %8660 = vmatprep.subr.bf16.mxu1 %v9842_v1  ;;  %v9496_v42 = vld [vmem:[%s11759_s1 + $0xe0] sm:$0xff]  }
  0xa6   : > { %8646 = vmatprep.subr.bf16.mxu0 %v9842_v1  ;;  %v2494_v53 = vrot.slane %v2492_v48, 1 }
  0xa8   : > { %8631 = vmatmul.mubr.msk.bf16.vlgmr.msra.gmra.mrb[32].mxu0 %vm255_vm1, %v1680_v49  ;;  %8661 = vmatpush3.bf16.msra.mxu1 %v9467_v52  ;;  %v9497_v49 = vld [vmem:[%s11759_s1 + $0xc8] sm:$0xff]   ;;  %v2490_v52 = vshrl.u32 %v7309_v43, 16  ;;  %v7389_v43 = vld [vmem:[%s9975_s10 + $0x30] sm:$0xf] }
  0xa9   : > { %8647 = vmatpush3.bf16.msra.mxu0 %v9464_v50  ;;  %8654 = vmatprep.mubr.msk.bf16.mxu0 %vm9843_vm0, %v9842_v1  ;;  %v2497_v50 = vshll.u32 %v10502_v45, 16 }
  0xaa   : > { %8648 = vmatprep.subr.bf16.mxu0 %v9842_v1  ;;  %8662 = vmatprep.subr.bf16.mxu1 %v9842_v1 }
  0xac   : > { %8663 = vmatpush3.bf16.msra.mxu1 %v9469_v56  ;;  %v2499_v56 = vrot.slane %v2497_v50, 1  ;;  %v9529_v50 = vld [vmem:[%s11759_s1 + $0x88] sm:$0xff]  }
  0xad   : > { %8649 = vmatpush3.bf16.msra.mxu0 %v9466_v54  ;;  %8664 = vmatprep.subr.bf16.mxu1 %v9842_v1  ;;  %v9499_v54 = vld [vmem:[%s11759_s1 + $0xd0] sm:$0xff]  }
  0xae   : > { %8650 = vmatprep.subr.bf16.mxu0 %v9842_v1 }
  0xb0   : > { %8665 = vmatpush3.bf16.msra.mxu1 %v9471_v61 }
  0xb1   : > { %8651 = vmatpush3.bf16.msra.mxu0 %v9468_v57  ;;  %8682 = vmatprep.subr.bf16.mxu1 %v9842_v1  ;;  %v2495_v57 = vor.u32 %v2494_v53, %v2490_v52  ;;  %v10660_v52 = vld [vmem:[%s9975_s10 + $0x38] ss:$0 sps:$4 sm:$0x11]  }
  0xb2   : > { %8652 = vmatprep.subr.bf16.mxu0 %v9842_v1 }
  0xb3   : > { %8667 = vmatmul.mubr.msk.bf16.vlgmr.msra.gmra.mrb[36].mxu1 %vm255_vm1, %v7204_v51  ;;  %v9500_v51 = vld [vmem:[%s11759_s1 + $0xf0] sm:$0xff]   ;;  %v2500_v61 = vsel %vm218_vm2, %v2495_v57, %v2499_v56 }
  0xb4   : > { %8683 = vmatpush3.bf16.msra.mxu1 %v9475_v2  ;;  %8690 = vmatprep.mubr.msk.bf16.mxu1 %vm9843_vm0, %v9842_v1  ;;  %v9506_v2 = vld [vmem:[%s11759_s1 + $0x100] sm:$0xff]  }
  0xb5   : > { %8653 = vmatpush3.bf16.msra.mxu0 %v9470_v62  ;;  %8684 = vmatprep.subr.bf16.mxu1 %v9842_v1  ;;  %v9507_v62 = vld [vmem:[%s11759_s1 + $0x20] sm:$0xff]  }
  0xb6   : > { %8670 = vmatprep.subr.bf16.mxu0 %v9842_v1 }
  0xb8   : > { %8655 = vmatmul.mubr.msk.bf16.vlgmr.msra.gmra.mrb[36].mxu0 %vm255_vm1, %v1889_v3  ;;  %8685 = vmatpush3.bf16.msra.mxu1 %v9477_v5  ;;  %v9509_v3 = vld [vmem:[%s11759_s1 + $0x28] sm:$0xff]  }
  0xb9   : > { %8671 = vmatpush3.bf16.msra.mxu0 %v9474_v4  ;;  %8678 = vmatprep.mubr.msk.bf16.mxu0 %vm9843_vm0, %v9842_v1  ;;  %v9508_v4 = vld [vmem:[%s11759_s1 + $0x108] sm:$0xff]  }
  0xba   : > { %8672 = vmatprep.subr.bf16.mxu0 %v9842_v1  ;;  %8686 = vmatprep.subr.bf16.mxu1 %v9842_v1  ;;  %v10564_v5 = vld [vmem:[%s9975_s10 + $0x2c] ss:$0 sps:$4 sm:$0x11]  }
  0xbc   : > { %8687 = vmatpush3.bf16.msra.mxu1 %v9479_v8  ;;  %v9510_v8 = vld [vmem:[%s11759_s1 + $0x110] sm:$0xff]  }
  0xbd   : > { %8673 = vmatpush3.bf16.msra.mxu0 %v9476_v6  ;;  %8688 = vmatprep.subr.bf16.mxu1 %v9842_v1  ;;  %v2701_v6 = vshll.u32 %v10546_v63, 16 }
  0xbe   : > { %8674 = vmatprep.subr.bf16.mxu0 %v9842_v1 }
  0xc0   : > { %8689 = vmatpush3.bf16.msra.mxu1 %v9481_v12  ;;  %v2706_v12 = vshll.u32 %v10564_v5, 16 }
  0xc1   : > { %8675 = vmatpush3.bf16.msra.mxu0 %v9478_v10  ;;  %8706 = vmatprep.subr.bf16.mxu1 %v9842_v1  ;;  %v2699_v10 = vshrl.u32 %v10546_v63, 16 }
  0xc2   : > { %8676 = vmatprep.subr.bf16.mxu0 %v9842_v1  ;;  %v2708_v16 = vrot.slane %v2706_v12, 1  ;;  %v9534_v12 = vld [vmem:[%s9975_s10 + $0x30] sm:$0xff]  }
  0xc3   : > { %8691 = vmatmul.mubr.msk.bf16.vlgmr.msra.gmra.mrb[40].mxu1 %vm255_vm1, %v9483_v15 }
  0xc4   : > { %8707 = vmatpush3.bf16.msra.mxu1 %v9485_v18  ;;  %8714 = vmatprep.mubr.msk.bf16.mxu1 %vm9843_vm0, %v9842_v1  ;;  %v2583_v18 = vrot.slane %v7325_v13, 1 }
  0xc5   : > { %8677 = vmatpush3.bf16.msra.mxu0 %v9480_v11  ;;  %8708 = vmatprep.subr.bf16.mxu1 %v9842_v1  ;;  %v2703_v11 = vrot.slane %v2701_v6, 1 }
  0xc6   : > { %8694 = vmatprep.subr.bf16.mxu0 %v9842_v1 }
  0xc7   : > { %v2704_v15 = vor.u32 %v2703_v11, %v2699_v10 }
  0xc8   : > { %8679 = vmatmul.mubr.msk.bf16.vlgmr.msra.gmra.mrb[40].mxu0 %vm255_vm1, %v2039_v19  ;;  %8709 = vmatpush3.bf16.msra.mxu1 %v9487_v22  ;;  %v2584_v19 = vrot.slane %v10502_v45, 1  ;;  %v9523_v45 = vld [vmem:[%s11759_s1 + $0x18] sm:$0xff]  }
  0xc9   : > { %8695 = vmatpush3.bf16.msra.mxu0 %v9484_v20  ;;  %8702 = vmatprep.mubr.msk.bf16.mxu0 %vm9843_vm0, %v9842_v1  ;;  %v2709_v20 = vsel %vm218_vm2, %v2704_v15, %v2708_v16  ;;  %v9537_v15 = vld [vmem:[%s11759_s1 + $0xa0] sm:$0xff]   ;;  %v9540_v16 = vld [vmem:[%s11759_s1 + $0xc8] sm:$0xff]  }
  0xca   : > { %8696 = vmatprep.subr.bf16.mxu0 %v9842_v1  ;;  %8710 = vmatprep.subr.bf16.mxu1 %v9842_v1  ;;  %v2585_v22 = vsel %vm380_vm3, %v2583_v18, %v2584_v19  ;;  %v9539_v19 = vld [vmem:[%s11759_s1 + $0xa8] sm:$0xff]  }
  0xcc   : > { %8711 = vmatpush3.bf16.msra.mxu1 %v9489_v27  ;;  %v9519_v27 = vld [vmem:[%s11759_s1 + $0x8] sm:$0xff]  }
  0xcd   : > { %8697 = vmatpush3.bf16.msra.mxu0 %v9486_v25  ;;  %8712 = vmatprep.subr.bf16.mxu1 %v9842_v1  ;;  %v7358_v25 = vld [vmem:[%s9975_s10 + $0x24] sm:$0xe] }
  0xce   : > { %8698 = vmatprep.subr.bf16.mxu0 %v9842_v1  ;;  %v7367_v29 = vcombine.low %v7358_v25, %v10534_v59 }
  0xd0   : > { %8713 = vmatpush3.bf16.msra.mxu1 %v9491_v34 }
  0xd1   : > { %8699 = vmatpush3.bf16.msra.mxu0 %v9488_v30  ;;  %8730 = vmatprep.subr.bf16.mxu1 %v9842_v1 }
  0xd2   : > { %8700 = vmatprep.subr.bf16.mxu0 %v9842_v1 }
  0xd3   : > { %8715 = vmatmul.mubr.msk.bf16.vlgmr.msra.gmra.mrb[44].mxu1 %vm255_vm1, %v2310_v41  ;;  %v2857_v41 = vrot.slane %v7367_v29, 1 }
  0xd4   : > { %8731 = vmatpush3.bf16.msra.mxu1 %v9496_v42  ;;  %8738 = vmatprep.mubr.msk.bf16.mxu1 %vm9843_vm0, %v9842_v1  ;;  %v2858_v42 = vrot.slane %v10564_v5, 1 }
  0xd5   : > { %8701 = vmatpush3.bf16.msra.mxu0 %v9490_v33  ;;  %8732 = vmatprep.subr.bf16.mxu1 %v9842_v1 }
  0xd6   : > { %8718 = vmatprep.subr.bf16.mxu0 %v9842_v1 }
  0xd8   : > { %8703 = vmatmul.mubr.msk.bf16.vlgmr.msra.gmra.mrb[44].mxu0 %vm255_vm1, %v2225_v46  ;;  %8733 = vmatpush3.bf16.msra.mxu1 %v9498_v47  ;;  %v2859_v46 = vsel %vm380_vm3, %v2857_v41, %v2858_v42  ;;  %v9527_v47 = vld [vmem:[%s11759_s1 + $0x80] sm:$0xff]  }
  0xd9   : > { %8719 = vmatpush3.bf16.msra.mxu0 %v9495_v44  ;;  %8726 = vmatprep.mubr.msk.bf16.mxu0 %vm9843_vm0, %v9842_v1  ;;  %v10633_v44 = vld [vmem:[%s9975_s10 + $0x34] sm:$0xf]  ;;  %v9548_v41 = vld [vmem:[%s11759_s1 + $0x100] sm:$0xff]  }
  0xda   : > { %8720 = vmatprep.subr.bf16.mxu0 %v9842_v1  ;;  %8734 = vmatprep.subr.bf16.mxu1 %v9842_v1  ;;  %v7400_v48 = vcombine.low %v7389_v43, %v10633_v44  ;;  %v9547_v43 = vld [vmem:[%s11759_s1 + $0xe0] sm:$0xff]  }
  0xdc   : > { %8735 = vmatpush3.bf16.msra.mxu1 %v9500_v51  ;;  %v9528_v51 = vld [vmem:[%s11759_s1 + $0x68] sm:$0xff]   ;;  %v3037_v53 = vshll.u32 %v7400_v48, 16  ;;  %v3035_v57 = vshrl.u32 %v7400_v48, 16  ;;  %v7458_v48 = vld [vmem:[%s9975_s10 + $0x3c] sm:$0xe] }
  0xdd   : > { %8721 = vmatpush3.bf16.msra.mxu0 %v9497_v49  ;;  %8736 = vmatprep.subr.bf16.mxu1 %v9842_v1  ;;  %v9526_v49 = vld [vmem:[%s11759_s1 + $0x60] sm:$0xff]  }
  0xde   : > { %8722 = vmatprep.subr.bf16.mxu0 %v9842_v1 }
  0xe0   : > { %8737 = vmatpush3.bf16.msra.mxu1 %v9502_v55  ;;  %v9531_v55 = vld [vmem:[%s11759_s1 + $0x90] sm:$0xff]  }
  0xe1   : > { %8723 = vmatpush3.bf16.msra.mxu0 %v9499_v54  ;;  %8754 = vmatprep.subr.bf16.mxu1 %v9842_v1 }
  0xe2   : > { %8724 = vmatprep.subr.bf16.mxu0 %v9842_v1 }
  0xe3   : > { %8739 = vmatmul.mubr.msk.bf16.vlgmr.msra.gmra.mrb[48].mxu1 %vm255_vm1, %v2500_v61  ;;  %v3042_v61 = vshll.u32 %v10660_v52, 16 }
  0xe4   : > { %8755 = vmatpush3.bf16.msra.mxu1 %v9507_v62  ;;  %8762 = vmatprep.mubr.msk.bf16.mxu1 %vm9843_vm0, %v9842_v1 }
  0xe5   : > { %8725 = vmatpush3.bf16.msra.mxu0 %v9501_v60  ;;  %8756 = vmatprep.subr.bf16.mxu1 %v9842_v1  ;;  %v3039_v60 = vrot.slane %v3037_v53, 1  ;;  %v3044_v10 = vrot.slane %v3042_v61, 1 }
  0xe6   : > { %8742 = vmatprep.subr.bf16.mxu0 %v9842_v1 }
  0xe8   : > { %8727 = vmatmul.mubr.msk.bf16.vlgmr.msra.gmra.mrb[48].mxu0 %vm255_vm1, %v9503_v0  ;;  %8757 = vmatpush3.bf16.msra.mxu1 %v9509_v3  ;;  %v9530_v3 = vld [vmem:[%s11759_s1 + $0x70] sm:$0xff]  }
  0xe9   : > { %8743 = vmatpush3.bf16.msra.mxu0 %v9506_v2  ;;  %8750 = vmatprep.mubr.msk.bf16.mxu0 %vm9843_vm0, %v9842_v1 }
  0xea   : > { %8744 = vmatprep.subr.bf16.mxu0 %v9842_v1  ;;  %8758 = vmatprep.subr.bf16.mxu1 %v9842_v1 }
  0xec   : > { %8759 = vmatpush3.bf16.msra.mxu1 %v9511_v9  ;;  %v3040_v9 = vor.u32 %v3039_v60, %v3035_v57 }
  0xed   : > { %8745 = vmatpush3.bf16.msra.mxu0 %v9508_v4  ;;  %8760 = vmatprep.subr.bf16.mxu1 %v9842_v1 }
  0xee   : > { %8746 = vmatprep.subr.bf16.mxu0 %v9842_v1  ;;  %v3045_v13 = vsel %vm218_vm2, %v3040_v9, %v3044_v10 }
  0xf0   : > { %8761 = vmatpush3.bf16.msra.mxu1 %v9513_v14  ;;  %v9538_v14 = vld [vmem:[%s11759_s1 + $0xc0] sm:$0xff]  }
  0xf1   : > { %8747 = vmatpush3.bf16.msra.mxu0 %v9510_v8  ;;  %8778 = vmatprep.subr.bf16.mxu1 %v9842_v1  ;;  %v9533_v8 = vld [vmem:[%s11759_s1 + $0x98] sm:$0xff]  }
  0xf2   : > { %8748 = vmatprep.subr.bf16.mxu0 %v9842_v1 }
  0xf3   : > { %8763 = vmatmul.mubr.msk.bf16.vlgmr.msra.gmra.mrb[52].mxu1 %vm255_vm1, %v2709_v20 }
  0xf4   : > { %8779 = vmatpush3.bf16.msra.mxu1 %v9518_v21  ;;  %8786 = vmatprep.mubr.msk.bf16.mxu1 %vm9843_vm0, %v9842_v1 }
  0xf5   : > { %8749 = vmatpush3.bf16.msra.mxu0 %v9512_v17  ;;  %8780 = vmatprep.subr.bf16.mxu1 %v9842_v1  ;;  %v7407_v17 = vld [vmem:[%s9975_s10 + $0x30] sm:$0xe] }
  0xf6   : > { %8766 = vmatprep.subr.bf16.mxu0 %v9842_v1  ;;  %v360_v26 = vpop.f32.mrb[0].mxu1  ;;  %v7416_v29 = vcombine.low %v7407_v17, %v10633_v44 }
  0xf7   : > { %v8452_v28 = vpop.f32.mrb[1].mxu1 }
  0xf8   : > { %8751 = vmatmul.mubr.msk.bf16.vlgmr.msra.gmra.mrb[52].mxu0 %vm255_vm1, %v2585_v22  ;;  %v363_v31 = vpop.f32.mrb[2].mxu1  ;;  %8781 = vmatpush3.bf16.msra.mxu1 %v9520_v24  ;;  %v9541_v28 = vld [vmem:[%s11759_s1 + $0xb0] sm:$0xff]  }
  0xf9   : > { %8767 = vmatpush3.bf16.msra.mxu0 %v9517_v23  ;;  %8774 = vmatprep.mubr.msk.bf16.mxu0 %vm9843_vm0, %v9842_v1  ;;  %v8453_v35 = vpop.f32.mrb[3].mxu1  ;;  %v9542_v23 = vld [vmem:[%s11759_s1 + $0xd0] sm:$0xff]  }
  0xfa   : > { %8768 = vmatprep.subr.bf16.mxu0 %v9842_v1  ;;  %8782 = vmatprep.subr.bf16.mxu1 %v9842_v1  ;;  %v3129_v35 = vrot.slane %v10660_v52, 1  ;;  %v9552_v52 = vld [vmem:[%s11759_s1 + $0x110] sm:$0xff]  }
  0xfb   : > { %v293_v30 = vpop.f32.mrb[0].mxu0 }
  0xfc   : > { %v361_v33 = vadd.f32 %v360_v26, %v293_v30  ;;  %v8440_v34 = vpop.f32.mrb[1].mxu0  ;;  %8783 = vmatpush3.bf16.msra.mxu1 %v9522_v32 }
  0xfd   : > { %v296_v36 = vpop.f32.mrb[2].mxu0  ;;  %8769 = vmatpush3.bf16.msra.mxu0 %v9519_v27  ;;  %8784 = vmatprep.subr.bf16.mxu1 %v9842_v1  ;;  %v9544_v34 = vld [vmem:[%s11759_s1 + $0xd8] sm:$0xff]  }
  0xfe   : > { %v364_v38 = vadd.f32 %v363_v31, %v296_v36  ;;  %v8441_v39 = vpop.f32.mrb[3].mxu0  ;;  %8770 = vmatprep.subr.bf16.mxu0 %v9842_v1 }
  0xff   : > { %v7440_v39 = vld [vmem:[%s9975_s10 + $0x3c] sm:$0xf] }
 0x100   : > { %8785 = vmatpush3.bf16.msra.mxu1 %v9524_v40  ;;  %v7441_v40 = vld [vmem:[%s9975_s10 + $0x40] sm:$0xf] }
 0x101   : > { %8771 = vmatpush3.bf16.msra.mxu0 %v9521_v37  ;;  %8802 = vmatprep.subr.bf16.mxu1 %v9842_v1  ;;  %v3128_v37 = vrot.slane %v7416_v29, 1  ;;  %v7451_v44 = vcombine.low %v7440_v39, %v7441_v40  ;;  %v9565_v39 = vld [vmem:[%s11759_s1 + $0x18] sm:$0xff]  }
 0x102   : > { %8772 = vmatprep.subr.bf16.mxu0 %v9842_v1 }
 0x103   : > { %8787 = vmatmul.mubr.msk.bf16.vlgmr.msra.gmra.mrb[56].mxu1 %vm255_vm1, %v2859_v46  ;;  %v3130_v42 = vsel %vm380_vm3, %v3128_v37, %v3129_v35  ;;  %v9549_v46 = vld [vmem:[%s11759_s1 + $0xe8] sm:$0xff]  }
 0x104   : > { %8803 = vmatpush3.bf16.msra.mxu1 %v9527_v47  ;;  %8810 = vmatprep.mubr.msk.bf16.mxu1 %vm9843_vm0, %v9842_v1  ;;  %v9550_v47 = vld [vmem:[%s11759_s1 + $0x108] sm:$0xff]  }
 0x105   : > { %8773 = vmatpush3.bf16.msra.mxu0 %v9523_v45  ;;  %8804 = vmatprep.subr.bf16.mxu1 %v9842_v1  ;;  %v9556_v45 = vld [vmem:[%s9975_s10 + $0x44] ss:$0 sps:$4 sm:$0x11]  }
 0x106   : > { %8790 = vmatprep.subr.bf16.mxu0 %v9842_v1  ;;  %v535_v54 = vpop.f32.mrb[4].mxu1  ;;  %v3317_v57 = vshll.u32 %v9556_v45, 16 }
 0x107   : > { %v8476_v56 = vpop.f32.mrb[5].mxu1 }
 0x108   : > { %8775 = vmatmul.mubr.msk.bf16.vlgmr.msra.gmra.mrb[56].mxu0 %vm255_vm1, %v10546_v63  ;;  %v538_v59 = vpop.f32.mrb[6].mxu1  ;;  %8805 = vmatpush3.bf16.msra.mxu1 %v9529_v50  ;;  %v3312_v50 = vshll.u32 %v7451_v44, 16  ;;  %v3310_v56 = vshrl.u32 %v7451_v44, 16 }
 0x109   : > { %8791 = vmatpush3.bf16.msra.mxu0 %v9526_v49  ;;  %8798 = vmatprep.mubr.msk.bf16.mxu0 %vm9843_vm0, %v9842_v1  ;;  %v8477_v0 = vpop.f32.mrb[7].mxu1 }
 0x10a   : > { %8792 = vmatprep.subr.bf16.mxu0 %v9842_v1  ;;  %8806 = vmatprep.subr.bf16.mxu1 %v9842_v1 }
 0x10b   : > { %v445_v58 = vpop.f32.mrb[4].mxu0 }
 0x10c   : > { %v452_v62 = vadd.f32 %v445_v58, %v361_v33  ;;  %v8464_v63 = vpop.f32.mrb[5].mxu0  ;;  %8807 = vmatpush3.bf16.msra.mxu1 %v9531_v55  ;;  %v9543_v33 = vld [vmem:[%s11759_s1 + $0xb8] sm:$0xff]   ;;  %v9551_v55 = vld [vmem:[%s11759_s1 + $0xf0] sm:$0xff]   ;;  %v7467_v58 = vcombine.low %v7458_v48, %v7441_v40 }
 0x10d   : > { %v448_v2 = vpop.f32.mrb[6].mxu0  ;;  %8793 = vmatpush3.bf16.msra.mxu0 %v9528_v51  ;;  %8808 = vmatprep.subr.bf16.mxu1 %v9842_v1  ;;  %v3314_v63 = vrot.slane %v3312_v50, 1  ;;  %v9568_v50 = vld [vmem:[%s11759_s1 + $0x40] sm:$0xff]  }
 0x10e   : > { %v542_v4 = vadd.f32 %v535_v54, %v452_v62  ;;  %v453_v5 = vadd.f32 %v448_v2, %v364_v38  ;;  %v8465_v6 = vpop.f32.mrb[7].mxu0  ;;  %8794 = vmatprep.subr.bf16.mxu0 %v9842_v1  ;;  %v9546_v38 = vld [vmem:[%s9975_s10 + $0x3c] sm:$0xff]  }
 0x10f   : > { %v3319_v6 = vrot.slane %v3317_v57, 1  ;;  %v3315_v10 = vor.u32 %v3314_v63, %v3310_v56  ;;  %v9572_v63 = vld [vmem:[%s11759_s1 + $0x50] sm:$0xff]  }
 0x110   : > { %v543_v11 = vadd.f32 %v538_v59, %v453_v5  ;;  %8809 = vmatpush3.bf16.msra.mxu1 %v9533_v8  ;;  %v9554_v5 = vld [vmem:[%s11759_s1 + $0x118] sm:$0xff]   ;;  %v3404_v8 = vrot.slane %v9556_v45, 1 }
 0x111   : > { %8795 = vmatpush3.bf16.msra.mxu0 %v9530_v3  ;;  %8826 = vmatprep.subr.bf16.mxu1 %v9842_v1 }
 0x112   : > { %8796 = vmatprep.subr.bf16.mxu0 %v9842_v1 }
 0x113   : > { %8811 = vmatmul.mubr.msk.bf16.vlgmr.msra.gmra.mrb[60].mxu1 %vm255_vm1, %v3045_v13 }
 0x114   : > { %8827 = vmatpush3.bf16.msra.mxu1 %v9538_v14  ;;  %8834 = vmatprep.mubr.msk.bf16.mxu1 %vm9843_vm0, %v9842_v1  ;;  %v9559_v14 = vld [vmem:[%s11759_s1] sm:$0xff]  }
 0x115   : > { %8797 = vmatpush3.bf16.msra.mxu0 %v9532_v7  ;;  %8828 = vmatprep.subr.bf16.mxu1 %v9842_v1  ;;  %v3403_v7 = vrot.slane %v7467_v58, 1  ;;  %v9573_v58 = vld [vmem:[%s11759_s1 + $0x70] sm:$0xff]  }
 0x116   : > { %8814 = vmatprep.subr.bf16.mxu0 %v9842_v1  ;;  %v723_v18 = vpop.f32.mrb[8].mxu1 }
 0x117   : > { %v8500_v20 = vpop.f32.mrb[9].mxu1  ;;  %v3405_v13 = vsel %vm380_vm3, %v3403_v7, %v3404_v8  ;;  %v7532_v7 = vld [vmem:[%s9975_s10 + $0x40] sm:$0xf] }
 0x118   : > { %8799 = vmatmul.mubr.msk.bf16.vlgmr.msra.gmra.mrb[60].mxu0 %vm255_vm1, %v9534_v12  ;;  %v726_v22 = vpop.f32.mrb[10].mxu1  ;;  %8829 = vmatpush3.bf16.msra.mxu1 %v9540_v16  ;;  %v10774_v12 = vld [vmem:[%s9975_s10 + $0x34] sm:$0xf]  ;;  %v9558_v16 = vld [vmem:[%s11759_s1 + $0x20] sm:$0xff]  }
 0x119   : > { %8815 = vmatpush3.bf16.msra.mxu0 %v9537_v15  ;;  %8822 = vmatprep.mubr.msk.bf16.mxu0 %vm9843_vm0, %v9842_v1  ;;  %v8501_v26 = vpop.f32.mrb[11].mxu1  ;;  %v3320_v15 = vsel %vm218_vm2, %v3315_v10, %v3319_v6  ;;  %v10798_v20 = vld [vmem:[%s9975_s10 + $0x38] ss:$0 sps:$4 sm:$0x11]   ;;  %v7531_v6 = vld [vmem:[%s9975_s10 + $0x3c] sm:$0xf] }
 0x11a   : > { %8816 = vmatprep.subr.bf16.mxu0 %v9842_v1  ;;  %8830 = vmatprep.subr.bf16.mxu1 %v9842_v1 }
 0x11b   : > { %v637_v21 = vpop.f32.mrb[8].mxu0 }
 0x11c   : > { %v644_v24 = vadd.f32 %v637_v21, %v542_v4  ;;  %v8488_v25 = vpop.f32.mrb[9].mxu0  ;;  %8831 = vmatpush3.bf16.msra.mxu1 %v9542_v23  ;;  %v9553_v4 = vld [vmem:[%s11759_s1 + $0xf8] sm:$0xff]   ;;  %v10805_v21 = vld [vmem:[%s11760_s2] ss:$0 sm:$0xff] }
 0x11d   : > { %v640_v27 = vpop.f32.mrb[10].mxu0  ;;  %8817 = vmatpush3.bf16.msra.mxu0 %v9539_v19  ;;  %8832 = vmatprep.subr.bf16.mxu1 %v9842_v1  ;;  %v9561_v19 = vld [vmem:[%s11759_s1 + $0x8] sm:$0xff]   ;;  %v9563_v25 = vld [vmem:[%s11759_s1 + $0x10] sm:$0xff]  }
 0x11e   : > { %v730_v30 = vadd.f32 %v723_v18, %v644_v24  ;;  %v645_v31 = vadd.f32 %v640_v27, %v543_v11  ;;  %v8489_v32 = vpop.f32.mrb[11].mxu0  ;;  %8818 = vmatprep.subr.bf16.mxu0 %v9842_v1  ;;  %v7477_v11 = vld [vmem:[%s9975_s10 + $0x30] sm:$0xf]  ;;  %v9560_v18 = vld [vmem:[%s11759_s1 + $0x28] sm:$0xff]  }
 0x11f   : > { %v7488_v17 = vcombine.low %v7477_v11, %v10774_v12  ;;  %v3678_v11 = vrot.slane %v10798_v20, 1 }
 0x120   : > { %v731_v36 = vadd.f32 %v726_v22, %v645_v31  ;;  %8833 = vmatpush3.bf16.msra.mxu1 %v9544_v34 }
 0x121   : > { %8819 = vmatpush3.bf16.msra.mxu0 %v9541_v28  ;;  %8850 = vmatprep.subr.bf16.mxu1 %v9842_v1  ;;  %v3521_v23 = vshll.u32 %v7488_v17, 16  ;;  %v9562_v28 = vld [vmem:[%s11759_s1 + $0x30] sm:$0xff]   ;;  %v3519_v29 = vshrl.u32 %v7488_v17, 16 }
 0x122   : > { %8820 = vmatprep.subr.bf16.mxu0 %v9842_v1 }
 0x123   : > { %8835 = vmatmul.mubr.msk.bf16.vlgmr.msra.gmra.mrb[64].mxu1 %vm255_vm1, %v9546_v38  ;;  %v3523_v35 = vrot.slane %v3521_v23, 1 }
 0x124   : > { %8851 = vmatpush3.bf16.msra.mxu1 %v9548_v41  ;;  %8858 = vmatprep.mubr.msk.bf16.mxu1 %vm9843_vm0, %v9842_v1 }
 0x125   : > { %8821 = vmatpush3.bf16.msra.mxu0 %v9543_v33  ;;  %8852 = vmatprep.subr.bf16.mxu1 %v9842_v1 }
 0x126   : > { %8838 = vmatprep.subr.bf16.mxu0 %v9842_v1  ;;  %v915_v49 = vpop.f32.mrb[12].mxu1 }
 0x127   : > { %v8524_v51 = vpop.f32.mrb[13].mxu1 }
 0x128   : > { %8823 = vmatmul.mubr.msk.bf16.vlgmr.msra.gmra.mrb[64].mxu0 %vm255_vm1, %v3130_v42  ;;  %v918_v54 = vpop.f32.mrb[14].mxu1  ;;  %8853 = vmatpush3.bf16.msra.mxu1 %v9550_v47  ;;  %v9564_v42 = vld [vmem:[%s11759_s1 + $0x38] sm:$0xff]   ;;  %v9569_v47 = vld [vmem:[%s11759_s1 + $0x60] sm:$0xff]   ;;  %v9571_v51 = vld [vmem:[%s11759_s1 + $0x68] sm:$0xff]  }
 0x129   : > { %8839 = vmatpush3.bf16.msra.mxu0 %v9547_v43  ;;  %8846 = vmatprep.mubr.msk.bf16.mxu0 %vm9843_vm0, %v9842_v1  ;;  %v8525_v61 = vpop.f32.mrb[15].mxu1  ;;  %v3524_v43 = vor.u32 %v3523_v35, %v3519_v29 }
 0x12a   : > { %8840 = vmatprep.subr.bf16.mxu0 %v9842_v1  ;;  %8854 = vmatprep.subr.bf16.mxu1 %v9842_v1 }
 0x12b   : > { %v813_v53 = vpop.f32.mrb[12].mxu0 }
 0x12c   : > { %v820_v59 = vadd.f32 %v813_v53, %v730_v30  ;;  %v8512_v60 = vpop.f32.mrb[13].mxu0  ;;  %8855 = vmatpush3.bf16.msra.mxu1 %v9552_v52  ;;  %v3526_v30 = vshll.u32 %v10798_v20, 16  ;;  %v7500_v52 = vld [vmem:[%s9975_s10 + $0x30] sm:$0xe] }
 0x12d   : > { %v816_v62 = vpop.f32.mrb[14].mxu0  ;;  %8841 = vmatpush3.bf16.msra.mxu0 %v9549_v46  ;;  %8856 = vmatprep.subr.bf16.mxu1 %v9842_v1 }
 0x12e   : > { %v922_v0 = vadd.f32 %v915_v49, %v820_v59  ;;  %v821_v2 = vadd.f32 %v816_v62, %v731_v36  ;;  %v8513_v3 = vpop.f32.mrb[15].mxu0  ;;  %8842 = vmatprep.subr.bf16.mxu0 %v9842_v1  ;;  %v3528_v44 = vrot.slane %v3526_v30, 1 }
 0x130   : > { %v923_v9 = vadd.f32 %v918_v54, %v821_v2  ;;  %8857 = vmatpush3.bf16.msra.mxu1 %v9554_v5  ;;  %v3529_v49 = vsel %vm218_vm2, %v3524_v43, %v3528_v44  ;;  %v9570_v54 = vld [vmem:[%s11759_s1 + $0x48] sm:$0xff]   ;;  %v9575_v5 = vld [vmem:[%s11759_s1 + $0x78] sm:$0xff]  }
 0x131   : > { %8843 = vmatpush3.bf16.msra.mxu0 %v9551_v55  ;;  %8874 = vmatprep.subr.bf16.mxu1 %v9842_v1  ;;  %v9584_v44 = vld [vmem:[%s11759_s1 + $0x98] sm:$0xff]  }
 0x132   : > { %8844 = vmatprep.subr.bf16.mxu0 %v9842_v1 }
 0x133   : > { %8859 = vmatmul.mubr.msk.bf16.vlgmr.msra.gmra.mrb[68].mxu1 %vm255_vm1, %v3405_v13  ;;  %v9579_v13 = vld [vmem:[%s11759_s1 + $0xa0] sm:$0xff]  }
 0x134   : > { %8875 = vmatpush3.bf16.msra.mxu1 %v9559_v14  ;;  %8882 = vmatprep.mubr.msk.bf16.mxu1 %vm9843_vm0, %v9842_v1  ;;  %v7542_v14 = vcombine.low %v7531_v6, %v7532_v7 }
 0x135   : > { %8845 = vmatpush3.bf16.msra.mxu0 %v9553_v4  ;;  %8876 = vmatprep.subr.bf16.mxu1 %v9842_v1 }
 0x136   : > { %8862 = vmatprep.subr.bf16.mxu0 %v9842_v1  ;;  %v10807_v22 = vpop.f32.mrb[16].mxu1  ;;  %v3857_v20 = vshll.u32 %v7542_v14, 16 }
 0x137   : > { %v8548_v24 = vpop.f32.mrb[17].mxu1 }
 0x138   : > { %8847 = vmatmul.mubr.msk.bf16.vlgmr.msra.gmra.mrb[68].mxu0 %vm255_vm1, %v3320_v15  ;;  %v10815_v27 = vpop.f32.mrb[18].mxu1  ;;  %8877 = vmatpush3.bf16.msra.mxu1 %v9561_v19  ;;  %v9587_v15 = vld [vmem:[%s9975_s10 + $0x44] ss:$0 sps:$4 sm:$0x11]   ;;  %v9581_v19 = vld [vmem:[%s11759_s1 + $0xa8] sm:$0xff]   ;;  %v9583_v24 = vld [vmem:[%s11759_s1 + $0xb0] sm:$0xff]  }
 0x139   : > { %8863 = vmatpush3.bf16.msra.mxu0 %v9558_v16  ;;  %8870 = vmatprep.mubr.msk.bf16.mxu0 %vm9843_vm0, %v9842_v1  ;;  %v8549_v33 = vpop.f32.mrb[19].mxu1 }
 0x13a   : > { %8864 = vmatprep.subr.bf16.mxu0 %v9842_v1  ;;  %8878 = vmatprep.subr.bf16.mxu1 %v9842_v1  ;;  %v3949_v33 = vrot.slane %v9587_v15, 1 }
 0x13b   : > { %v1001_v26 = vpop.f32.mrb[16].mxu0 }
 0x13c   : > { %v1008_v31 = vadd.f32 %v1001_v26, %v922_v0  ;;  %v8536_v32 = vpop.f32.mrb[17].mxu0  ;;  %8879 = vmatpush3.bf16.msra.mxu1 %v9563_v25  ;;  %v7509_v0 = vcombine.low %v7500_v52, %v10774_v12  ;;  %v9577_v12 = vld [vmem:[%s9975_s10 + $0x3c] sm:$0xff]   ;;  %v3862_v25 = vshll.u32 %v9587_v15, 16 }
 0x13d   : > { %v1004_v34 = vpop.f32.mrb[18].mxu0  ;;  %8865 = vmatpush3.bf16.msra.mxu0 %v9560_v18  ;;  %8880 = vmatprep.subr.bf16.mxu1 %v9842_v1  ;;  %v9580_v18 = vld [vmem:[%s11759_s1 + $0x88] sm:$0xff]   ;;  %v3859_v32 = vrot.slane %v3857_v20, 1 }
 0x13e   : > { %v1016_v36 = vadd.f32 %v10805_v21, %v1008_v31  ;;  %v1009_v37 = vadd.f32 %v1004_v34, %v923_v9  ;;  %v8537_v38 = vpop.f32.mrb[19].mxu0  ;;  %8866 = vmatprep.subr.bf16.mxu0 %v9842_v1  ;;  %v9574_v9 = vld [vmem:[%s11759_s1 + $0x58] sm:$0xff]   ;;  %v3677_v10 = vrot.slane %v7509_v0, 1  ;;  %v9582_v31 = vld [vmem:[%s11759_s1 + $0x90] sm:$0xff]  }
 0x13f   : > { %v9585_v38 = vld [vmem:[%s11759_s1 + $0xb8] sm:$0xff]  }
 0x140   : > { %v1018_v40 = vmax.f32 %v1016_v36, 0.0  ;;  %v1017_v41 = vadd.f32 %v10805_v21, %v1009_v37  ;;  %8881 = vmatpush3.bf16.msra.mxu1 %v9565_v39  ;;  %v3679_v16 = vsel %vm380_vm3, %v3677_v10, %v3678_v11  ;;  %v3864_v39 = vrot.slane %v3862_v25, 1  ;;  %v9596_v11 = vld [vmem:[%s11759_s1 + $0xf8] sm:$0xff]   ;;  %v11002_v25 = vld [vmem:[%s9975_s10 + $0x44] ss:$0 sps:$4 sm:$0x11]  }
 0x141   : > { %8867 = vmatpush3.bf16.msra.mxu0 %v9562_v28  ;;  %8898 = vmatprep.subr.bf16.mxu1 %v9842_v1 }
 0x142   : > { %v8053_v45 = vpack.c.bf16 %v1018_v40, %v1018_v40  ;;  %v1019_v46 = vmax.f32 %v1017_v41, 0.0  ;;  %8868 = vmatprep.subr.bf16.mxu0 %v9842_v1 }
 0x143   : > { %8883 = vmatmul.mubr.msk.bf16.vlgmr.msra.gmra.mrb[72].mxu1 %vm255_vm1, %v7488_v17  ;;  %v9578_v17 = vld [vmem:[%s11759_s1 + $0x80] sm:$0xff]  }
 0x144   : > { %1029 = vst.msk [vmem:[%s10838_s8] sm:$0xf] %vm1028_vm4, %v8053_v45  ;;  %v8054_v48 = vpack.c.bf16 %v1019_v46, %v1019_v46  ;;  %8899 = vmatpush3.bf16.msra.mxu1 %v9569_v47  ;;  %8906 = vmatprep.mubr.msk.bf16.mxu1 %vm9843_vm0, %v9842_v1  ;;  %v7582_v45 = vld [vmem:[%s9975_s10 + $0x48] sm:$0xf]  ;;  %v10929_v46 = vld [vmem:[%s9975_s10 + $0x4c] sm:$0xf] }
 0x145   : > { %8869 = vmatpush3.bf16.msra.mxu0 %v9564_v42  ;;  %8900 = vmatprep.subr.bf16.mxu1 %v9842_v1 }
 0x146   : > { %1030 = vst.msk [vmem:[%s10838_s8 + $0x4] sm:$0xf] %vm1028_vm4, %v8054_v48  ;;  %8886 = vmatprep.subr.bf16.mxu0 %v9842_v1  ;;  %v1281_v53 = vpop.f32.mrb[20].mxu1 }
 0x147   : > { %v8572_v55 = vpop.f32.mrb[21].mxu1 }
 0x148   : > { %8871 = vmatmul.mubr.msk.bf16.vlgmr.msra.gmra.mrb[72].mxu0 %vm255_vm1, %v3529_v49  ;;  %v1284_v57 = vpop.f32.mrb[22].mxu1  ;;  %8901 = vmatpush3.bf16.msra.mxu1 %v9571_v51  ;;  %v7593_v51 = vcombine.low %v7582_v45, %v10929_v46  ;;  %v9591_v55 = vld [vmem:[%s11759_s1 + $0xc8] sm:$0xff]  }
 0x149   : > { %8887 = vmatpush3.bf16.msra.mxu0 %v9568_v50  ;;  %8894 = vmatprep.mubr.msk.bf16.mxu0 %vm9843_vm0, %v9842_v1  ;;  %v8573_v61 = vpop.f32.mrb[23].mxu1  ;;  %v9590_v50 = vld [vmem:[%s11759_s1 + $0xe0] sm:$0xff]  }
 0x14a   : > { %8888 = vmatprep.subr.bf16.mxu0 %v9842_v1  ;;  %8902 = vmatprep.subr.bf16.mxu1 %v9842_v1  ;;  %v4130_v61 = vshrl.u32 %v7593_v51, 16 }
 0x14b   : > { %v1198_v56 = vpop.f32.mrb[20].mxu0 }
 0x14c   : > { %v1199_v59 = vadd.f32 %v1198_v56, %v10807_v22  ;;  %v8560_v60 = vpop.f32.mrb[21].mxu0  ;;  %8903 = vmatpush3.bf16.msra.mxu1 %v9573_v58  ;;  %v7549_v22 = vld [vmem:[%s9975_s10 + $0x3c] sm:$0xe]  ;;  %v10954_v56 = vld [vmem:[%s9975_s10 + $0x50] ss:$0 sps:$4 sm:$0x11]  }
 0x14d   : > { %v1201_v62 = vpop.f32.mrb[22].mxu0  ;;  %8889 = vmatpush3.bf16.msra.mxu0 %v9570_v54  ;;  %8904 = vmatprep.subr.bf16.mxu1 %v9842_v1  ;;  %v7558_v28 = vcombine.low %v7549_v22, %v7532_v7  ;;  %v9592_v54 = vld [vmem:[%s11759_s1 + $0xe8] sm:$0xff]   ;;  %v9593_v7 = vld [vmem:[%s11759_s1 + $0xd0] sm:$0xff]  }
 0x14e   : > { %v1288_v2 = vadd.f32 %v1281_v53, %v1199_v59  ;;  %v1202_v3 = vadd.f32 %v1201_v62, %v10815_v27  ;;  %v8561_v4 = vpop.f32.mrb[23].mxu0  ;;  %8890 = vmatprep.subr.bf16.mxu0 %v9842_v1  ;;  %v3855_v27 = vshrl.u32 %v7542_v14, 16  ;;  %v9589_v53 = vld [vmem:[%s11759_s1 + $0xc0] sm:$0xff]   ;;  %v9594_v59 = vld [vmem:[%s11759_s1 + $0xf0] sm:$0xff]   ;;  %v7619_v14 = vld [vmem:[%s9975_s10 + $0x3c] sm:$0xf] }
 0x14f   : > { %v3948_v43 = vrot.slane %v7558_v28, 1  ;;  %v9597_v22 = vld [vmem:[%s9975_s10 + $0x48] sm:$0xff]  }
 0x150   : > { %v1289_v8 = vadd.f32 %v1284_v57, %v1202_v3  ;;  %8905 = vmatpush3.bf16.msra.mxu1 %v9575_v5  ;;  %v3860_v48 = vor.u32 %v3859_v32, %v3855_v27  ;;  %v4132_v57 = vshll.u32 %v7593_v51, 16  ;;  %v9602_v28 = vld [vmem:[%s11759_s1 + $0x108] sm:$0xff]  }
 0x151   : > { %8891 = vmatpush3.bf16.msra.mxu0 %v9572_v63  ;;  %8922 = vmatprep.subr.bf16.mxu1 %v9842_v1  ;;  %v3950_v49 = vsel %vm380_vm3, %v3948_v43, %v3949_v33  ;;  %v9605_v33 = vld [vmem:[%s11759_s1 + $0x30] sm:$0xff]  }
 0x152   : > { %8892 = vmatprep.subr.bf16.mxu0 %v9842_v1  ;;  %v3865_v52 = vsel %vm218_vm2, %v3860_v48, %v3864_v39  ;;  %v4134_v0 = vrot.slane %v4132_v57, 1 }
 0x153   : > { %8907 = vmatmul.mubr.msk.bf16.vlgmr.msra.gmra.mrb[76].mxu1 %vm255_vm1, %v9577_v12 }
 0x154   : > { %8923 = vmatpush3.bf16.msra.mxu1 %v9579_v13  ;;  %8930 = vmatprep.mubr.msk.bf16.mxu1 %vm9843_vm0, %v9842_v1  ;;  %v4135_v12 = vor.u32 %v4134_v0, %v4130_v61 }
 0x155   : > { %8893 = vmatpush3.bf16.msra.mxu0 %v9574_v9  ;;  %8924 = vmatprep.subr.bf16.mxu1 %v9842_v1 }
 0x156   : > { %8910 = vmatprep.subr.bf16.mxu0 %v9842_v1  ;;  %v1467_v23 = vpop.f32.mrb[24].mxu1 }
 0x157   : > { %v8596_v26 = vpop.f32.mrb[25].mxu1 }
 0x158   : > { %8895 = vmatmul.mubr.msk.bf16.vlgmr.msra.gmra.mrb[76].mxu0 %vm255_vm1, %v3679_v16  ;;  %v1470_v30 = vpop.f32.mrb[26].mxu1  ;;  %8925 = vmatpush3.bf16.msra.mxu1 %v9581_v19  ;;  %v10976_v16 = vld [vmem:[%s9975_s10 + $0x40] sm:$0xf] }
 0x159   : > { %8911 = vmatpush3.bf16.msra.mxu0 %v9578_v17  ;;  %8918 = vmatprep.mubr.msk.bf16.mxu0 %vm9843_vm0, %v9842_v1  ;;  %v8597_v36 = vpop.f32.mrb[27].mxu1  ;;  %v9595_v17 = vld [vmem:[%s11759_s1 + $0xd8] sm:$0xff]   ;;  %v9601_v19 = vld [vmem:[%s11759_s1 + $0x20] sm:$0xff]   ;;  %v10987_v20 = vcombine.low %v7619_v14, %v10976_v16 }
 0x15a   : > { %8912 = vmatprep.subr.bf16.mxu0 %v9842_v1  ;;  %8926 = vmatprep.subr.bf16.mxu1 %v9842_v1  ;;  %v4346_v36 = vshll.u32 %v11002_v25, 16 }
 0x15b   : > { %v1366_v29 = vpop.f32.mrb[24].mxu0  ;;  %v4341_v26 = vshll.u32 %v10987_v20, 16 }
 0x15c   : > { %v1373_v34 = vadd.f32 %v1366_v29, %v1288_v2  ;;  %v8584_v35 = vpop.f32.mrb[25].mxu0  ;;  %8927 = vmatpush3.bf16.msra.mxu1 %v9583_v24  ;;  %v4137_v2 = vshll.u32 %v10954_v56, 16  ;;  %v9603_v24 = vld [vmem:[%s11759_s1 + $0x28] sm:$0xff]  }
 0x15d   : > { %v1369_v37 = vpop.f32.mrb[26].mxu0  ;;  %8913 = vmatpush3.bf16.msra.mxu0 %v9580_v18  ;;  %8928 = vmatprep.subr.bf16.mxu1 %v9842_v1  ;;  %v4343_v35 = vrot.slane %v4341_v26, 1  ;;  %v9619_v26 = vld [vmem:[%s11759_s1 + $0x60] sm:$0xff]  }
 0x15e   : > { %v1474_v40 = vadd.f32 %v1467_v23, %v1373_v34  ;;  %v1374_v41 = vadd.f32 %v1369_v37, %v1289_v8  ;;  %v8585_v42 = vpop.f32.mrb[27].mxu0  ;;  %8914 = vmatprep.subr.bf16.mxu0 %v9842_v1  ;;  %v4139_v13 = vrot.slane %v4137_v2, 1  ;;  %v9600_v23 = vld [vmem:[%s11759_s1 + $0x100] sm:$0xff]   ;;  %v4339_v34 = vshrl.u32 %v10987_v20, 16  ;;  %v9612_v2 = vld [vmem:[%s11759_s1 + $0x8] sm:$0xff]  }
 0x160   : > { %v1475_v47 = vadd.f32 %v1470_v30, %v1374_v41  ;;  %8929 = vmatpush3.bf16.msra.mxu1 %v9585_v38  ;;  %v4140_v18 = vsel %vm218_vm2, %v4135_v12, %v4139_v13  ;;  %v7600_v30 = vld [vmem:[%s9975_s10 + $0x48] sm:$0xe]  ;;  %v9604_v41 = vld [vmem:[%s11759_s1 + $0x110] sm:$0xff]   ;;  %v4344_v48 = vor.u32 %v4343_v35, %v4339_v34 }
 0x161   : > { %8915 = vmatpush3.bf16.msra.mxu0 %v9582_v31  ;;  %8946 = vmatprep.subr.bf16.mxu1 %v9842_v1  ;;  %v7609_v42 = vcombine.low %v7600_v30, %v10929_v46  ;;  %v9606_v46 = vld [vmem:[%s11759_s1 + $0x118] sm:$0xff]   ;;  %v9614_v12 = vld [vmem:[%s11759_s1 + $0x10] sm:$0xff]  }
 0x162   : > { %8916 = vmatprep.subr.bf16.mxu0 %v9842_v1 }
 0x163   : > { %8931 = vmatmul.mubr.msk.bf16.vlgmr.msra.gmra.mrb[80].mxu1 %vm255_vm1, %v3950_v49  ;;  %v4348_v49 = vrot.slane %v4346_v36, 1 }
 0x164   : > { %8947 = vmatpush3.bf16.msra.mxu1 %v9590_v50  ;;  %8954 = vmatprep.mubr.msk.bf16.mxu1 %vm9843_vm0, %v9842_v1 }
 0x165   : > { %8917 = vmatpush3.bf16.msra.mxu0 %v9584_v44  ;;  %8948 = vmatprep.subr.bf16.mxu1 %v9842_v1  ;;  %v4349_v57 = vsel %vm218_vm2, %v4344_v48, %v4348_v49 }
 0x166   : > { %8934 = vmatprep.subr.bf16.mxu0 %v9842_v1  ;;  %v1641_v58 = vpop.f32.mrb[28].mxu1 }
 0x167   : > { %v8620_v60 = vpop.f32.mrb[29].mxu1 }
 0x168   : > { %8919 = vmatmul.mubr.msk.bf16.vlgmr.msra.gmra.mrb[80].mxu0 %vm255_vm1, %v3865_v52  ;;  %v1644_v63 = vpop.f32.mrb[30].mxu1  ;;  %8949 = vmatpush3.bf16.msra.mxu1 %v9592_v54  ;;  %v4223_v52 = vrot.slane %v7609_v42, 1  ;;  %v9623_v42 = vld [vmem:[%s11759_s1 + $0x70] sm:$0xff]  }
 0x169   : > { %8935 = vmatpush3.bf16.msra.mxu0 %v9589_v53  ;;  %8942 = vmatprep.mubr.msk.bf16.mxu0 %vm9843_vm0, %v9842_v1  ;;  %v8621_v5 = vpop.f32.mrb[31].mxu1  ;;  %v4224_v53 = vrot.slane %v10954_v56, 1 }
 0x16a   : > { %8936 = vmatprep.subr.bf16.mxu0 %v9842_v1  ;;  %8950 = vmatprep.subr.bf16.mxu1 %v9842_v1 }
 0x16b   : > { %v1552_v62 = vpop.f32.mrb[28].mxu0  ;;  %v4225_v56 = vsel %vm380_vm3, %v4223_v52, %v4224_v53  ;;  %v9631_v52 = vld [vmem:[%s11759_s1 + $0xc0] sm:$0xff]   ;;  %v9627_v53 = vld [vmem:[%s9975_s10 + $0x48] sm:$0xff]  }
 0x16c   : > { %v1559_v3 = vadd.f32 %v1552_v62, %v1474_v40  ;;  %v8608_v4 = vpop.f32.mrb[29].mxu0  ;;  %8951 = vmatpush3.bf16.msra.mxu1 %v9594_v59  ;;  %v9613_v62 = vld [vmem:[%s11759_s1 + $0x48] sm:$0xff]  }
 0x16d   : > { %v1555_v6 = vpop.f32.mrb[30].mxu0  ;;  %8937 = vmatpush3.bf16.msra.mxu0 %v9591_v55  ;;  %8952 = vmatprep.subr.bf16.mxu1 %v9842_v1 }
 0x16e   : > { %v1648_v8 = vadd.f32 %v1641_v58, %v1559_v3  ;;  %v1560_v9 = vadd.f32 %v1555_v6, %v1475_v47  ;;  %v8609_v10 = vpop.f32.mrb[31].mxu0  ;;  %8938 = vmatprep.subr.bf16.mxu0 %v9842_v1  ;;  %v9607_v47 = vld [vmem:[%s11759_s1 + $0x38] sm:$0xff]   ;;  %v9611_v58 = vld [vmem:[%s11759_s1 + $0x40] sm:$0xff]   ;;  %v9615_v6 = vld [vmem:[%s11759_s1 + $0x50] sm:$0xff]  }
 0x170   : > { %v1649_v15 = vadd.f32 %v1644_v63, %v1560_v9  ;;  %8953 = vmatpush3.bf16.msra.mxu1 %v9596_v11  ;;  %v7642_v63 = vld [vmem:[%s9975_s10 + $0x3c] sm:$0xe] }
 0x171   : > { %8939 = vmatpush3.bf16.msra.mxu0 %v9593_v7  ;;  %8970 = vmatprep.subr.bf16.mxu1 %v9842_v1  ;;  %v7651_v7 = vcombine.low %v7642_v63, %v10976_v16 }
 0x172   : > { %8940 = vmatprep.subr.bf16.mxu0 %v9842_v1 }
 0x173   : > { %8955 = vmatmul.mubr.msk.bf16.vlgmr.msra.gmra.mrb[84].mxu1 %vm255_vm1, %v4140_v18  ;;  %v4497_v16 = vrot.slane %v7651_v7, 1  ;;  %v7673_v18 = vld [vmem:[%s9975_s10 + $0x48] sm:$0xf] }
 0x174   : > { %8971 = vmatpush3.bf16.msra.mxu1 %v9601_v19  ;;  %8978 = vmatprep.mubr.msk.bf16.mxu1 %vm9843_vm0, %v9842_v1  ;;  %v11081_v19 = vld [vmem:[%s9975_s10 + $0x4c] sm:$0xf] }
 0x175   : > { %8941 = vmatpush3.bf16.msra.mxu0 %v9595_v17  ;;  %8972 = vmatprep.subr.bf16.mxu1 %v9842_v1  ;;  %v4498_v17 = vrot.slane %v11002_v25, 1  ;;  %v7684_v25 = vcombine.low %v7673_v18, %v11081_v19  ;;  %v9640_v18 = vld [vmem:[%s11759_s1 + $0xe0] sm:$0xff]  }
 0x176   : > { %8958 = vmatprep.subr.bf16.mxu0 %v9842_v1  ;;  %v1827_v27 = vpop.f32.mrb[32].mxu1 }
 0x177   : > { %v8644_v29 = vpop.f32.mrb[33].mxu1  ;;  %v4675_v35 = vshrl.u32 %v7684_v25, 16 }
 0x178   : > { %8943 = vmatmul.mubr.msk.bf16.vlgmr.msra.gmra.mrb[84].mxu0 %vm255_vm1, %v9597_v22  ;;  %v1830_v32 = vpop.f32.mrb[34].mxu1  ;;  %8973 = vmatpush3.bf16.msra.mxu1 %v9603_v24  ;;  %v9616_v22 = vld [vmem:[%s11759_s1 + $0x18] sm:$0xff]   ;;  %v9620_v24 = vld [vmem:[%s11759_s1 + $0x80] sm:$0xff]   ;;  %v4677_v29 = vshll.u32 %v7684_v25, 16  ;;  %v9642_v25 = vld [vmem:[%s11759_s1 + $0xe8] sm:$0xff]  }
 0x179   : > { %8959 = vmatpush3.bf16.msra.mxu0 %v9600_v23  ;;  %8966 = vmatprep.mubr.msk.bf16.mxu0 %vm9843_vm0, %v9842_v1  ;;  %v8645_v39 = vpop.f32.mrb[35].mxu1  ;;  %v4499_v23 = vsel %vm380_vm3, %v4497_v16, %v4498_v17  ;;  %v9641_v16 = vld [vmem:[%s11759_s1 + $0x100] sm:$0xff]  }
 0x17a   : > { %8960 = vmatprep.subr.bf16.mxu0 %v9842_v1  ;;  %8974 = vmatprep.subr.bf16.mxu1 %v9842_v1  ;;  %v4679_v36 = vrot.slane %v4677_v29, 1 }
 0x17b   : > { %v1742_v31 = vpop.f32.mrb[32].mxu0 }
 0x17c   : > { %v1749_v37 = vadd.f32 %v1742_v31, %v1648_v8  ;;  %v8632_v38 = vpop.f32.mrb[33].mxu0  ;;  %8975 = vmatpush3.bf16.msra.mxu1 %v9605_v33  ;;  %v9621_v31 = vld [vmem:[%s11759_s1 + $0x68] sm:$0xff]   ;;  %v4680_v48 = vor.u32 %v4679_v36, %v4675_v35  ;;  %v9644_v36 = vld [vmem:[%s11759_s1 + $0xf0] sm:$0xff]  }
 0x17d   : > { %v1745_v40 = vpop.f32.mrb[34].mxu0  ;;  %8961 = vmatpush3.bf16.msra.mxu0 %v9602_v28  ;;  %8976 = vmatprep.subr.bf16.mxu1 %v9842_v1  ;;  %v11104_v28 = vld [vmem:[%s9975_s10 + $0x50] ss:$0 sps:$4 sm:$0x11]  }
 0x17e   : > { %v1834_v43 = vadd.f32 %v1827_v27, %v1749_v37  ;;  %v1750_v44 = vadd.f32 %v1745_v40, %v1649_v15  ;;  %v8633_v45 = vpop.f32.mrb[35].mxu0  ;;  %8962 = vmatprep.subr.bf16.mxu0 %v9842_v1  ;;  %v9617_v15 = vld [vmem:[%s11759_s1 + $0x58] sm:$0xff]   ;;  %v9622_v27 = vld [vmem:[%s11759_s1 + $0x88] sm:$0xff]   ;;  %v4682_v37 = vshll.u32 %v11104_v28, 16 }
 0x180   : > { %v1836_v50 = vadd.f32 %v10805_v21, %v1834_v43  ;;  %v1835_v51 = vadd.f32 %v1830_v32, %v1750_v44  ;;  %8977 = vmatpush3.bf16.msra.mxu1 %v9607_v47  ;;  %v9626_v47 = vld [vmem:[%s11759_s1 + $0x98] sm:$0xff]   ;;  %v4684_v49 = vrot.slane %v4682_v37, 1 }
 0x181   : > { %8963 = vmatpush3.bf16.msra.mxu0 %v9604_v41  ;;  %8994 = vmatprep.subr.bf16.mxu1 %v9842_v1 }
 0x182   : > { %v1838_v54 = vmax.f32 %v1836_v50, 0.0  ;;  %v1837_v55 = vadd.f32 %v10805_v21, %v1835_v51  ;;  %8964 = vmatprep.subr.bf16.mxu0 %v9842_v1  ;;  %v9610_v21 = vld [vmem:[%s11759_s1] sm:$0xff]   ;;  %v9625_v51 = vld [vmem:[%s11759_s1 + $0x78] sm:$0xff]  }
 0x183   : > { %8979 = vmatmul.mubr.msk.bf16.vlgmr.msra.gmra.mrb[88].mxu1 %vm255_vm1, %v4349_v57 }
 0x184   : > { %v8055_v59 = vpack.c.bf16 %v1838_v54, %v1838_v54  ;;  %v1839_v60 = vmax.f32 %v1837_v55, 0.0  ;;  %8995 = vmatpush3.bf16.msra.mxu1 %v9611_v58  ;;  %9002 = vmatprep.mubr.msk.bf16.mxu1 %vm9843_vm0, %v9842_v1  ;;  %v9630_v54 = vld [vmem:[%s11759_s1 + $0xa0] sm:$0xff]   ;;  %v9633_v55 = vld [vmem:[%s11759_s1 + $0xc8] sm:$0xff]  }
 0x185   : > { %8965 = vmatpush3.bf16.msra.mxu0 %v9606_v46  ;;  %8996 = vmatprep.subr.bf16.mxu1 %v9842_v1  ;;  %v4685_v46 = vsel %vm218_vm2, %v4680_v48, %v4684_v49  ;;  %v9632_v58 = vld [vmem:[%s11759_s1 + $0xa8] sm:$0xff]   ;;  %v9646_v48 = vld [vmem:[%s11759_s1 + $0xf8] sm:$0xff]  }
 0x186   : > { %7191 = vst.msk [vmem:[%s10838_s8 + $0x8] sm:$0xf] %vm1028_vm4, %v8055_v59  ;;  %v8056_v61 = vpack.c.bf16 %v1839_v60, %v1839_v60  ;;  %8982 = vmatprep.subr.bf16.mxu0 %v9842_v1  ;;  %v2018_v0 = vpop.f32.mrb[36].mxu1  ;;  %v7691_v60 = vld [vmem:[%s9975_s10 + $0x48] sm:$0xe] }
 0x187   : > { %v8668_v3 = vpop.f32.mrb[37].mxu1 }
 0x188   : > { %7192 = vst.msk [vmem:[%s10838_s8 + $0xc] sm:$0xf] %vm1028_vm4, %v8056_v61  ;;  %8967 = vmatmul.mubr.msk.bf16.vlgmr.msra.gmra.mrb[88].mxu0 %vm255_vm1, %v4225_v56  ;;  %v2021_v5 = vpop.f32.mrb[38].mxu1  ;;  %8997 = vmatpush3.bf16.msra.mxu1 %v9613_v62  ;;  %v9635_v61 = vld [vmem:[%s11759_s1 + $0xd0] sm:$0xff]  }
 0x189   : > { %8983 = vmatpush3.bf16.msra.mxu0 %v9610_v21  ;;  %8990 = vmatprep.mubr.msk.bf16.mxu0 %vm9843_vm0, %v9842_v1  ;;  %v8669_v10 = vpop.f32.mrb[39].mxu1  ;;  %v9634_v3 = vld [vmem:[%s11759_s1 + $0xb0] sm:$0xff]  }
 0x18a   : > { %8984 = vmatprep.subr.bf16.mxu0 %v9842_v1  ;;  %8998 = vmatprep.subr.bf16.mxu1 %v9842_v1  ;;  %v9636_v10 = vld [vmem:[%s11759_s1 + $0xb8] sm:$0xff]  }
 0x18b   : > { %v1951_v4 = vpop.f32.mrb[36].mxu0 }
 0x18c   : > { %v2019_v8 = vadd.f32 %v2018_v0, %v1951_v4  ;;  %v8656_v9 = vpop.f32.mrb[37].mxu0  ;;  %8999 = vmatpush3.bf16.msra.mxu1 %v9615_v6  ;;  %v7700_v4 = vcombine.low %v7691_v60, %v11081_v19  ;;  %v9653_v60 = vld [vmem:[%s11759_s1 + $0x28] sm:$0xff]  }
 0x18d   : > { %v1954_v11 = vpop.f32.mrb[38].mxu0  ;;  %8985 = vmatpush3.bf16.msra.mxu0 %v9612_v2  ;;  %9000 = vmatprep.subr.bf16.mxu1 %v9842_v1 }
 0x18e   : > { %v2022_v13 = vadd.f32 %v2021_v5, %v1954_v11  ;;  %v8657_v14 = vpop.f32.mrb[39].mxu0  ;;  %8986 = vmatprep.subr.bf16.mxu0 %v9842_v1  ;;  %v4768_v11 = vrot.slane %v7700_v4, 1 }
 0x18f   : > { %v7724_v14 = vld [vmem:[%s9975_s10 + $0x54] sm:$0xf] }
 0x190   : > { %9001 = vmatpush3.bf16.msra.mxu1 %v9617_v15  ;;  %v7725_v15 = vld [vmem:[%s9975_s10 + $0x58] sm:$0xf] }
 0x191   : > { %8987 = vmatpush3.bf16.msra.mxu0 %v9614_v12  ;;  %9018 = vmatprep.subr.bf16.mxu1 %v9842_v1  ;;  %v4769_v12 = vrot.slane %v11104_v28, 1  ;;  %v7735_v19 = vcombine.low %v7724_v14, %v7725_v15  ;;  %v9658_v14 = vld [vmem:[%s11759_s1 + $0x18] sm:$0xff]  }
 0x192   : > { %8988 = vmatprep.subr.bf16.mxu0 %v9842_v1 }
 0x193   : > { %9003 = vmatmul.mubr.msk.bf16.vlgmr.msra.gmra.mrb[92].mxu1 %vm255_vm1, %v4499_v23  ;;  %v4770_v17 = vsel %vm380_vm3, %v4768_v11, %v4769_v12  ;;  %v7742_v23 = vld [vmem:[%s9975_s10 + $0x54] sm:$0xe]  ;;  %v4950_v37 = vshrl.u32 %v7735_v19, 16 }
 0x194   : > { %9019 = vmatpush3.bf16.msra.mxu1 %v9620_v24  ;;  %9026 = vmatprep.mubr.msk.bf16.mxu1 %vm9843_vm0, %v9842_v1 }
 0x195   : > { %8989 = vmatpush3.bf16.msra.mxu0 %v9616_v22  ;;  %9020 = vmatprep.subr.bf16.mxu1 %v9842_v1  ;;  %v9643_v22 = vld [vmem:[%s11759_s1 + $0x108] sm:$0xff]  }
 0x196   : > { %9006 = vmatprep.subr.bf16.mxu0 %v9842_v1  ;;  %v2186_v30 = vpop.f32.mrb[40].mxu1 }
 0x197   : > { %v8692_v32 = vpop.f32.mrb[41].mxu1 }
 0x198   : > { %8991 = vmatmul.mubr.msk.bf16.vlgmr.msra.gmra.mrb[92].mxu0 %vm255_vm1, %v10987_v20  ;;  %v2189_v34 = vpop.f32.mrb[42].mxu1  ;;  %9021 = vmatpush3.bf16.msra.mxu1 %v9622_v27  ;;  %v9624_v20 = vld [vmem:[%s11759_s1 + $0x90] sm:$0xff]   ;;  %v4952_v27 = vshll.u32 %v7735_v19, 16  ;;  %v7751_v32 = vcombine.low %v7742_v23, %v7725_v15 }
 0x199   : > { %9007 = vmatpush3.bf16.msra.mxu0 %v9619_v26  ;;  %9014 = vmatprep.mubr.msk.bf16.mxu0 %vm9843_vm0, %v9842_v1  ;;  %v8693_v40 = vpop.f32.mrb[43].mxu1  ;;  %v9649_v26 = vld [vmem:[%s9975_s10 + $0x5c] ss:$0 sps:$4 sm:$0x11]  }
 0x19a   : > { %9008 = vmatprep.subr.bf16.mxu0 %v9842_v1  ;;  %9022 = vmatprep.subr.bf16.mxu1 %v9842_v1 }
 0x19b   : > { %v2101_v33 = vpop.f32.mrb[40].mxu0 }
 0x19c   : > { %v2108_v38 = vadd.f32 %v2101_v33, %v2019_v8  ;;  %v8680_v39 = vpop.f32.mrb[41].mxu0  ;;  %9023 = vmatpush3.bf16.msra.mxu1 %v9624_v20  ;;  %v9637_v8 = vld [vmem:[%s11759_s1 + $0xd8] sm:$0xff]  }
 0x19d   : > { %v2104_v41 = vpop.f32.mrb[42].mxu0  ;;  %9009 = vmatpush3.bf16.msra.mxu0 %v9621_v31  ;;  %9024 = vmatprep.subr.bf16.mxu1 %v9842_v1  ;;  %v9645_v31 = vld [vmem:[%s11759_s1 + $0x110] sm:$0xff]   ;;  %v4957_v39 = vshll.u32 %v9649_v26, 16 }
 0x19e   : > { %v2193_v43 = vadd.f32 %v2186_v30, %v2108_v38  ;;  %v2109_v44 = vadd.f32 %v2104_v41, %v2022_v13  ;;  %v8681_v45 = vpop.f32.mrb[43].mxu0  ;;  %9010 = vmatprep.subr.bf16.mxu0 %v9842_v1  ;;  %v9639_v13 = vld [vmem:[%s9975_s10 + $0x54] sm:$0xff]   ;;  %v4954_v38 = vrot.slane %v4952_v27, 1  ;;  %v9661_v27 = vld [vmem:[%s11759_s1 + $0x40] sm:$0xff]  }
 0x19f   : > { %v5044_v45 = vrot.slane %v9649_v26, 1 }
 0x1a0   : > { %v2194_v50 = vadd.f32 %v2189_v34, %v2109_v44  ;;  %9025 = vmatpush3.bf16.msra.mxu1 %v9626_v47  ;;  %v5043_v44 = vrot.slane %v7751_v32, 1  ;;  %v4955_v49 = vor.u32 %v4954_v38, %v4950_v37  ;;  %v7784_v32 = vld [vmem:[%s9975_s10 + $0x48] sm:$0xe] }
 0x1a1   : > { %9011 = vmatpush3.bf16.msra.mxu0 %v9623_v42  ;;  %9042 = vmatprep.subr.bf16.mxu1 %v9842_v1 }
 0x1a2   : > { %9012 = vmatprep.subr.bf16.mxu0 %v9842_v1 }
 0x1a3   : > { %9027 = vmatmul.mubr.msk.bf16.vlgmr.msra.gmra.mrb[96].mxu1 %vm255_vm1, %v4685_v46  ;;  %v11221_v46 = vld [vmem:[%s9975_s10 + $0x4c] sm:$0xf] }
 0x1a4   : > { %9043 = vmatpush3.bf16.msra.mxu1 %v9631_v52  ;;  %9050 = vmatprep.mubr.msk.bf16.mxu1 %vm9843_vm0, %v9842_v1  ;;  %v5045_v52 = vsel %vm380_vm3, %v5043_v44, %v5044_v45  ;;  %v9668_v44 = vld [vmem:[%s11759_s1 + $0x78] sm:$0xff]  }
 0x1a5   : > { %9013 = vmatpush3.bf16.msra.mxu0 %v9625_v51  ;;  %9044 = vmatprep.subr.bf16.mxu1 %v9842_v1  ;;  %v7761_v51 = vld [vmem:[%s9975_s10 + $0x48] sm:$0xf] }
 0x1a6   : > { %9030 = vmatprep.subr.bf16.mxu0 %v9842_v1  ;;  %v2372_v57 = vpop.f32.mrb[44].mxu1 }
 0x1a7   : > { %v8716_v59 = vpop.f32.mrb[45].mxu1 }
 0x1a8   : > { %9015 = vmatmul.mubr.msk.bf16.vlgmr.msra.gmra.mrb[96].mxu0 %vm255_vm1, %v9627_v53  ;;  %v2375_v21 = vpop.f32.mrb[46].mxu1  ;;  %9045 = vmatpush3.bf16.msra.mxu1 %v9633_v55  ;;  %v9652_v53 = vld [vmem:[%s11759_s1] sm:$0xff]  }
 0x1a9   : > { %9031 = vmatpush3.bf16.msra.mxu0 %v9630_v54  ;;  %9038 = vmatprep.mubr.msk.bf16.mxu0 %vm9843_vm0, %v9842_v1  ;;  %v8717_v0 = vpop.f32.mrb[47].mxu1  ;;  %v9651_v55 = vld [vmem:[%s11759_s1 + $0x20] sm:$0xff]  }
 0x1aa   : > { %9032 = vmatprep.subr.bf16.mxu0 %v9842_v1  ;;  %9046 = vmatprep.subr.bf16.mxu1 %v9842_v1  ;;  %v9656_v0 = vld [vmem:[%s11759_s1 + $0x10] sm:$0xff]  }
 0x1ab   : > { %v2287_v56 = vpop.f32.mrb[44].mxu0 }
 0x1ac   : > { %v2294_v62 = vadd.f32 %v2287_v56, %v2193_v43  ;;  %v8704_v63 = vpop.f32.mrb[45].mxu0  ;;  %9047 = vmatpush3.bf16.msra.mxu1 %v9635_v61  ;;  %v9647_v43 = vld [vmem:[%s11759_s1 + $0x118] sm:$0xff]   ;;  %v11250_v56 = vld [vmem:[%s9975_s10 + $0x50] ss:$0 sps:$4 sm:$0x11]  }
 0x1ad   : > { %v2290_v2 = vpop.f32.mrb[46].mxu0  ;;  %9033 = vmatpush3.bf16.msra.mxu0 %v9632_v58  ;;  %9048 = vmatprep.subr.bf16.mxu1 %v9842_v1  ;;  %v9654_v58 = vld [vmem:[%s11759_s1 + $0x8] sm:$0xff]  }
 0x1ae   : > { %v2379_v5 = vadd.f32 %v2372_v57, %v2294_v62  ;;  %v2295_v6 = vadd.f32 %v2290_v2, %v2194_v50  ;;  %v8705_v7 = vpop.f32.mrb[47].mxu0  ;;  %9034 = vmatprep.subr.bf16.mxu0 %v9842_v1  ;;  %v4959_v50 = vrot.slane %v4957_v39, 1  ;;  %v7772_v57 = vcombine.low %v7761_v51, %v11221_v46  ;;  %v9665_v39 = vld [vmem:[%s11759_s1 + $0x50] sm:$0xff]  }
 0x1af   : > { %v7815_v51 = vld [vmem:[%s9975_s10 + $0x54] sm:$0xf] }
 0x1b0   : > { %v2380_v9 = vadd.f32 %v2375_v21, %v2295_v6  ;;  %9049 = vmatpush3.bf16.msra.mxu1 %v9637_v8  ;;  %v4960_v54 = vsel %vm218_vm2, %v4955_v49, %v4959_v50  ;;  %v5161_v21 = vshll.u32 %v7772_v57, 16  ;;  %v9655_v6 = vld [vmem:[%s11759_s1 + $0x30] sm:$0xff]   ;;  %v5159_v7 = vshrl.u32 %v7772_v57, 16 }
 0x1b1   : > { %9035 = vmatpush3.bf16.msra.mxu0 %v9634_v3  ;;  %9066 = vmatprep.subr.bf16.mxu1 %v9842_v1  ;;  %v5318_v49 = vrot.slane %v11250_v56, 1  ;;  %v9670_v50 = vld [vmem:[%s9975_s10 + $0x54] sm:$0xff]  }
 0x1b2   : > { %9036 = vmatprep.subr.bf16.mxu0 %v9842_v1  ;;  %v5163_v8 = vrot.slane %v5161_v21, 1 }
 0x1b3   : > { %9051 = vmatmul.mubr.msk.bf16.vlgmr.msra.gmra.mrb[100].mxu1 %vm255_vm1, %v9639_v13 }
 0x1b4   : > { %9067 = vmatpush3.bf16.msra.mxu1 %v9641_v16  ;;  %9074 = vmatprep.mubr.msk.bf16.mxu1 %vm9843_vm0, %v9842_v1 }
 0x1b5   : > { %9037 = vmatpush3.bf16.msra.mxu0 %v9636_v10  ;;  %9068 = vmatprep.subr.bf16.mxu1 %v9842_v1  ;;  %v11266_v10 = vld [vmem:[%s11760_s2] ss:$0 sm:$0xff] }
 0x1b6   : > { %9054 = vmatprep.subr.bf16.mxu0 %v9842_v1  ;;  %v2562_v24 = vpop.f32.mrb[48].mxu1 }
 0x1b7   : > { %v8740_v28 = vpop.f32.mrb[49].mxu1 }
 0x1b8   : > { %9039 = vmatmul.mubr.msk.bf16.vlgmr.msra.gmra.mrb[100].mxu0 %vm255_vm1, %v4770_v17  ;;  %v2565_v30 = vpop.f32.mrb[50].mxu1  ;;  %9069 = vmatpush3.bf16.msra.mxu1 %v9643_v22  ;;  %v9657_v17 = vld [vmem:[%s11759_s1 + $0x38] sm:$0xff]   ;;  %v9664_v28 = vld [vmem:[%s11759_s1 + $0x68] sm:$0xff]  }
 0x1b9   : > { %9055 = vmatpush3.bf16.msra.mxu0 %v9640_v18  ;;  %9062 = vmatprep.mubr.msk.bf16.mxu0 %vm9843_vm0, %v9842_v1  ;;  %v8741_v20 = vpop.f32.mrb[51].mxu1  ;;  %v5164_v18 = vor.u32 %v5163_v8, %v5159_v7  ;;  %v9675_v7 = vld [vmem:[%s11759_s1 + $0x90] sm:$0xff]  }
 0x1ba   : > { %9056 = vmatprep.subr.bf16.mxu0 %v9842_v1  ;;  %9070 = vmatprep.subr.bf16.mxu1 %v9842_v1  ;;  %v9666_v20 = vld [vmem:[%s11759_s1 + $0x70] sm:$0xff]  }
 0x1bb   : > { %v2461_v29 = vpop.f32.mrb[48].mxu0 }
 0x1bc   : > { %v2468_v33 = vadd.f32 %v2461_v29, %v2379_v5  ;;  %v8728_v34 = vpop.f32.mrb[49].mxu0  ;;  %9071 = vmatpush3.bf16.msra.mxu1 %v9645_v31 }
 0x1bd   : > { %v2464_v35 = vpop.f32.mrb[50].mxu0  ;;  %9057 = vmatpush3.bf16.msra.mxu0 %v9642_v25  ;;  %9072 = vmatprep.subr.bf16.mxu1 %v9842_v1 }
 0x1be   : > { %v2569_v40 = vadd.f32 %v2562_v24, %v2468_v33  ;;  %v2469_v41 = vadd.f32 %v2464_v35, %v2380_v9  ;;  %v8729_v42 = vpop.f32.mrb[51].mxu0  ;;  %9058 = vmatprep.subr.bf16.mxu0 %v9842_v1  ;;  %v5166_v9 = vshll.u32 %v11250_v56, 16  ;;  %v9662_v24 = vld [vmem:[%s11759_s1 + $0x60] sm:$0xff]   ;;  %v9680_v56 = vld [vmem:[%s9975_s10 + $0x5c] ss:$0 sps:$4 sm:$0x11]  }
 0x1c0   : > { %v2570_v47 = vadd.f32 %v2565_v30, %v2469_v41  ;;  %9073 = vmatpush3.bf16.msra.mxu1 %v9647_v43  ;;  %v5168_v19 = vrot.slane %v5166_v9, 1  ;;  %v9663_v30 = vld [vmem:[%s11759_s1 + $0x48] sm:$0xff]  }
 0x1c1   : > { %9059 = vmatpush3.bf16.msra.mxu0 %v9644_v36  ;;  %9090 = vmatprep.subr.bf16.mxu1 %v9842_v1 }
 0x1c2   : > { %9060 = vmatprep.subr.bf16.mxu0 %v9842_v1  ;;  %v5169_v26 = vsel %vm218_vm2, %v5164_v18, %v5168_v19  ;;  %v7866_v19 = vld [vmem:[%s9975_s10 + $0x60] sm:$0xf] }
 0x1c3   : > { %9075 = vmatmul.mubr.msk.bf16.vlgmr.msra.gmra.mrb[104].mxu1 %vm255_vm1, %v5045_v52  ;;  %v9672_v52 = vld [vmem:[%s11759_s1 + $0xa0] sm:$0xff]  }
 0x1c4   : > { %9091 = vmatpush3.bf16.msra.mxu1 %v9652_v53  ;;  %9098 = vmatprep.mubr.msk.bf16.mxu1 %vm9843_vm0, %v9842_v1 }
 0x1c5   : > { %9061 = vmatpush3.bf16.msra.mxu0 %v9646_v48  ;;  %9092 = vmatprep.subr.bf16.mxu1 %v9842_v1 }
 0x1c6   : > { %9078 = vmatprep.subr.bf16.mxu0 %v9842_v1  ;;  %v11242_v59 = vpop.f32.mrb[52].mxu1 }
 0x1c7   : > { %v8764_v61 = vpop.f32.mrb[53].mxu1 }
 0x1c8   : > { %9063 = vmatmul.mubr.msk.bf16.vlgmr.msra.gmra.mrb[104].mxu0 %vm255_vm1, %v4960_v54  ;;  %v11253_v63 = vpop.f32.mrb[54].mxu1  ;;  %9093 = vmatpush3.bf16.msra.mxu1 %v9654_v58  ;;  %v9671_v54 = vld [vmem:[%s11759_s1 + $0x80] sm:$0xff]   ;;  %v7833_v58 = vld [vmem:[%s9975_s10 + $0x54] sm:$0xe] }
 0x1c9   : > { %9079 = vmatpush3.bf16.msra.mxu0 %v9651_v55  ;;  %9086 = vmatprep.mubr.msk.bf16.mxu0 %vm9843_vm0, %v9842_v1  ;;  %v8765_v4 = vpop.f32.mrb[55].mxu1 }
 0x1ca   : > { %9080 = vmatprep.subr.bf16.mxu0 %v9842_v1  ;;  %9094 = vmatprep.subr.bf16.mxu1 %v9842_v1 }
 0x1cb   : > { %v2647_v62 = vpop.f32.mrb[52].mxu0 }
 0x1cc   : > { %v2654_v2 = vadd.f32 %v2647_v62, %v2569_v40  ;;  %v8752_v3 = vpop.f32.mrb[53].mxu0  ;;  %9095 = vmatpush3.bf16.msra.mxu1 %v9656_v0  ;;  %v7793_v40 = vcombine.low %v7784_v32, %v11221_v46  ;;  %v7816_v46 = vld [vmem:[%s9975_s10 + $0x58] sm:$0xf]  ;;  %v9676_v0 = vld [vmem:[%s11759_s1 + $0xb0] sm:$0xff]  }
 0x1cd   : > { %v2650_v5 = vpop.f32.mrb[54].mxu0  ;;  %9081 = vmatpush3.bf16.msra.mxu0 %v9653_v60  ;;  %9096 = vmatprep.subr.bf16.mxu1 %v9842_v1  ;;  %v7826_v55 = vcombine.low %v7815_v51, %v7816_v46  ;;  %v9673_v60 = vld [vmem:[%s11759_s1 + $0x88] sm:$0xff]   ;;  %v9689_v51 = vld [vmem:[%s11759_s1 + $0xf8] sm:$0xff]  }
 0x1ce   : > { %v2656_v11 = vadd.f32 %v11266_v10, %v2654_v2  ;;  %v2655_v12 = vadd.f32 %v2650_v5, %v2570_v47  ;;  %v8753_v13 = vpop.f32.mrb[55].mxu0  ;;  %9082 = vmatprep.subr.bf16.mxu0 %v9842_v1  ;;  %v9667_v47 = vld [vmem:[%s11759_s1 + $0x58] sm:$0xff]   ;;  %v5317_v48 = vrot.slane %v7793_v40, 1  ;;  %v7842_v2 = vcombine.low %v7833_v58, %v7816_v46  ;;  %v11393_v32 = vld [vmem:[%s9975_s10 + $0x68] ss:$0 sps:$4 sm:$0x11]  }
 0x1cf   : > { %v5497_v21 = vshll.u32 %v7826_v55, 16  ;;  %v5495_v8 = vshrl.u32 %v7826_v55, 16  ;;  %v11418_v55 = vld [vmem:[%s9975_s10 + $0x58] sm:$0xf] }
 0x1d0   : > { %v2658_v15 = vmax.f32 %v2656_v11, 0.0  ;;  %v2657_v16 = vadd.f32 %v11266_v10, %v2655_v12  ;;  %9097 = vmatpush3.bf16.msra.mxu1 %v9658_v14  ;;  %v5319_v53 = vsel %vm380_vm3, %v5317_v48, %v5318_v49  ;;  %v5502_v11 = vshll.u32 %v9680_v56, 16 }
 0x1d1   : > { %9083 = vmatpush3.bf16.msra.mxu0 %v9655_v6  ;;  %9114 = vmatprep.subr.bf16.mxu1 %v9842_v1  ;;  %v5499_v9 = vrot.slane %v5497_v21, 1  ;;  %v9693_v21 = vld [vmem:[%s11759_s1 + $0x100] sm:$0xff]  }
 0x1d2   : > { %v8057_v22 = vpack.c.bf16 %v2658_v15, %v2658_v15  ;;  %v2659_v23 = vmax.f32 %v2657_v16, 0.0  ;;  %9084 = vmatprep.subr.bf16.mxu0 %v9842_v1  ;;  %v9678_v15 = vld [vmem:[%s11759_s1 + $0xb8] sm:$0xff]   ;;  %v5588_v16 = vrot.slane %v7842_v2, 1  ;;  %v9695_v2 = vld [vmem:[%s11759_s1 + $0x108] sm:$0xff]  }
 0x1d3   : > { %9099 = vmatmul.mubr.msk.bf16.vlgmr.msra.gmra.mrb[108].mxu1 %vm255_vm1, %v7772_v57  ;;  %v9674_v57 = vld [vmem:[%s11759_s1 + $0xa8] sm:$0xff]  }
 0x1d4   : > { %7333 = vst.msk [vmem:[%s10838_s8 + $0x10] sm:$0xf] %vm1028_vm4, %v8057_v22  ;;  %v8058_v25 = vpack.c.bf16 %v2659_v23, %v2659_v23  ;;  %9115 = vmatpush3.bf16.msra.mxu1 %v9662_v24  ;;  %9122 = vmatprep.mubr.msk.bf16.mxu1 %vm9843_vm0, %v9842_v1  ;;  %v11369_v22 = vld [vmem:[%s9975_s10 + $0x64] sm:$0xf]  ;;  %v9677_v23 = vld [vmem:[%s11759_s1 + $0x98] sm:$0xff]   ;;  %v5500_v24 = vor.u32 %v5499_v9, %v5495_v8 }
 0x1d5   : > { %9085 = vmatpush3.bf16.msra.mxu0 %v9657_v17  ;;  %9116 = vmatprep.subr.bf16.mxu1 %v9842_v1  ;;  %v5589_v17 = vrot.slane %v9680_v56, 1  ;;  %v9690_v56 = vld [vmem:[%s9975_s10 + $0x60] sm:$0xff]  }
 0x1d6   : > { %7334 = vst.msk [vmem:[%s10838_s8 + $0x14] sm:$0xf] %vm1028_vm4, %v8058_v25  ;;  %9102 = vmatprep.subr.bf16.mxu0 %v9842_v1  ;;  %v2921_v29 = vpop.f32.mrb[56].mxu1  ;;  %v5504_v25 = vrot.slane %v5502_v11, 1 }
 0x1d7   : > { %v8788_v31 = vpop.f32.mrb[57].mxu1 }
 0x1d8   : > { %9087 = vmatmul.mubr.msk.bf16.vlgmr.msra.gmra.mrb[108].mxu0 %vm255_vm1, %v5169_v26  ;;  %v2924_v34 = vpop.f32.mrb[58].mxu1  ;;  %9117 = vmatpush3.bf16.msra.mxu1 %v9664_v28  ;;  %v5590_v26 = vsel %vm380_vm3, %v5588_v16, %v5589_v17  ;;  %v7877_v28 = vcombine.low %v7866_v19, %v11369_v22  ;;  %v9685_v31 = vld [vmem:[%s11759_s1 + $0xe8] sm:$0xff]   ;;  %v9697_v16 = vld [vmem:[%s11759_s1 + $0x110] sm:$0xff]  }
 0x1d9   : > { %9103 = vmatpush3.bf16.msra.mxu0 %v9661_v27  ;;  %9110 = vmatprep.mubr.msk.bf16.mxu0 %vm9843_vm0, %v9842_v1  ;;  %v8789_v37 = vpop.f32.mrb[59].mxu1  ;;  %v9683_v27 = vld [vmem:[%s11759_s1 + $0xe0] sm:$0xff]  }
 0x1da   : > { %9104 = vmatprep.subr.bf16.mxu0 %v9842_v1  ;;  %9118 = vmatprep.subr.bf16.mxu1 %v9842_v1 }
 0x1db   : > { %v2838_v33 = vpop.f32.mrb[56].mxu0 }
 0x1dc   : > { %v2839_v35 = vadd.f32 %v2838_v33, %v11242_v59  ;;  %v8776_v36 = vpop.f32.mrb[57].mxu0  ;;  %9119 = vmatpush3.bf16.msra.mxu1 %v9666_v20  ;;  %v5772_v33 = vshll.u32 %v7877_v28, 16  ;;  %v9684_v20 = vld [vmem:[%s11759_s1 + $0xc8] sm:$0xff]  }
 0x1dd   : > { %v2841_v38 = vpop.f32.mrb[58].mxu0  ;;  %9105 = vmatpush3.bf16.msra.mxu0 %v9663_v30  ;;  %9120 = vmatprep.subr.bf16.mxu1 %v9842_v1  ;;  %v9682_v30 = vld [vmem:[%s11759_s1 + $0xc0] sm:$0xff]  }
 0x1de   : > { %v2928_v41 = vadd.f32 %v2921_v29, %v2839_v35  ;;  %v2842_v42 = vadd.f32 %v2841_v38, %v11253_v63  ;;  %v8777_v43 = vpop.f32.mrb[59].mxu0  ;;  %9106 = vmatprep.subr.bf16.mxu0 %v9842_v1  ;;  %v5505_v29 = vsel %vm218_vm2, %v5500_v24, %v5504_v25  ;;  %v9687_v38 = vld [vmem:[%s11759_s1 + $0xf0] sm:$0xff]   ;;  %v5774_v40 = vrot.slane %v5772_v33, 1  ;;  %v9700_v24 = vld [vmem:[%s11759_s1 + $0x38] sm:$0xff]  }
 0x1e0   : > { %v2929_v45 = vadd.f32 %v2924_v34, %v2842_v42  ;;  %9121 = vmatpush3.bf16.msra.mxu1 %v9668_v44 }
 0x1e1   : > { %9107 = vmatpush3.bf16.msra.mxu0 %v9665_v39  ;;  %9138 = vmatprep.subr.bf16.mxu1 %v9842_v1  ;;  %v5770_v39 = vshrl.u32 %v7877_v28, 16 }
 0x1e2   : > { %9108 = vmatprep.subr.bf16.mxu0 %v9842_v1 }
 0x1e3   : > { %9123 = vmatmul.mubr.msk.bf16.vlgmr.msra.gmra.mrb[112].mxu1 %vm255_vm1, %v9670_v50  ;;  %v5775_v46 = vor.u32 %v5774_v40, %v5770_v39  ;;  %v9706_v39 = vld [vmem:[%s11759_s1 + $0x48] sm:$0xff]   ;;  %v7926_v40 = vld [vmem:[%s9975_s10 + $0x54] sm:$0xe] }
 0x1e4   : > { %9139 = vmatpush3.bf16.msra.mxu1 %v9672_v52  ;;  %9146 = vmatprep.mubr.msk.bf16.mxu1 %vm9843_vm0, %v9842_v1 }
 0x1e5   : > { %9109 = vmatpush3.bf16.msra.mxu0 %v9667_v47  ;;  %9140 = vmatprep.subr.bf16.mxu1 %v9842_v1  ;;  %v9686_v47 = vld [vmem:[%s11759_s1 + $0xd0] sm:$0xff]  }
 0x1e6   : > { %9126 = vmatprep.subr.bf16.mxu0 %v9842_v1  ;;  %v3107_v59 = vpop.f32.mrb[60].mxu1 }
 0x1e7   : > { %v8812_v61 = vpop.f32.mrb[61].mxu1 }
 0x1e8   : > { %9111 = vmatmul.mubr.msk.bf16.vlgmr.msra.gmra.mrb[112].mxu0 %vm255_vm1, %v5319_v53  ;;  %v3110_v63 = vpop.f32.mrb[62].mxu1  ;;  %9141 = vmatpush3.bf16.msra.mxu1 %v9674_v57  ;;  %v9688_v57 = vld [vmem:[%s11759_s1 + $0xd8] sm:$0xff]   ;;  %v9696_v61 = vld [vmem:[%s11759_s1 + $0x28] sm:$0xff]  }
 0x1e9   : > { %9127 = vmatpush3.bf16.msra.mxu0 %v9671_v54  ;;  %9134 = vmatprep.mubr.msk.bf16.mxu0 %vm9843_vm0, %v9842_v1  ;;  %v8813_v5 = vpop.f32.mrb[63].mxu1  ;;  %v7903_v54 = vld [vmem:[%s9975_s10 + $0x54] sm:$0xf] }
 0x1ea   : > { %9128 = vmatprep.subr.bf16.mxu0 %v9842_v1  ;;  %9142 = vmatprep.subr.bf16.mxu1 %v9842_v1 }
 0x1eb   : > { %v3006_v62 = vpop.f32.mrb[60].mxu0 }
 0x1ec   : > { %v3013_v3 = vadd.f32 %v3006_v62, %v2928_v41  ;;  %v8800_v4 = vpop.f32.mrb[61].mxu0  ;;  %9143 = vmatpush3.bf16.msra.mxu1 %v9676_v0  ;;  %v5777_v41 = vshll.u32 %v11393_v32, 16  ;;  %v11444_v62 = vld [vmem:[%s9975_s10 + $0x5c] ss:$0 sps:$4 sm:$0x11]  }
 0x1ed   : > { %v3009_v6 = vpop.f32.mrb[62].mxu0  ;;  %9129 = vmatpush3.bf16.msra.mxu0 %v9673_v60  ;;  %9144 = vmatprep.subr.bf16.mxu1 %v9842_v1  ;;  %v11429_v60 = vcombine.low %v7903_v54, %v11418_v55  ;;  %v7884_v4 = vld [vmem:[%s9975_s10 + $0x60] sm:$0xe]  ;;  %v5986_v11 = vshll.u32 %v11444_v62, 16 }
 0x1ee   : > { %v3114_v12 = vadd.f32 %v3107_v59, %v3013_v3  ;;  %v3014_v13 = vadd.f32 %v3009_v6, %v2929_v45  ;;  %v8801_v14 = vpop.f32.mrb[63].mxu0  ;;  %9130 = vmatprep.subr.bf16.mxu0 %v9842_v1  ;;  %v5779_v52 = vrot.slane %v5777_v41, 1  ;;  %v9694_v59 = vld [vmem:[%s11759_s1 + $0x20] sm:$0xff]   ;;  %v7893_v17 = vcombine.low %v7884_v4, %v11369_v22  ;;  %v9699_v22 = vld [vmem:[%s11759_s1 + $0x118] sm:$0xff]  }
 0x1ef   : > { %v5979_v8 = vshrl.u32 %v11429_v60, 16 }
 0x1f0   : > { %v3115_v18 = vadd.f32 %v3110_v63, %v3014_v13  ;;  %9145 = vmatpush3.bf16.msra.mxu1 %v9678_v15  ;;  %v5780_v58 = vsel %vm218_vm2, %v5775_v46, %v5779_v52  ;;  %v5981_v63 = vshll.u32 %v11429_v60, 16  ;;  %v9707_v52 = vld [vmem:[%s11759_s1 + $0x10] sm:$0xff]  }
 0x1f1   : > { %9131 = vmatpush3.bf16.msra.mxu0 %v9675_v7  ;;  %9162 = vmatprep.subr.bf16.mxu1 %v9842_v1  ;;  %v9698_v7 = vld [vmem:[%s11759_s1 + $0x30] sm:$0xff]  }
 0x1f2   : > { %9132 = vmatprep.subr.bf16.mxu0 %v9842_v1  ;;  %v5983_v9 = vrot.slane %v5981_v63, 1 }
 0x1f3   : > { %9147 = vmatmul.mubr.msk.bf16.vlgmr.msra.gmra.mrb[116].mxu1 %vm255_vm1, %v5590_v26  ;;  %v5988_v26 = vrot.slane %v5986_v11, 1 }
 0x1f4   : > { %9163 = vmatpush3.bf16.msra.mxu1 %v9683_v27  ;;  %9170 = vmatprep.mubr.msk.bf16.mxu1 %vm9843_vm0, %v9842_v1  ;;  %v5984_v25 = vor.u32 %v5983_v9, %v5979_v8 }
 0x1f5   : > { %9133 = vmatpush3.bf16.msra.mxu0 %v9677_v23  ;;  %9164 = vmatprep.subr.bf16.mxu1 %v9842_v1 }
 0x1f6   : > { %9150 = vmatprep.subr.bf16.mxu0 %v9842_v1  ;;  %v3281_v34 = vpop.f32.mrb[64].mxu1 }
 0x1f7   : > { %v8836_v35 = vpop.f32.mrb[65].mxu1 }
 0x1f8   : > { %9135 = vmatmul.mubr.msk.bf16.vlgmr.msra.gmra.mrb[116].mxu0 %vm255_vm1, %v5505_v29  ;;  %v3284_v37 = vpop.f32.mrb[66].mxu1  ;;  %9165 = vmatpush3.bf16.msra.mxu1 %v9685_v31  ;;  %v5863_v29 = vrot.slane %v7893_v17, 1 }
 0x1f9   : > { %9151 = vmatpush3.bf16.msra.mxu0 %v9682_v30  ;;  %9158 = vmatprep.mubr.msk.bf16.mxu0 %vm9843_vm0, %v9842_v1  ;;  %v8837_v44 = vpop.f32.mrb[67].mxu1  ;;  %v5864_v30 = vrot.slane %v11393_v32, 1 }
 0x1fa   : > { %9152 = vmatprep.subr.bf16.mxu0 %v9842_v1  ;;  %9166 = vmatprep.subr.bf16.mxu1 %v9842_v1 }
 0x1fb   : > { %v3192_v36 = vpop.f32.mrb[64].mxu0  ;;  %v5865_v32 = vsel %vm380_vm3, %v5863_v29, %v5864_v30  ;;  %v9724_v30 = vld [vmem:[%s11759_s1 + $0xc0] sm:$0xff]  }
 0x1fc   : > { %v3199_v42 = vadd.f32 %v3192_v36, %v3114_v12  ;;  %v8824_v43 = vpop.f32.mrb[65].mxu0  ;;  %9167 = vmatpush3.bf16.msra.mxu1 %v9687_v38 }
 0x1fd   : > { %v3195_v45 = vpop.f32.mrb[66].mxu0  ;;  %9153 = vmatpush3.bf16.msra.mxu0 %v9684_v20  ;;  %9168 = vmatprep.subr.bf16.mxu1 %v9842_v1  ;;  %v9704_v20 = vld [vmem:[%s11759_s1 + $0x40] sm:$0xff]  }
 0x1fe   : > { %v3288_v48 = vadd.f32 %v3281_v34, %v3199_v42  ;;  %v3200_v49 = vadd.f32 %v3195_v45, %v3115_v18  ;;  %v8825_v50 = vpop.f32.mrb[67].mxu0  ;;  %9154 = vmatprep.subr.bf16.mxu0 %v9842_v1  ;;  %v5989_v34 = vsel %vm218_vm2, %v5984_v25, %v5988_v26  ;;  %v9705_v42 = vld [vmem:[%s11759_s1 + $0x8] sm:$0xff]   ;;  %v9719_v25 = vld [vmem:[%s11759_s1 + $0x98] sm:$0xff]  }
 0x200   : > { %v3289_v53 = vadd.f32 %v3284_v37, %v3200_v49  ;;  %9169 = vmatpush3.bf16.msra.mxu1 %v9689_v51  ;;  %v9703_v37 = vld [vmem:[%s11759_s1] sm:$0xff]  }
 0x201   : > { %9155 = vmatpush3.bf16.msra.mxu0 %v9686_v47  ;;  %9186 = vmatprep.subr.bf16.mxu1 %v9842_v1  ;;  %v9708_v47 = vld [vmem:[%s11759_s1 + $0x50] sm:$0xff]  }
 0x202   : > { %9156 = vmatprep.subr.bf16.mxu0 %v9842_v1 }
 0x203   : > { %9171 = vmatmul.mubr.msk.bf16.vlgmr.msra.gmra.mrb[120].mxu1 %vm255_vm1, %v5780_v58  ;;  %v6138_v58 = vrot.slane %v11444_v62, 1  ;;  %v9713_v62 = vld [vmem:[%s11759_s1 + $0x80] sm:$0xff]  }
 0x204   : > { %9187 = vmatpush3.bf16.msra.mxu1 %v9694_v59  ;;  %9194 = vmatprep.mubr.msk.bf16.mxu1 %vm9843_vm0, %v9842_v1  ;;  %v7957_v59 = vld [vmem:[%s9975_s10 + $0x60] sm:$0xf] }
 0x205   : > { %9157 = vmatpush3.bf16.msra.mxu0 %v9688_v57  ;;  %9188 = vmatprep.subr.bf16.mxu1 %v9842_v1 }
 0x206   : > { %9174 = vmatprep.subr.bf16.mxu0 %v9842_v1  ;;  %v3467_v0 = vpop.f32.mrb[68].mxu1 }
 0x207   : > { %v8860_v3 = vpop.f32.mrb[69].mxu1 }
 0x208   : > { %9159 = vmatmul.mubr.msk.bf16.vlgmr.msra.gmra.mrb[120].mxu0 %vm255_vm1, %v9690_v56  ;;  %v3470_v6 = vpop.f32.mrb[70].mxu1  ;;  %9189 = vmatpush3.bf16.msra.mxu1 %v9696_v61  ;;  %v11523_v56 = vld [vmem:[%s9975_s10 + $0x64] sm:$0xf]  ;;  %v11546_v3 = vld [vmem:[%s9975_s10 + $0x68] ss:$0 sps:$4 sm:$0x11]  }
 0x209   : > { %9175 = vmatpush3.bf16.msra.mxu0 %v9693_v21  ;;  %9182 = vmatprep.mubr.msk.bf16.mxu0 %vm9843_vm0, %v9842_v1  ;;  %v8861_v14 = vpop.f32.mrb[71].mxu1  ;;  %v9709_v21 = vld [vmem:[%s11759_s1 + $0x18] sm:$0xff]   ;;  %v7968_v63 = vcombine.low %v7957_v59, %v11523_v56 }
 0x20a   : > { %9176 = vmatprep.subr.bf16.mxu0 %v9842_v1  ;;  %9190 = vmatprep.subr.bf16.mxu1 %v9842_v1 }
 0x20b   : > { %v3382_v5 = vpop.f32.mrb[68].mxu0  ;;  %v6317_v4 = vshll.u32 %v7968_v63, 16  ;;  %v6315_v11 = vshrl.u32 %v7968_v63, 16 }
 0x20c   : > { %v3389_v12 = vadd.f32 %v3382_v5, %v3288_v48  ;;  %v8848_v13 = vpop.f32.mrb[69].mxu0  ;;  %9191 = vmatpush3.bf16.msra.mxu1 %v9698_v7  ;;  %v7935_v48 = vcombine.low %v7926_v40, %v11418_v55  ;;  %v9710_v55 = vld [vmem:[%s11759_s1 + $0x58] sm:$0xff]  }
 0x20d   : > { %v3385_v15 = vpop.f32.mrb[70].mxu0  ;;  %9177 = vmatpush3.bf16.msra.mxu0 %v9695_v2  ;;  %9192 = vmatprep.subr.bf16.mxu1 %v9842_v1  ;;  %v9715_v2 = vld [vmem:[%s11759_s1 + $0x88] sm:$0xff]   ;;  %v6322_v13 = vshll.u32 %v11546_v3, 16 }
 0x20e   : > { %v3474_v18 = vadd.f32 %v3467_v0, %v3389_v12  ;;  %v3390_v19 = vadd.f32 %v3385_v15, %v3289_v53  ;;  %v8849_v23 = vpop.f32.mrb[71].mxu0  ;;  %9178 = vmatprep.subr.bf16.mxu0 %v9842_v1  ;;  %v6137_v57 = vrot.slane %v7935_v48, 1  ;;  %v9712_v0 = vld [vmem:[%s11759_s1 + $0x60] sm:$0xff]   ;;  %v6319_v12 = vrot.slane %v6317_v4, 1 }
 0x210   : > { %v3476_v27 = vadd.f32 %v11266_v10, %v3474_v18  ;;  %v3475_v28 = vadd.f32 %v3470_v6, %v3390_v19  ;;  %9193 = vmatpush3.bf16.msra.mxu1 %v9700_v24  ;;  %v6139_v61 = vsel %vm380_vm3, %v6137_v57, %v6138_v58  ;;  %v9714_v6 = vld [vmem:[%s11759_s1 + $0x68] sm:$0xff]   ;;  %v9716_v18 = vld [vmem:[%s11759_s1 + $0x70] sm:$0xff]   ;;  %v6320_v26 = vor.u32 %v6319_v12, %v6315_v11  ;;  %v9734_v58 = vld [vmem:[%s11759_s1 + $0x100] sm:$0xff]  }
 0x211   : > { %9179 = vmatpush3.bf16.msra.mxu0 %v9697_v16  ;;  %9210 = vmatprep.subr.bf16.mxu1 %v9842_v1  ;;  %v8009_v57 = vld [vmem:[%s9975_s10 + $0x70] sm:$0xf] }
 0x212   : > { %v3478_v31 = vmax.f32 %v3476_v27, 0.0  ;;  %v3477_v33 = vadd.f32 %v11266_v10, %v3475_v28  ;;  %9180 = vmatprep.subr.bf16.mxu0 %v9842_v1  ;;  %v6324_v27 = vrot.slane %v6322_v13, 1  ;;  %v9737_v13 = vld [vmem:[%s11759_s1 + $0xf0] sm:$0xff]  }
 0x213   : > { %9195 = vmatmul.mubr.msk.bf16.vlgmr.msra.gmra.mrb[124].mxu1 %vm255_vm1, %v5989_v34  ;;  %v9726_v34 = vld [vmem:[%s11759_s1 + $0xc8] sm:$0xff]  }
 0x214   : > { %v8059_v35 = vpack.c.bf16 %v3478_v31, %v3478_v31  ;;  %v3479_v36 = vmax.f32 %v3477_v33, 0.0  ;;  %9211 = vmatpush3.bf16.msra.mxu1 %v9704_v20  ;;  %9218 = vmatprep.mubr.msk.bf16.mxu1 %vm9843_vm0, %v9842_v1  ;;  %v6325_v29 = vsel %vm218_vm2, %v6320_v26, %v6324_v27  ;;  %v9720_v31 = vld [vmem:[%s9975_s10 + $0x60] sm:$0xff]   ;;  %v9739_v27 = vld [vmem:[%s11759_s1 + $0xf8] sm:$0xff]  }
 0x215   : > { %9181 = vmatpush3.bf16.msra.mxu0 %v9699_v22  ;;  %9212 = vmatprep.subr.bf16.mxu1 %v9842_v1  ;;  %v9718_v22 = vld [vmem:[%s11759_s1 + $0x78] sm:$0xff]   ;;  %v9723_v33 = vld [vmem:[%s11759_s1 + $0xa0] sm:$0xff]  }
 0x216   : > { %7475 = vst.msk [vmem:[%s10838_s8 + $0x18] sm:$0xf] %vm1028_vm4, %v8059_v35  ;;  %v8060_v38 = vpack.c.bf16 %v3479_v36, %v3479_v36  ;;  %9198 = vmatprep.subr.bf16.mxu0 %v9842_v1  ;;  %v3658_v41 = vpop.f32.mrb[72].mxu1  ;;  %v9725_v35 = vld [vmem:[%s11759_s1 + $0xa8] sm:$0xff]  }
 0x217   : > { %v8884_v43 = vpop.f32.mrb[73].mxu1 }
 0x218   : > { %7476 = vst.msk [vmem:[%s10838_s8 + $0x1c] sm:$0xf] %vm1028_vm4, %v8060_v38  ;;  %9183 = vmatmul.mubr.msk.bf16.vlgmr.msra.gmra.mrb[124].mxu0 %vm255_vm1, %v5865_v32  ;;  %v3661_v45 = vpop.f32.mrb[74].mxu1  ;;  %9213 = vmatpush3.bf16.msra.mxu1 %v9706_v39  ;;  %v7975_v32 = vld [vmem:[%s9975_s10 + $0x60] sm:$0xe]  ;;  %v9728_v39 = vld [vmem:[%s11759_s1 + $0xd0] sm:$0xff]  }
 0x219   : > { %9199 = vmatpush3.bf16.msra.mxu0 %v9703_v37  ;;  %9206 = vmatprep.mubr.msk.bf16.mxu0 %vm9843_vm0, %v9842_v1  ;;  %v8885_v51 = vpop.f32.mrb[75].mxu1 }
 0x21a   : > { %9200 = vmatprep.subr.bf16.mxu0 %v9842_v1  ;;  %9214 = vmatprep.subr.bf16.mxu1 %v9842_v1 }
 0x21b   : > { %v3591_v44 = vpop.f32.mrb[72].mxu0 }
 0x21c   : > { %v3659_v49 = vadd.f32 %v3658_v41, %v3591_v44  ;;  %v8872_v50 = vpop.f32.mrb[73].mxu0  ;;  %9215 = vmatpush3.bf16.msra.mxu1 %v9708_v47  ;;  %v9727_v44 = vld [vmem:[%s11759_s1 + $0xb0] sm:$0xff]  }
 0x21d   : > { %v3594_v46 = vpop.f32.mrb[74].mxu0  ;;  %9201 = vmatpush3.bf16.msra.mxu0 %v9705_v42  ;;  %9216 = vmatprep.subr.bf16.mxu1 %v9842_v1  ;;  %v9730_v50 = vld [vmem:[%s11759_s1 + $0xd8] sm:$0xff]  }
 0x21e   : > { %v3662_v53 = vadd.f32 %v3661_v45, %v3594_v46  ;;  %v8873_v54 = vpop.f32.mrb[75].mxu0  ;;  %9202 = vmatprep.subr.bf16.mxu0 %v9842_v1  ;;  %v7984_v45 = vcombine.low %v7975_v32, %v11523_v56  ;;  %v9729_v46 = vld [vmem:[%s11759_s1 + $0xb8] sm:$0xff]   ;;  %v9733_v56 = vld [vmem:[%s11759_s1 + $0xe0] sm:$0xff]  }
 0x21f   : > { %v9732_v54 = vld [vmem:[%s9975_s10 + $0x6c] sm:$0xff]  }
 0x220   : > { %9217 = vmatpush3.bf16.msra.mxu1 %v9710_v55  ;;  %v8008_v55 = vld [vmem:[%s9975_s10 + $0x6c] sm:$0xf] }
 0x221   : > { %9203 = vmatpush3.bf16.msra.mxu0 %v9707_v52  ;;  %9234 = vmatprep.subr.bf16.mxu1 %v9842_v1  ;;  %v6408_v52 = vrot.slane %v7984_v45, 1 }
 0x222   : > { %9204 = vmatprep.subr.bf16.mxu0 %v9842_v1 }
 0x223   : > { %9219 = vmatmul.mubr.msk.bf16.vlgmr.msra.gmra.mrb[128].mxu1 %vm255_vm1, %v6139_v61  ;;  %v9736_v61 = vld [vmem:[%s11759_s1 + $0x108] sm:$0xff]  }
 0x224   : > { %9235 = vmatpush3.bf16.msra.mxu1 %v9713_v62  ;;  %9242 = vmatprep.mubr.msk.bf16.mxu1 %vm9843_vm0, %v9842_v1  ;;  %v8026_v62 = vld [vmem:[%s9975_s10 + $0x6c] sm:$0xe] }
 0x225   : > { %9205 = vmatpush3.bf16.msra.mxu0 %v9709_v21  ;;  %9236 = vmatprep.subr.bf16.mxu1 %v9842_v1  ;;  %v8019_v21 = vcombine.low %v8008_v55, %v8009_v57 }
 0x226   : > { %9222 = vmatprep.subr.bf16.mxu0 %v9842_v1  ;;  %v3826_v5 = vpop.f32.mrb[76].mxu1 }
 0x227   : > { %v8908_v7 = vpop.f32.mrb[77].mxu1 }
 0x228   : > { %9207 = vmatmul.mubr.msk.bf16.vlgmr.msra.gmra.mrb[128].mxu0 %vm255_vm1, %v11429_v60  ;;  %v3829_v9 = vpop.f32.mrb[78].mxu1  ;;  %9237 = vmatpush3.bf16.msra.mxu1 %v9715_v2  ;;  %v9717_v60 = vld [vmem:[%s11759_s1 + $0x90] sm:$0xff]  }
 0x229   : > { %9223 = vmatpush3.bf16.msra.mxu0 %v9712_v0  ;;  %9230 = vmatprep.mubr.msk.bf16.mxu0 %vm9843_vm0, %v9842_v1  ;;  %v8909_v16 = vpop.f32.mrb[79].mxu1  ;;  %v9735_v0 = vld [vmem:[%s11759_s1 + $0xe8] sm:$0xff]   ;;  %v9742_v2 = vld [vmem:[%s9975_s10 + $0x74] ss:$0 sps:$4 sm:$0x11]   ;;  %s6788_s10 = sshll.u32 %s10838_s8, 4  ;;  %s11698_s10 = int_to_ptr.vmem [resolvable:$true] %s6788_s10 }
 0x22a   : > { %9224 = vmatprep.subr.bf16.mxu0 %v9842_v1  ;;  %9238 = vmatprep.subr.bf16.mxu1 %v9842_v1  ;;  %v9738_v7 = vld [vmem:[%s11759_s1 + $0x110] sm:$0xff]   ;;  %v6597_v16 = vshll.u32 %v9742_v2, 16  ;;  %s9746_s24 = scalar_lea.vmem %s11698_s10, 1024  ;;  %p9753_p2 = scmp.lt.s32.totalorder %s11698_s10, %s9751_s29 }
 0x22b   : > { %v3741_v8 = vpop.f32.mrb[76].mxu0  ;;  %p9747_p13 = scmp.ne.s32.totalorder %s11698_s10, %s9746_s24  ;;  %p9754_p4 = scmp.lt.s32.totalorder %s9752_s4, %s9746_s24 }
 0x22c   : > { %v3748_v14 = vadd.f32 %v3741_v8, %v3659_v49  ;;  %v8896_v15 = vpop.f32.mrb[77].mxu0  ;;  %9239 = vmatpush3.bf16.msra.mxu1 %v9717_v60  ;;  %v8035_v8 = vcombine.low %v8026_v62, %v8009_v57 }
 0x22d   : > { %v3744_v17 = vpop.f32.mrb[78].mxu0  ;;  %9225 = vmatpush3.bf16.msra.mxu0 %v9714_v6  ;;  %9240 = vmatprep.subr.bf16.mxu1 %v9842_v1  ;;  %p9748_p0 = pnand %p9747_p13, %p9918_p3  ;;  %p9755_p5 = por %p9754_p4, %p9753_p2 }
 0x22e   : > { %v3833_v19 = vadd.f32 %v3826_v5, %v3748_v14  ;;  %v3749_v23 = vadd.f32 %v3744_v17, %v3662_v53  ;;  %v8897_v24 = vpop.f32.mrb[79].mxu0  ;;  %9226 = vmatprep.subr.bf16.mxu0 %v9842_v1  ;;  %v6409_v53 = vrot.slane %v11546_v3, 1  ;;  %v6592_v3 = vshll.u32 %v8019_v21, 16 }
 0x22f   : > { %v6590_v14 = vshrl.u32 %v8019_v21, 16  ;;  %v6683_v24 = vrot.slane %v8035_v8, 1  ;;  %p9749_p1 = pneg %p9748_p0 }
 0x230   : > { %v3834_v28 = vadd.f32 %v3829_v9, %v3749_v23  ;;  %9241 = vmatpush3.bf16.msra.mxu1 %v9719_v25  ;;  %v6410_v59 = vsel %vm380_vm3, %v6408_v52, %v6409_v53  ;;  %v6594_v15 = vrot.slane %v6592_v3, 1  ;;  %v9740_v23 = vld [vmem:[%s11759_s1 + $0x118] sm:$0xff]   ;;  %v6684_v25 = vrot.slane %v9742_v2, 1 }
 0x231   : > { %9227 = vmatpush3.bf16.msra.mxu0 %v9716_v18  ;;  %9258 = vmatprep.subr.bf16.mxu1 %v9842_v1  ;;  %p9756_p6 = pnand %p9755_p5, %p9749_p1 }
 0x232   : > { %9228 = vmatprep.subr.bf16.mxu0 %v9842_v1 }
 0x233   : > { %9243 = vmatmul.mubr.msk.bf16.vlgmr.msra.gmra.mrb[132].mxu1 %vm255_vm1, %v6325_v29  ;;  %v6685_v29 = vsel %vm380_vm3, %v6683_v24, %v6684_v25 }
 0x234   : > { %9259 = vmatpush3.bf16.msra.mxu1 %v9724_v30  ;;  %9266 = vmatprep.mubr.msk.bf16.mxu1 %vm9843_vm0, %v9842_v1 }
 0x235   : > { %9229 = vmatpush3.bf16.msra.mxu0 %v9718_v22  ;;  %9260 = vmatprep.subr.bf16.mxu1 %v9842_v1  ;;  %v6599_v22 = vrot.slane %v6597_v16, 1 }
 0x236   : > { %9246 = vmatprep.subr.bf16.mxu0 %v9842_v1  ;;  %v4012_v20 = vpop.f32.mrb[80].mxu1 }
 0x237   : > { %v8932_v36 = vpop.f32.mrb[81].mxu1 }
 0x238   : > { %9231 = vmatmul.mubr.msk.bf16.vlgmr.msra.gmra.mrb[132].mxu0 %vm255_vm1, %v9720_v31  ;;  %v4015_v38 = vpop.f32.mrb[82].mxu1  ;;  %9261 = vmatpush3.bf16.msra.mxu1 %v9726_v34 }
 0x239   : > { %9247 = vmatpush3.bf16.msra.mxu0 %v9723_v33  ;;  %9254 = vmatprep.mubr.msk.bf16.mxu0 %vm9843_vm0, %v9842_v1  ;;  %v8933_v42 = vpop.f32.mrb[83].mxu1 }
 0x23a   : > { %9248 = vmatprep.subr.bf16.mxu0 %v9842_v1  ;;  %9262 = vmatprep.subr.bf16.mxu1 %v9842_v1 }
 0x23b   : > { %v3927_v37 = vpop.f32.mrb[80].mxu0 }
 0x23c   : > { %v3934_v40 = vadd.f32 %v3927_v37, %v3833_v19  ;;  %v8920_v41 = vpop.f32.mrb[81].mxu0  ;;  %9263 = vmatpush3.bf16.msra.mxu1 %v9728_v39 }
 0x23d   : > { %v3930_v43 = vpop.f32.mrb[82].mxu0  ;;  %9249 = vmatpush3.bf16.msra.mxu0 %v9725_v35  ;;  %9264 = vmatprep.subr.bf16.mxu1 %v9842_v1 }
 0x23e   : > { %v4019_v47 = vadd.f32 %v4012_v20, %v3934_v40  ;;  %v3935_v48 = vadd.f32 %v3930_v43, %v3834_v28  ;;  %v8921_v49 = vpop.f32.mrb[83].mxu0  ;;  %9250 = vmatprep.subr.bf16.mxu0 %v9842_v1  ;;  %v6595_v28 = vor.u32 %v6594_v15, %v6590_v14 }
 0x240   : > { %v4020_v51 = vadd.f32 %v4015_v38, %v3935_v48  ;;  %9265 = vmatpush3.bf16.msra.mxu1 %v9730_v50  ;;  %v6600_v30 = vsel %vm218_vm2, %v6595_v28, %v6599_v22 }
 0x241   : > { %9251 = vmatpush3.bf16.msra.mxu0 %v9727_v44  ;;  %9282 = vmatprep.subr.bf16.mxu1 %v9842_v1 }
 0x242   : > { %9252 = vmatprep.subr.bf16.mxu0 %v9842_v1 }
 0x243   : > { %9267 = vmatmul.mubr.msk.bf16.vlgmr.msra.gmra.mrb[136].mxu1 %vm255_vm1, %v9732_v54 }
 0x244   : > { %9283 = vmatpush3.bf16.msra.mxu1 %v9734_v58  ;;  %9290 = vmatprep.mubr.msk.bf16.mxu1 %vm9843_vm0, %v9842_v1 }
 0x245   : > { %9253 = vmatpush3.bf16.msra.mxu0 %v9729_v46  ;;  %9284 = vmatprep.subr.bf16.mxu1 %v9842_v1 }
 0x246   : > { %9270 = vmatprep.subr.bf16.mxu0 %v9842_v1  ;;  %v4202_v63 = vpop.f32.mrb[84].mxu1 }
 0x247   : > { %v8956_v4 = vpop.f32.mrb[85].mxu1 }
 0x248   : > { %9255 = vmatmul.mubr.msk.bf16.vlgmr.msra.gmra.mrb[136].mxu0 %vm255_vm1, %v6410_v59  ;;  %v4205_v6 = vpop.f32.mrb[86].mxu1  ;;  %9285 = vmatpush3.bf16.msra.mxu1 %v9736_v61 }
 0x249   : > { %9271 = vmatpush3.bf16.msra.mxu0 %v9733_v56  ;;  %9278 = vmatprep.mubr.msk.bf16.mxu0 %vm9843_vm0, %v9842_v1  ;;  %v8957_v11 = vpop.f32.mrb[87].mxu1 }
 0x24a   : > { %9272 = vmatprep.subr.bf16.mxu0 %v9842_v1  ;;  %9286 = vmatprep.subr.bf16.mxu1 %v9842_v1 }
 0x24b   : > { %v4101_v5 = vpop.f32.mrb[84].mxu0 }
 0x24c   : > { %v4108_v9 = vadd.f32 %v4101_v5, %v4019_v47  ;;  %v8944_v60 = vpop.f32.mrb[85].mxu0  ;;  %9287 = vmatpush3.bf16.msra.mxu1 %v9738_v7 }
 0x24d   : > { %v4104_v12 = vpop.f32.mrb[86].mxu0  ;;  %9273 = vmatpush3.bf16.msra.mxu0 %v9735_v0  ;;  %9288 = vmatprep.subr.bf16.mxu1 %v9842_v1 }
 0x24e   : > { %v4209_v17 = vadd.f32 %v4202_v63, %v4108_v9  ;;  %v4109_v18 = vadd.f32 %v4104_v12, %v4020_v51  ;;  %v8945_v19 = vpop.f32.mrb[87].mxu0  ;;  %9274 = vmatprep.subr.bf16.mxu0 %v9842_v1 }
 0x250   : > { %v4210_v26 = vadd.f32 %v4205_v6, %v4109_v18  ;;  %9289 = vmatpush3.bf16.msra.mxu1 %v9740_v23 }
 0x251   : > { %9275 = vmatpush3.bf16.msra.mxu0 %v9737_v13 }
 0x252   : > { %9276 = vmatprep.subr.bf16.mxu0 %v9842_v1 }
 0x253   : > { %9291 = vmatmul.mubr.msk.bf16.vlgmr.msra.gmra.mrb[140].mxu1 %vm255_vm1, %v6685_v29 }
 0x255   : > { %9277 = vmatpush3.bf16.msra.mxu0 %v9739_v27 }
 0x256   : > { %v4411_v31 = vpop.f32.mrb[88].mxu1 }
 0x257   : > { %v8980_v33 = vpop.f32.mrb[89].mxu1 }
 0x258   : > { %9279 = vmatmul.mubr.msk.bf16.vlgmr.msra.gmra.mrb[140].mxu0 %vm255_vm1, %v6600_v30  ;;  %v4414_v20 = vpop.f32.mrb[90].mxu1 }
 0x259   : > { %v8981_v32 = vpop.f32.mrb[91].mxu1 }
 0x25b   : > { %v4287_v34 = vpop.f32.mrb[88].mxu0 }
 0x25c   : > { %v4294_v35 = vadd.f32 %v4287_v34, %v4209_v17  ;;  %v8968_v36 = vpop.f32.mrb[89].mxu0 }
 0x25d   : > { %v4290_v1 = vpop.f32.mrb[90].mxu0 }
 0x25e   : > { %v4296_v37 = vadd.f32 %v11266_v10, %v4294_v35  ;;  %v4295_v38 = vadd.f32 %v4290_v1, %v4210_v26  ;;  %v8969_v39 = vpop.f32.mrb[91].mxu0 }
 0x260   : > { %v4298_v40 = vmax.f32 %v4296_v37, 0.0  ;;  %v4297_v41 = vadd.f32 %v11266_v10, %v4295_v38 }
 0x262   : > { %v8061_v42 = vpack.c.bf16 %v4298_v40, %v4298_v40  ;;  %v4299_v43 = vmax.f32 %v4297_v41, 0.0 }
 0x264   : > { %7617 = vst.msk [vmem:[%s10838_s8 + $0x20] sm:$0xf] %vm1028_vm4, %v8061_v42  ;;  %v8062_v44 = vpack.c.bf16 %v4299_v43, %v4299_v43 }
 0x266   : > { %7618 = vst.msk [vmem:[%s10838_s8 + $0x24] sm:$0xf] %vm1028_vm4, %v8062_v44  ;;  %v4561_v45 = vpop.f32.mrb[92].mxu1 }
 0x267   : > { %v9004_v47 = vpop.f32.mrb[93].mxu1 }
 0x268   : > { %v4564_v49 = vpop.f32.mrb[94].mxu1 }
 0x269   : > { %v9005_v46 = vpop.f32.mrb[95].mxu1 }
 0x26b   : > { %v4478_v48 = vpop.f32.mrb[92].mxu0 }
 0x26c   : > { %v4479_v50 = vadd.f32 %v4478_v48, %v4411_v31  ;;  %v8992_v51 = vpop.f32.mrb[93].mxu0 }
 0x26d   : > { %v4481_v52 = vpop.f32.mrb[94].mxu0 }
 0x26e   : > { %v4568_v53 = vadd.f32 %v4561_v45, %v4479_v50  ;;  %v4482_v54 = vadd.f32 %v4481_v52, %v4414_v20  ;;  %v8993_v55 = vpop.f32.mrb[95].mxu0 }
 0x270   : > { %v4569_v57 = vadd.f32 %v4564_v49, %v4482_v54 }
 0x276   : > { %v4747_v58 = vpop.f32.mrb[96].mxu1 }
 0x277   : > { %v9028_v59 = vpop.f32.mrb[97].mxu1 }
 0x278   : > { %v4750_v21 = vpop.f32.mrb[98].mxu1 }
 0x279   : > { %v9029_v63 = vpop.f32.mrb[99].mxu1 }
 0x27b   : > { %v4646_v56 = vpop.f32.mrb[96].mxu0 }
 0x27c   : > { %v4653_v61 = vadd.f32 %v4646_v56, %v4568_v53  ;;  %v9016_v62 = vpop.f32.mrb[97].mxu0 }
 0x27d   : > { %v4649_v0 = vpop.f32.mrb[98].mxu0 }
 0x27e   : > { %v4754_v2 = vadd.f32 %v4747_v58, %v4653_v61  ;;  %v4654_v3 = vadd.f32 %v4649_v0, %v4569_v57  ;;  %v9017_v4 = vpop.f32.mrb[99].mxu0 }
 0x280   : > { %v4755_v5 = vadd.f32 %v4750_v21, %v4654_v3 }
 0x286   : > { %v4921_v6 = vpop.f32.mrb[100].mxu1 }
 0x287   : > { %v9052_v7 = vpop.f32.mrb[101].mxu1 }
 0x288   : > { %v4924_v9 = vpop.f32.mrb[102].mxu1 }
 0x289   : > { %v9053_v12 = vpop.f32.mrb[103].mxu1 }
 0x28b   : > { %v4832_v8 = vpop.f32.mrb[100].mxu0 }
 0x28c   : > { %v4839_v60 = vadd.f32 %v4832_v8, %v4754_v2  ;;  %v9040_v11 = vpop.f32.mrb[101].mxu0 }
 0x28d   : > { %v4835_v13 = vpop.f32.mrb[102].mxu0 }
 0x28e   : > { %v4928_v14 = vadd.f32 %v4921_v6, %v4839_v60  ;;  %v4840_v15 = vadd.f32 %v4835_v13, %v4755_v5  ;;  %v9041_v16 = vpop.f32.mrb[103].mxu0 }
 0x290   : > { %v4929_v17 = vadd.f32 %v4924_v9, %v4840_v15 }
 0x296   : > { %v5107_v18 = vpop.f32.mrb[104].mxu1 }
 0x297   : > { %v9076_v19 = vpop.f32.mrb[105].mxu1 }
 0x298   : > { %v5110_v24 = vpop.f32.mrb[106].mxu1 }
 0x299   : > { %v9077_v27 = vpop.f32.mrb[107].mxu1 }
 0x29b   : > { %v5022_v23 = vpop.f32.mrb[104].mxu0 }
 0x29c   : > { %v5029_v25 = vadd.f32 %v5022_v23, %v4928_v14  ;;  %v9064_v26 = vpop.f32.mrb[105].mxu0 }
 0x29d   : > { %v5025_v28 = vpop.f32.mrb[106].mxu0 }
 0x29e   : > { %v5114_v22 = vadd.f32 %v5107_v18, %v5029_v25  ;;  %v5030_v29 = vadd.f32 %v5025_v28, %v4929_v17  ;;  %v9065_v30 = vpop.f32.mrb[107].mxu0 }
 0x2a0   : > { %v5116_v31 = vadd.f32 %v11266_v10, %v5114_v22  ;;  %v5115_v33 = vadd.f32 %v5110_v24, %v5030_v29  ;;  %v11680_v22 = vld [vmem:[%s11760_s2] ss:$0 sm:$0xff] }
 0x2a2   : > { %v5118_v34 = vmax.f32 %v5116_v31, 0.0  ;;  %v5117_v20 = vadd.f32 %v11266_v10, %v5115_v33 }
 0x2a4   : > { %v8063_v35 = vpack.c.bf16 %v5118_v34, %v5118_v34  ;;  %v5119_v36 = vmax.f32 %v5117_v20, 0.0 }
 0x2a6   : > { %7759 = vst.msk [vmem:[%s10838_s8 + $0x28] sm:$0xf] %vm1028_vm4, %v8063_v35  ;;  %v8064_v32 = vpack.c.bf16 %v5119_v36, %v5119_v36  ;;  %v5298_v1 = vpop.f32.mrb[108].mxu1 }
 0x2a7   : > { %v9100_v37 = vpop.f32.mrb[109].mxu1 }
 0x2a8   : > { %7760 = vst.msk [vmem:[%s10838_s8 + $0x2c] sm:$0xf] %vm1028_vm4, %v8064_v32  ;;  %v5301_v39 = vpop.f32.mrb[110].mxu1 }
 0x2a9   : > { %v9101_v42 = vpop.f32.mrb[111].mxu1 }
 0x2ab   : > { %v5231_v38 = vpop.f32.mrb[108].mxu0 }
 0x2ac   : > { %v5299_v40 = vadd.f32 %v5298_v1, %v5231_v38  ;;  %v9088_v41 = vpop.f32.mrb[109].mxu0 }
 0x2ad   : > { %v5234_v43 = vpop.f32.mrb[110].mxu0 }
 0x2ae   : > { %v5302_v44 = vadd.f32 %v5301_v39, %v5234_v43  ;;  %v9089_v45 = vpop.f32.mrb[111].mxu0 }
 0x2b6   : > { %v5466_v47 = vpop.f32.mrb[112].mxu1 }
 0x2b7   : > { %v9124_v48 = vpop.f32.mrb[113].mxu1 }
 0x2b8   : > { %v5469_v49 = vpop.f32.mrb[114].mxu1 }
 0x2b9   : > { %v9125_v46 = vpop.f32.mrb[115].mxu1 }
 0x2bb   : > { %v5381_v10 = vpop.f32.mrb[112].mxu0 }
 0x2bc   : > { %v5388_v50 = vadd.f32 %v5381_v10, %v5299_v40  ;;  %v9112_v51 = vpop.f32.mrb[113].mxu0 }
 0x2bd   : > { %v5384_v52 = vpop.f32.mrb[114].mxu0 }
 0x2be   : > { %v5473_v53 = vadd.f32 %v5466_v47, %v5388_v50  ;;  %v5389_v54 = vadd.f32 %v5384_v52, %v5302_v44  ;;  %v9113_v55 = vpop.f32.mrb[115].mxu0 }
 0x2c0   : > { %v5474_v57 = vadd.f32 %v5469_v49, %v5389_v54 }
 0x2c6   : > { %v5652_v58 = vpop.f32.mrb[116].mxu1 }
 0x2c7   : > { %v9148_v59 = vpop.f32.mrb[117].mxu1 }
 0x2c8   : > { %v5655_v21 = vpop.f32.mrb[118].mxu1 }
 0x2c9   : > { %v9149_v63 = vpop.f32.mrb[119].mxu1 }
 0x2cb   : > { %v5567_v56 = vpop.f32.mrb[116].mxu0 }
 0x2cc   : > { %v5574_v61 = vadd.f32 %v5567_v56, %v5473_v53  ;;  %v9136_v62 = vpop.f32.mrb[117].mxu0 }
 0x2cd   : > { %v5570_v0 = vpop.f32.mrb[118].mxu0 }
 0x2ce   : > { %v5659_v2 = vadd.f32 %v5652_v58, %v5574_v61  ;;  %v5575_v3 = vadd.f32 %v5570_v0, %v5474_v57  ;;  %v9137_v4 = vpop.f32.mrb[119].mxu0 }
 0x2d0   : > { %v5660_v5 = vadd.f32 %v5655_v21, %v5575_v3 }
 0x2d6   : > { %v5842_v6 = vpop.f32.mrb[120].mxu1 }
 0x2d7   : > { %v9172_v7 = vpop.f32.mrb[121].mxu1 }
 0x2d8   : > { %v5845_v9 = vpop.f32.mrb[122].mxu1 }
 0x2d9   : > { %v9173_v12 = vpop.f32.mrb[123].mxu1 }
 0x2db   : > { %v5741_v8 = vpop.f32.mrb[120].mxu0 }
 0x2dc   : > { %v5748_v60 = vadd.f32 %v5741_v8, %v5659_v2  ;;  %v9160_v11 = vpop.f32.mrb[121].mxu0 }
 0x2dd   : > { %v5744_v13 = vpop.f32.mrb[122].mxu0 }
 0x2de   : > { %v5849_v14 = vadd.f32 %v5842_v6, %v5748_v60  ;;  %v5749_v15 = vadd.f32 %v5744_v13, %v5660_v5  ;;  %v9161_v16 = vpop.f32.mrb[123].mxu0 }
 0x2e0   : > { %v5850_v17 = vadd.f32 %v5845_v9, %v5749_v15 }
 0x2e6   : > { %v6051_v18 = vpop.f32.mrb[124].mxu1 }
 0x2e7   : > { %v9196_v19 = vpop.f32.mrb[125].mxu1 }
 0x2e8   : > { %v6054_v24 = vpop.f32.mrb[126].mxu1 }
 0x2e9   : > { %v9197_v27 = vpop.f32.mrb[127].mxu1 }
 0x2eb   : > { %v5927_v23 = vpop.f32.mrb[124].mxu0 }
 0x2ec   : > { %v5934_v25 = vadd.f32 %v5927_v23, %v5849_v14  ;;  %v9184_v26 = vpop.f32.mrb[125].mxu0 }
 0x2ed   : > { %v5930_v28 = vpop.f32.mrb[126].mxu0 }
 0x2ee   : > { %v5936_v29 = vadd.f32 %v11680_v22, %v5934_v25  ;;  %v5935_v30 = vadd.f32 %v5930_v28, %v5850_v17  ;;  %v9185_v31 = vpop.f32.mrb[127].mxu0 }
 0x2f0   : > { %v5938_v33 = vmax.f32 %v5936_v29, 0.0  ;;  %v5937_v34 = vadd.f32 %v11680_v22, %v5935_v30 }
 0x2f2   : > { %v8065_v20 = vpack.c.bf16 %v5938_v33, %v5938_v33  ;;  %v5939_v35 = vmax.f32 %v5937_v34, 0.0 }
 0x2f4   : > { %7901 = vst.msk [vmem:[%s10838_s8 + $0x30] sm:$0xf] %vm1028_vm4, %v8065_v20  ;;  %v8066_v36 = vpack.c.bf16 %v5939_v35, %v5939_v35 }
 0x2f6   : > { %7902 = vst.msk [vmem:[%s10838_s8 + $0x34] sm:$0xf] %vm1028_vm4, %v8066_v36  ;;  %v6201_v32 = vpop.f32.mrb[128].mxu1 }
 0x2f7   : > { %v9220_v1 = vpop.f32.mrb[129].mxu1 }
 0x2f8   : > { %v6204_v38 = vpop.f32.mrb[130].mxu1 }
 0x2f9   : > { %v9221_v41 = vpop.f32.mrb[131].mxu1 }
 0x2fb   : > { %v6118_v37 = vpop.f32.mrb[128].mxu0 }
 0x2fc   : > { %v6119_v39 = vadd.f32 %v6118_v37, %v6051_v18  ;;  %v9208_v40 = vpop.f32.mrb[129].mxu0 }
 0x2fd   : > { %v6121_v42 = vpop.f32.mrb[130].mxu0 }
 0x2fe   : > { %v6208_v43 = vadd.f32 %v6201_v32, %v6119_v39  ;;  %v6122_v44 = vadd.f32 %v6121_v42, %v6054_v24  ;;  %v9209_v45 = vpop.f32.mrb[131].mxu0 }
 0x300   : > { %v6209_v47 = vadd.f32 %v6204_v38, %v6122_v44 }
 0x306   : > { %v6387_v48 = vpop.f32.mrb[132].mxu1 }
 0x307   : > { %v9244_v10 = vpop.f32.mrb[133].mxu1 }
 0x308   : > { %v6390_v50 = vpop.f32.mrb[134].mxu1 }
 0x309   : > { %v9245_v52 = vpop.f32.mrb[135].mxu1 }
 0x30b   : > { %v6286_v49 = vpop.f32.mrb[132].mxu0 }
 0x30c   : > { %v6293_v51 = vadd.f32 %v6286_v49, %v6208_v43  ;;  %v9232_v46 = vpop.f32.mrb[133].mxu0 }
 0x30d   : > { %v6289_v53 = vpop.f32.mrb[134].mxu0 }
 0x30e   : > { %v6394_v54 = vadd.f32 %v6387_v48, %v6293_v51  ;;  %v6294_v55 = vadd.f32 %v6289_v53, %v6209_v47  ;;  %v9233_v57 = vpop.f32.mrb[135].mxu0 }
 0x310   : > { %v6395_v58 = vadd.f32 %v6390_v50, %v6294_v55 }
 0x316   : > { %v6561_v59 = vpop.f32.mrb[136].mxu1 }
 0x317   : > { %v9268_v56 = vpop.f32.mrb[137].mxu1 }
 0x318   : > { %v6564_v61 = vpop.f32.mrb[138].mxu1 }
 0x319   : > { %v9269_v0 = vpop.f32.mrb[139].mxu1 }
 0x31b   : > { %v6472_v21 = vpop.f32.mrb[136].mxu0 }
 0x31c   : > { %v6479_v62 = vadd.f32 %v6472_v21, %v6394_v54  ;;  %v9256_v63 = vpop.f32.mrb[137].mxu0 }
 0x31d   : > { %v6475_v2 = vpop.f32.mrb[138].mxu0 }
 0x31e   : > { %v6568_v3 = vadd.f32 %v6561_v59, %v6479_v62  ;;  %v6480_v4 = vadd.f32 %v6475_v2, %v6395_v58  ;;  %v9257_v5 = vpop.f32.mrb[139].mxu0 }
 0x320   : > { %v6569_v6 = vadd.f32 %v6564_v61, %v6480_v4 }
 0x326   : > { %v6747_v7 = vpop.f32.mrb[140].mxu1 }
 0x327   : > { %v9292_v8 = vpop.f32.mrb[141].mxu1 }
 0x328   : > { %v6750_v60 = vpop.f32.mrb[142].mxu1 }
 0x329   : > { %v9293_v13 = vpop.f32.mrb[143].mxu1 }
 0x32b   : > { %v6662_v9 = vpop.f32.mrb[140].mxu0 }
 0x32c   : > { %v6669_v11 = vadd.f32 %v6662_v9, %v6568_v3  ;;  %v9280_v12 = vpop.f32.mrb[141].mxu0 }
 0x32d   : > { %v6665_v14 = vpop.f32.mrb[142].mxu0 }
 0x32e   : > { %v6754_v15 = vadd.f32 %v6747_v7, %v6669_v11  ;;  %v6670_v16 = vadd.f32 %v6665_v14, %v6569_v6  ;;  %v9281_v17 = vpop.f32.mrb[143].mxu0 }
 0x330   : > { %v6756_v18 = vadd.f32 %v11680_v22, %v6754_v15  ;;  %v6755_v19 = vadd.f32 %v6750_v60, %v6670_v16 }
 0x332   : > { %v6758_v23 = vmax.f32 %v6756_v18, 0.0  ;;  %v6757_v24 = vadd.f32 %v11680_v22, %v6755_v19 }
 0x334   : > { %v8067_v25 = vpack.c.bf16 %v6758_v23, %v6758_v23  ;;  %v6759_v26 = vmax.f32 %v6757_v24, 0.0 }
 0x336   : > { %8043 = vst.msk [vmem:[%s10838_s8 + $0x38] sm:$0xf] %vm1028_vm4, %v8067_v25  ;;  %v8068_v27 = vpack.c.bf16 %v6759_v26, %v6759_v26 }
 0x338   : > { %8044 = vst.msk [vmem:[%s10838_s8 + $0x3c] sm:$0xf] %vm1028_vm4, %v8068_v27 }
 0x339   : > { %9759 = shalt.err (!%p9756_p6)
}
 0x33a   : > { %s9760_s28 = scalar_lea.hbm %s11696_s20, 1024  ;;  %s9764_s6 = scalar_lea.hbm %s11761_s3, 4096 }
 0x33b   : > { %p9761_p7 = scmp.ne.s32.totalorder %s11696_s20, %s9760_s28  ;;  %p9765_p11 = scmp.lt.u32.totalorder %s11696_s20, %s11761_s3 }
 0x33c   : > { %p9766_p12 = scmp.lt.u32.totalorder %s9764_s6, %s9760_s28  ;;  %p9768_p0 = scmp.lt.u32.totalorder %s9760_s28, %s11696_s20 }
 0x33d   : > { %p9762_p9 = pnand %p9761_p7, %p9918_p3 }
 0x33e   : > { %p9767_p13 = por %p9766_p12, %p9765_p11 }
 0x33f   : > { %p9763_p10 = pneg %p9762_p9 }
 0x340   : > { %p9769_p1 = por %p9768_p0, %p9767_p13 }
 0x342   : > { %p9770_p2 = pnand %p9769_p1, %p9763_p10 }
 0x344   : > { %9773 = shalt.err (!%p9770_p2)
}
 0x345   : > { %s9845_s11 = smov 64   ;;  %s9846_s15 = smov 4  }
 0x346   : > { %9295 = dma.vmem_to_hbm [thread:$0]  (%p9918_p3), %s11698_s10, 1024, %s11696_s20, %s11706_s21, %s9845_s11, %s9845_s11, %s9846_s15  }
 0x347 PF: > { %p9301_p4 = scmp.ge.s32.totalorder %s9840_s19, 2  ;;  %s6803_s16 = sand.u32 1, %s9812_s12  }
 0x348   : > { %s6804_s24 = scalar_lea.sflag [#allocation3], %s6803_s16 }
 0x349   : > { %p9298_p5 = pnand %p9301_p4, %p9927_p8 }
 0x34b   : > { %9807 = dma.done.wait (!%p9298_p5), %s6804_s24, 1024  }
 0x34c   : > { %9809 = vsyncadd (!%p9298_p5), %s6804_s24, 4294966272  ;;  %s16_s19 = sadd.s32 1, %s9840_s19   ;;  %s11764_s12 = smov %s9816_s13 }
 0x34d   : > { %p13_p6 = scmp.ge.s32.totalorder %s16_s19, 6   ;;  %s11765_s13 = smov %s9820_s14 }
 0x34e   : > { %s11766_s14 = smov %s9936_s30  ;;  %s11767_s15 = smov %s9832_s17 }
 0x34f   : > { %s11768_s16 = smov %s9836_s18  ;;  %s11769_s17 = smov %s11772_s22 }
 0x350   : > { %s11770_s18 = smov %s11776_s23  ;;  %15 = sbr.rel (!%p13_p6) target bundleno = 5 (0x5), region = 92 }
 0x357   :  { %6809 = vsyncpa [#allocation3], 1 }
 0x358   :  { %6811 = vsyncpa [#allocation3 + $0x1], 1 }

</bundles_post_ra>
